<compile_context>
chip_gen: v5e
topology: v5e:2x2
jax: 0.10.0
libtpu: 0.0.40
codegen_flags: <defaults>
</compile_context>

<pallas_src>
import jax
import jax.numpy as jnp
from jax.experimental import pallas as pl
from jax.experimental.pallas import tpu as pltpu

_INV_SQRT2 = 0.7071067811865476


# --------------------------------------------------------------------------
# Kernel
# --------------------------------------------------------------------------
def _encoding_augment_kernel(x_ref, wconv_ref, bconv_ref, wpw_ref, bpw_ref,
                             out_ref, xcol_ref, xflat_ref):
    Bblk, F, S = x_ref.shape
    KF = wconv_ref.shape[1]
    K = KF // F
    pad = K // 2

    # Zero the im2col scratch once; the "zero padding" regions of xcol are
    # never overwritten, so they persist across grid steps.
    @pl.when(pl.program_id(0) == 0)
    def _():
        xcol_ref[...] = jnp.zeros_like(xcol_ref)

    # Build the im2col buffer (bf16) and the lane-flattened f32 copy of x:
    #   xcol[k*F:(k+1)*F, b*S + s] = x[b, :, s + k - pad]   (0 where OOB)
    for b in range(Bblk):
        xb = x_ref[b]                                   # (F, S) f32
        xflat_ref[:, b * S:(b + 1) * S] = xb
        xb16 = xb.astype(xcol_ref.dtype)
        for k in range(K):
            d = k - pad
            n = S - abs(d)
            if n <= 0:
                continue
            src_lo = max(0, d)
            dst_lo = b * S + max(0, -d)
            xcol_ref[k * F:(k + 1) * F, dst_lo:dst_lo + n] = \
                xb16[:, src_lo:src_lo + n]

    # relative_position: grouped Conv1d as a single deep (F,K*F)@(K*F,B*S)
    # bf16 matmul with f32 accumulation, then bias + exact GELU (f32).
    conv = jnp.dot(wconv_ref[...], xcol_ref[...],
                   preferred_element_type=jnp.float32)
    conv = conv + bconv_ref[...]                        # (F,1) broadcast
    rel = 0.5 * conv * (1.0 + jax.lax.erf(conv * _INV_SQRT2))  # nn.GELU exact
    # TODO(synk): tanh-approx GELU would move this VPU polynomial onto the
    # (idle) EUP slot but diverges from nn.GELU()'s erf; kept exact.

    # residual + LayerNorm over the feature (sublane) axis, eps=1e-5.
    # The affine (gamma, beta) is folded into the 1x1 conv weights.
    y = xflat_ref[...] + rel
    mean = jnp.mean(y, axis=0, keepdims=True)
    var = jnp.mean((y - mean) ** 2, axis=0, keepdims=True)
    ynorm = (y - mean) * jax.lax.rsqrt(var + 1e-5)

    # 1x1 Conv1d (F -> 3F) with LN-affine-folded weights, bf16 MXU / f32 acc.
    out = jnp.dot(wpw_ref[...], ynorm.astype(wpw_ref.dtype),
                  preferred_element_type=jnp.float32)
    out = out + bpw_ref[...]

    # Per-batch-element store: lane width S (multiple of 128 => dense vst).
    for b in range(Bblk):
        out_ref[b] = out[:, b * S:(b + 1) * S].astype(out_ref.dtype)


# --------------------------------------------------------------------------
# Wrapper
# --------------------------------------------------------------------------
def _pick_block_b(bs, S, target_lanes=256):
    """Largest power-of-two divisor of bs such that block_b*S >= target lanes
    (keeps the grid extent >= 2 when bs allows, for v7x megacore)."""
    bb = 1
    while bb < bs and bb * S < target_lanes and bs % (bb * 2) == 0:
        bb *= 2
    return bb


def encoding_augment_forward(x, kparams, mask_t=None, mask_c=None,
                             block_b=None):
    """x: (bs, F, S) f32 -> (bs, 3F, S) f32.  kparams from prepare_params()."""
    bs, F, S = x.shape
    KF = kparams["w_conv_flat"].shape[1]
    F3 = kparams["pw_w_fold"].shape[0]

    # Deterministic masking (eval path / caller-supplied masks).
    if mask_t is not None:     # (bs, S) bool: replace masked time columns
        x = jnp.where(mask_t[:, None, :],
                      kparams["mask_replacement"][None, :, None], x)
    if mask_c is not None:     # (bs, F) bool: zero masked channels
        x = jnp.where(mask_c[:, :, None], 0.0, x)
    # TODO(synk): training-mode stochastic _make_mask / nn.Dropout are not
    # implemented; only the deterministic (eval / masks-given) path is.

    if block_b is None:
        block_b = _pick_block_b(bs, S)
    assert bs % block_b == 0, (bs, block_b)
    BS = block_b * S

    # Per-step VMEM working set (double-buffered I/O + weights + scratch);
    # derive the limit explicitly — v7x has only 64 MiB of VMEM.
    est = (2 * block_b * F * S * 4                     # x blocks
           + 2 * block_b * F3 * S * 4                  # out blocks
           + 2 * (F * KF * 2 + F * 4 + F3 * F * 2 + F3 * 4)  # weights/biases
           + KF * BS * 2                               # im2col scratch (bf16)
           + F * BS * 4)                               # flattened x (f32)
    vmem_limit = int(min(max(2 * est, 4 * 2 ** 20), 48 * 2 ** 20))

    return pl.pallas_call(
        _encoding_augment_kernel,
        out_shape=jax.ShapeDtypeStruct((bs, F3, S), jnp.float32),
        grid_spec=pltpu.PrefetchScalarGridSpec(
            num_scalar_prefetch=0,
            grid=(bs // block_b,),
            in_specs=[
                pl.BlockSpec((block_b, F, S), lambda i: (i, 0, 0)),
                # Constant-index weight/bias blocks (resident across steps).
                # NOTE: at large F, single-buffer these (pl.Buffered(1)) and
                # switch to a compact (F, K*cpg) grouped weight to stay inside
                # v7x's 64 MiB VMEM; negligible at this F.
                pl.BlockSpec((F, KF), lambda i: (0, 0)),
                pl.BlockSpec((F, 1), lambda i: (0, 0)),
                pl.BlockSpec((F3, F), lambda i: (0, 0)),
                pl.BlockSpec((F3, 1), lambda i: (0, 0)),
            ],
            out_specs=pl.BlockSpec((block_b, F3, S), lambda i: (i, 0, 0)),
            scratch_shapes=[
                pltpu.VMEM((KF, BS), jnp.bfloat16),    # im2col buffer
                pltpu.VMEM((F, BS), jnp.float32),      # lane-flattened x
            ]),
        compiler_params=pltpu.CompilerParams(
            dimension_semantics=("parallel",),
            vmem_limit_bytes=vmem_limit),
    )(x, kparams["w_conv_flat"], kparams["conv_b"],
      kparams["pw_w_fold"], kparams["pw_b_fold"])


# --------------------------------------------------------------------------
# Parameter construction / preparation
# --------------------------------------------------------------------------
def init_params(key, in_features=32, groups=16, position_encoder=25):
    """Synthetic params mirroring EncodingAugment.__init__.

    PyTorch init has conv bias = 0, LN gamma = 1 / beta = 0 and
    mask_replacement = 0; they are slightly perturbed here so those code
    paths (bias add, affine fold, mask replacement) are numerically
    exercised by the test.
    """
    F, K, F3 = in_features, position_encoder, 3 * in_features
    cpg = F // groups
    k1, k2, k3, k4, k5, k6, k7 = jax.random.split(key, 7)

    # grouped conv weight ~ N(0, 2/transformer_dim); weight_norm(dim=2) with
    # g = ||v||_(dims 0,1) at init => w == v numerically.
    v = jax.random.normal(k1, (F, cpg, K), jnp.float32) * (2.0 / F3)
    norm = jnp.sqrt(jnp.sum(v * v, axis=(0, 1), keepdims=True))
    conv_w = norm * v / jnp.maximum(norm, 1e-12)

    return {
        "mask_replacement": 0.05 * jax.random.normal(k4, (F,), jnp.float32),
        "conv_w": conv_w,                              # (F_out, cpg, K) grouped
        "conv_b": 0.1 * jax.random.normal(k5, (F,), jnp.float32),
        "ln_w": 1.0 + 0.1 * jax.random.normal(k6, (F,), jnp.float32),
        "ln_b": 0.1 * jax.random.normal(k7, (F,), jnp.float32),
        "pw_w": jax.random.normal(k2, (F3, F), jnp.float32) / jnp.sqrt(F),
        "pw_b": 0.01 * jax.random.normal(k3, (F3,), jnp.float32),
    }


def prepare_params(params, compute_dtype=jnp.bfloat16):
    """Kernel-side parameter prep: flatten the grouped conv weight to a
    (F, K*F) im2col matmul weight (bf16) and fold the LayerNorm affine into
    the 1x1 conv (bf16 weight, f32 bias)."""
    conv_w = params["conv_w"]                          # (F, cpg, K)
    F, cpg, K = conv_w.shape
    F3 = params["pw_w"].shape[0]

    # Scatter the grouped weight into block-diagonal dense (K, F_out, F_in),
    # then flatten to (F_out, K*F_in).
    # TODO(synk): at large F use a compact (F, K*cpg) weight + group-gathered
    # im2col to avoid 15/16 structural-zero MACs and weight VMEM.
    wd = jnp.zeros((K, F, F), jnp.float32)
    for o in range(F):
        g = o // cpg
        wd = wd.at[:, o, g * cpg:(g + 1) * cpg].set(conv_w[o].T)
    w_flat = jnp.transpose(wd, (1, 0, 2)).reshape(F, K * F)

    # Fold LN affine:  pw_w @ (g*n + b) + pw_b == (pw_w*g) @ n + (pw_w@b + pw_b)
    pw_w_fold = params["pw_w"] * params["ln_w"][None, :]
    pw_b_fold = params["pw_b"] + params["pw_w"] @ params["ln_b"]

    return {
        "mask_replacement": params["mask_replacement"],
        "w_conv_flat": w_flat.astype(compute_dtype),
        "conv_b": params["conv_b"].reshape(F, 1),
        "pw_w_fold": pw_w_fold.astype(compute_dtype),
        "pw_b_fold": pw_b_fold.reshape(F3, 1),
    }


# --------------------------------------------------------------------------
# Pure-JAX references
# --------------------------------------------------------------------------
def reference_forward_matched(x, kp):
    """Reference mirroring the kernel's numerics (bf16 matmul operands with
    f32 accumulation, LN affine folded into the 1x1 conv)."""
    bs, F, S = x.shape
    KF = kp["w_conv_flat"].shape[1]
    K = KF // F
    pad = K // 2
    xpad = jnp.pad(x, ((0, 0), (0, 0), (pad, pad))).astype(jnp.bfloat16)
    xcol = jnp.concatenate([xpad[:, :, k:k + S] for k in range(K)], axis=1)
    conv = jnp.einsum("fk,bks->bfs", kp["w_conv_flat"], xcol,
                      preferred_element_type=jnp.float32)
    conv = conv + kp["conv_b"][None]
    rel = 0.5 * conv * (1.0 + jax.lax.erf(conv * _INV_SQRT2))
    y = x + rel
    mean = jnp.mean(y, axis=1, keepdims=True)
    var = jnp.mean((y - mean) ** 2, axis=1, keepdims=True)
    yn = (y - mean) * jax.lax.rsqrt(var + 1e-5)
    out = jnp.einsum("of,bfs->bos", kp["pw_w_fold"], yn.astype(jnp.bfloat16),
                     preferred_element_type=jnp.float32)
    return out + kp["pw_b_fold"][None]


def reference_forward_f32(x, params):
    """Full-f32, un-folded reference of EncodingAugment's forward (eval)."""
    conv_w = params["conv_w"]                          # (F, cpg, K)
    F, cpg, K = conv_w.shape
    groups = F // cpg
    pad = K // 2
    conv = jax.lax.conv_general_dilated(
        x, conv_w, window_strides=(1,), padding=((pad, pad),),
        dimension_numbers=("NCH", "OIH", "NCH"),
        feature_group_count=groups)
    conv = conv + params["conv_b"][None, :, None]
    rel = 0.5 * conv * (1.0 + jax.lax.erf(conv * _INV_SQRT2))
    y = x + rel
    mean = jnp.mean(y, axis=1, keepdims=True)
    var = jnp.mean((y - mean) ** 2, axis=1, keepdims=True)
    yn = (y - mean) * jax.lax.rsqrt(var + 1e-5)
    yn = yn * params["ln_w"][None, :, None] + params["ln_b"][None, :, None]
    return (jnp.einsum("of,bfs->bos", params["pw_w"], yn)
            + params["pw_b"][None, :, None])


# --------------------------------------------------------------------------
# Demo / correctness check
# --------------------------------------------------------------------------
if __name__ == "__main__":
    key = jax.random.PRNGKey(0)
    kx, kp, kmt, kmc = jax.random.split(key, 4)

    bs, F, S = 4, 32, 128          # F divisible by groups=16; S multiple of 128
    groups, K = 16, 25
    x = jax.random.normal(kx, (bs, F, S), jnp.float32)

    params = init_params(kp, in_features=F, groups=groups, position_encoder=K)
    kparams = prepare_params(params)

    out = jax.block_until_ready(encoding_augment_forward(x, kparams))
    assert out.shape == (bs, 3 * F, S), out.shape

    # Primary check: reference with identical (bf16-operand) numerics.
    ref = reference_forward_matched(x, kparams)
    assert jnp.allclose(out, ref, atol=1e-2, rtol=1e-2), \
        float(jnp.max(jnp.abs(out - ref)))

    # Loose semantic check against the full-f32, un-folded formulation.
    ref32 = reference_forward_f32(x, params)
    assert float(jnp.max(jnp.abs(out - ref32))) < 0.1

    # Deterministic masked path.
    mt = jax.random.bernoulli(kmt, 0.1, (bs, S))
    mc = jax.random.bernoulli(kmc, 0.1, (bs, F))
    out_m = jax.block_until_ready(
        encoding_augment_forward(x, kparams, mask_t=mt, mask_c=mc))
    xm = jnp.where(mt[:, None, :], params["mask_replacement"][None, :, None], x)
    xm = jnp.where(mc[:, :, None], 0.0, xm)
    ref_m = reference_forward_matched(xm, kparams)
    assert jnp.allclose(out_m, ref_m, atol=1e-2, rtol=1e-2), \
        float(jnp.max(jnp.abs(out_m - ref_m)))

    print("KERNEL_OK")
</pallas_src>

<mosaic_0001>
module attributes {stable_mosaic.version = 11 : i64} {
  func.func @_encoding_augment_kernel(%arg0: i32, %arg1: memref<2x32x128xf32, #tpu.memory_space<vmem>>, %arg2: memref<32x800xbf16, #tpu.memory_space<vmem>>, %arg3: memref<32x1xf32, #tpu.memory_space<vmem>>, %arg4: memref<96x32xbf16, #tpu.memory_space<vmem>>, %arg5: memref<96x1xf32, #tpu.memory_space<vmem>>, %arg6: memref<2x96x128xf32, #tpu.memory_space<vmem>>, %arg7: memref<800x256xbf16, #tpu.memory_space<vmem>>, %arg8: memref<32x256xf32, #tpu.memory_space<vmem>>) attributes {dimension_semantics = [#tpu.dimension_semantics<parallel>], iteration_bounds = array<i64: 2>, scalar_prefetch = 0 : i64, scratch_operands = 2 : i64, tpu.core_type = #tpu.core_type<tc>, window_params = [{transform_indices = @transform_0, window_bounds = array<i64: 2, 32, 128>}, {pipeline_mode = #tpu.pipeline_mode<synchronous>, transform_indices = @transform_1, window_bounds = array<i64: 32, 800>}, {pipeline_mode = #tpu.pipeline_mode<synchronous>, transform_indices = @transform_2, window_bounds = array<i64: 32, 1>}, {pipeline_mode = #tpu.pipeline_mode<synchronous>, transform_indices = @transform_3, window_bounds = array<i64: 96, 32>}, {pipeline_mode = #tpu.pipeline_mode<synchronous>, transform_indices = @transform_4, window_bounds = array<i64: 96, 1>}, {transform_indices = @transform_5, window_bounds = array<i64: 2, 96, 128>}]} {
    %c0_i32 = arith.constant 0 : i32
    %0 = arith.cmpi eq, %arg0, %c0_i32 : i32
    %1 = arith.extui %0 : i1 to i32
    %c0_i32_0 = arith.constant 0 : i32
    %2 = arith.cmpi ne, %1, %c0_i32_0 : i32
    scf.if %2 {
      %cst_89 = arith.constant 0.000000e+00 : bf16
      %157 = vector.broadcast %cst_89 : bf16 to vector<800x256xbf16>
      %c0_90 = arith.constant 0 : index
      %c0_91 = arith.constant 0 : index
      %158 = vector.load %arg7[%c0_90, %c0_91] : memref<800x256xbf16, #tpu.memory_space<vmem>>, vector<800x256xbf16>
      tpu.vector_store %arg7[%c0_90, %c0_91], %157 {strides = array<i32>} : memref<800x256xbf16, #tpu.memory_space<vmem>>, vector<800x256xbf16>,
    } else {
    }
    %c0 = arith.constant 0 : index
    %c0_1 = arith.constant 0 : index
    %c0_2 = arith.constant 0 : index
    %3 = vector.load %arg1[%c0, %c0_1, %c0_2] : memref<2x32x128xf32, #tpu.memory_space<vmem>>, vector<1x32x128xf32>
    %4 = vector.shape_cast %3 : vector<1x32x128xf32> to vector<32x128xf32>
    %c0_3 = arith.constant 0 : index
    %c0_4 = arith.constant 0 : index
    %5 = vector.load %arg8[%c0_3, %c0_4] : memref<32x256xf32, #tpu.memory_space<vmem>>, vector<32x128xf32>
    tpu.vector_store %arg8[%c0_3, %c0_4], %4 {strides = array<i32>} : memref<32x256xf32, #tpu.memory_space<vmem>>, vector<32x128xf32>,
    %6 = arith.truncf %4 : vector<32x128xf32> to vector<32x128xbf16>
    %7 = vector.extract_strided_slice %6 {offsets = [0, 0], sizes = [32, 116], strides = [1, 1]} : vector<32x128xbf16> to vector<32x116xbf16>
    %c0_5 = arith.constant 0 : index
    %c12 = arith.constant 12 : index
    %8 = vector.load %arg7[%c0_5, %c12] : memref<800x256xbf16, #tpu.memory_space<vmem>>, vector<32x116xbf16>
    tpu.vector_store %arg7[%c0_5, %c12], %7 {strides = array<i32>} : memref<800x256xbf16, #tpu.memory_space<vmem>>, vector<32x116xbf16>,
    %9 = vector.extract_strided_slice %6 {offsets = [0, 0], sizes = [32, 117], strides = [1, 1]} : vector<32x128xbf16> to vector<32x117xbf16>
    %c32 = arith.constant 32 : index
    %c11 = arith.constant 11 : index
    %10 = vector.load %arg7[%c32, %c11] : memref<800x256xbf16, #tpu.memory_space<vmem>>, vector<32x117xbf16>
    tpu.vector_store %arg7[%c32, %c11], %9 {strides = array<i32>} : memref<800x256xbf16, #tpu.memory_space<vmem>>, vector<32x117xbf16>,
    %11 = vector.extract_strided_slice %6 {offsets = [0, 0], sizes = [32, 118], strides = [1, 1]} : vector<32x128xbf16> to vector<32x118xbf16>
    %c64 = arith.constant 64 : index
    %c10 = arith.constant 10 : index
    %12 = vector.load %arg7[%c64, %c10] : memref<800x256xbf16, #tpu.memory_space<vmem>>, vector<32x118xbf16>
    tpu.vector_store %arg7[%c64, %c10], %11 {strides = array<i32>} : memref<800x256xbf16, #tpu.memory_space<vmem>>, vector<32x118xbf16>,
    %13 = vector.extract_strided_slice %6 {offsets = [0, 0], sizes = [32, 119], strides = [1, 1]} : vector<32x128xbf16> to vector<32x119xbf16>
    %c96 = arith.constant 96 : index
    %c9 = arith.constant 9 : index
    %14 = vector.load %arg7[%c96, %c9] : memref<800x256xbf16, #tpu.memory_space<vmem>>, vector<32x119xbf16>
    tpu.vector_store %arg7[%c96, %c9], %13 {strides = array<i32>} : memref<800x256xbf16, #tpu.memory_space<vmem>>, vector<32x119xbf16>,
    %15 = vector.extract_strided_slice %6 {offsets = [0, 0], sizes = [32, 120], strides = [1, 1]} : vector<32x128xbf16> to vector<32x120xbf16>
    %c128 = arith.constant 128 : index
    %c8 = arith.constant 8 : index
    %16 = vector.load %arg7[%c128, %c8] : memref<800x256xbf16, #tpu.memory_space<vmem>>, vector<32x120xbf16>
    tpu.vector_store %arg7[%c128, %c8], %15 {strides = array<i32>} : memref<800x256xbf16, #tpu.memory_space<vmem>>, vector<32x120xbf16>,
    %17 = vector.extract_strided_slice %6 {offsets = [0, 0], sizes = [32, 121], strides = [1, 1]} : vector<32x128xbf16> to vector<32x121xbf16>
    %c160 = arith.constant 160 : index
    %c7 = arith.constant 7 : index
    %18 = vector.load %arg7[%c160, %c7] : memref<800x256xbf16, #tpu.memory_space<vmem>>, vector<32x121xbf16>
    tpu.vector_store %arg7[%c160, %c7], %17 {strides = array<i32>} : memref<800x256xbf16, #tpu.memory_space<vmem>>, vector<32x121xbf16>,
    %19 = vector.extract_strided_slice %6 {offsets = [0, 0], sizes = [32, 122], strides = [1, 1]} : vector<32x128xbf16> to vector<32x122xbf16>
    %c192 = arith.constant 192 : index
    %c6 = arith.constant 6 : index
    %20 = vector.load %arg7[%c192, %c6] : memref<800x256xbf16, #tpu.memory_space<vmem>>, vector<32x122xbf16>
    tpu.vector_store %arg7[%c192, %c6], %19 {strides = array<i32>} : memref<800x256xbf16, #tpu.memory_space<vmem>>, vector<32x122xbf16>,
    %21 = vector.extract_strided_slice %6 {offsets = [0, 0], sizes = [32, 123], strides = [1, 1]} : vector<32x128xbf16> to vector<32x123xbf16>
    %c224 = arith.constant 224 : index
    %c5 = arith.constant 5 : index
    %22 = vector.load %arg7[%c224, %c5] : memref<800x256xbf16, #tpu.memory_space<vmem>>, vector<32x123xbf16>
    tpu.vector_store %arg7[%c224, %c5], %21 {strides = array<i32>} : memref<800x256xbf16, #tpu.memory_space<vmem>>, vector<32x123xbf16>,
    %23 = vector.extract_strided_slice %6 {offsets = [0, 0], sizes = [32, 124], strides = [1, 1]} : vector<32x128xbf16> to vector<32x124xbf16>
    %c256 = arith.constant 256 : index
    %c4 = arith.constant 4 : index
    %24 = vector.load %arg7[%c256, %c4] : memref<800x256xbf16, #tpu.memory_space<vmem>>, vector<32x124xbf16>
    tpu.vector_store %arg7[%c256, %c4], %23 {strides = array<i32>} : memref<800x256xbf16, #tpu.memory_space<vmem>>, vector<32x124xbf16>,
    %25 = vector.extract_strided_slice %6 {offsets = [0, 0], sizes = [32, 125], strides = [1, 1]} : vector<32x128xbf16> to vector<32x125xbf16>
    %c288 = arith.constant 288 : index
    %c3 = arith.constant 3 : index
    %26 = vector.load %arg7[%c288, %c3] : memref<800x256xbf16, #tpu.memory_space<vmem>>, vector<32x125xbf16>
    tpu.vector_store %arg7[%c288, %c3], %25 {strides = array<i32>} : memref<800x256xbf16, #tpu.memory_space<vmem>>, vector<32x125xbf16>,
    %27 = vector.extract_strided_slice %6 {offsets = [0, 0], sizes = [32, 126], strides = [1, 1]} : vector<32x128xbf16> to vector<32x126xbf16>
    %c320 = arith.constant 320 : index
    %c2 = arith.constant 2 : index
    %28 = vector.load %arg7[%c320, %c2] : memref<800x256xbf16, #tpu.memory_space<vmem>>, vector<32x126xbf16>
    tpu.vector_store %arg7[%c320, %c2], %27 {strides = array<i32>} : memref<800x256xbf16, #tpu.memory_space<vmem>>, vector<32x126xbf16>,
    %29 = vector.extract_strided_slice %6 {offsets = [0, 0], sizes = [32, 127], strides = [1, 1]} : vector<32x128xbf16> to vector<32x127xbf16>
    %c352 = arith.constant 352 : index
    %c1 = arith.constant 1 : index
    %30 = vector.load %arg7[%c352, %c1] : memref<800x256xbf16, #tpu.memory_space<vmem>>, vector<32x127xbf16>
    tpu.vector_store %arg7[%c352, %c1], %29 {strides = array<i32>} : memref<800x256xbf16, #tpu.memory_space<vmem>>, vector<32x127xbf16>,
    %c384 = arith.constant 384 : index
    %c0_6 = arith.constant 0 : index
    %31 = vector.load %arg7[%c384, %c0_6] : memref<800x256xbf16, #tpu.memory_space<vmem>>, vector<32x128xbf16>
    tpu.vector_store %arg7[%c384, %c0_6], %6 {strides = array<i32>} : memref<800x256xbf16, #tpu.memory_space<vmem>>, vector<32x128xbf16>,
    %32 = vector.extract_strided_slice %6 {offsets = [0, 1], sizes = [32, 127], strides = [1, 1]} : vector<32x128xbf16> to vector<32x127xbf16>
    %c416 = arith.constant 416 : index
    %c0_7 = arith.constant 0 : index
    %33 = vector.load %arg7[%c416, %c0_7] : memref<800x256xbf16, #tpu.memory_space<vmem>>, vector<32x127xbf16>
    tpu.vector_store %arg7[%c416, %c0_7], %32 {strides = array<i32>} : memref<800x256xbf16, #tpu.memory_space<vmem>>, vector<32x127xbf16>,
    %34 = vector.extract_strided_slice %6 {offsets = [0, 2], sizes = [32, 126], strides = [1, 1]} : vector<32x128xbf16> to vector<32x126xbf16>
    %c448 = arith.constant 448 : index
    %c0_8 = arith.constant 0 : index
    %35 = vector.load %arg7[%c448, %c0_8] : memref<800x256xbf16, #tpu.memory_space<vmem>>, vector<32x126xbf16>
    tpu.vector_store %arg7[%c448, %c0_8], %34 {strides = array<i32>} : memref<800x256xbf16, #tpu.memory_space<vmem>>, vector<32x126xbf16>,
    %36 = vector.extract_strided_slice %6 {offsets = [0, 3], sizes = [32, 125], strides = [1, 1]} : vector<32x128xbf16> to vector<32x125xbf16>
    %c480 = arith.constant 480 : index
    %c0_9 = arith.constant 0 : index
    %37 = vector.load %arg7[%c480, %c0_9] : memref<800x256xbf16, #tpu.memory_space<vmem>>, vector<32x125xbf16>
    tpu.vector_store %arg7[%c480, %c0_9], %36 {strides = array<i32>} : memref<800x256xbf16, #tpu.memory_space<vmem>>, vector<32x125xbf16>,
    %38 = vector.extract_strided_slice %6 {offsets = [0, 4], sizes = [32, 124], strides = [1, 1]} : vector<32x128xbf16> to vector<32x124xbf16>
    %c512 = arith.constant 512 : index
    %c0_10 = arith.constant 0 : index
    %39 = vector.load %arg7[%c512, %c0_10] : memref<800x256xbf16, #tpu.memory_space<vmem>>, vector<32x124xbf16>
    tpu.vector_store %arg7[%c512, %c0_10], %38 {strides = array<i32>} : memref<800x256xbf16, #tpu.memory_space<vmem>>, vector<32x124xbf16>,
    %40 = vector.extract_strided_slice %6 {offsets = [0, 5], sizes = [32, 123], strides = [1, 1]} : vector<32x128xbf16> to vector<32x123xbf16>
    %c544 = arith.constant 544 : index
    %c0_11 = arith.constant 0 : index
    %41 = vector.load %arg7[%c544, %c0_11] : memref<800x256xbf16, #tpu.memory_space<vmem>>, vector<32x123xbf16>
    tpu.vector_store %arg7[%c544, %c0_11], %40 {strides = array<i32>} : memref<800x256xbf16, #tpu.memory_space<vmem>>, vector<32x123xbf16>,
    %42 = vector.extract_strided_slice %6 {offsets = [0, 6], sizes = [32, 122], strides = [1, 1]} : vector<32x128xbf16> to vector<32x122xbf16>
    %c576 = arith.constant 576 : index
    %c0_12 = arith.constant 0 : index
    %43 = vector.load %arg7[%c576, %c0_12] : memref<800x256xbf16, #tpu.memory_space<vmem>>, vector<32x122xbf16>
    tpu.vector_store %arg7[%c576, %c0_12], %42 {strides = array<i32>} : memref<800x256xbf16, #tpu.memory_space<vmem>>, vector<32x122xbf16>,
    %44 = vector.extract_strided_slice %6 {offsets = [0, 7], sizes = [32, 121], strides = [1, 1]} : vector<32x128xbf16> to vector<32x121xbf16>
    %c608 = arith.constant 608 : index
    %c0_13 = arith.constant 0 : index
    %45 = vector.load %arg7[%c608, %c0_13] : memref<800x256xbf16, #tpu.memory_space<vmem>>, vector<32x121xbf16>
    tpu.vector_store %arg7[%c608, %c0_13], %44 {strides = array<i32>} : memref<800x256xbf16, #tpu.memory_space<vmem>>, vector<32x121xbf16>,
    %46 = vector.extract_strided_slice %6 {offsets = [0, 8], sizes = [32, 120], strides = [1, 1]} : vector<32x128xbf16> to vector<32x120xbf16>
    %c640 = arith.constant 640 : index
    %c0_14 = arith.constant 0 : index
    %47 = vector.load %arg7[%c640, %c0_14] : memref<800x256xbf16, #tpu.memory_space<vmem>>, vector<32x120xbf16>
    tpu.vector_store %arg7[%c640, %c0_14], %46 {strides = array<i32>} : memref<800x256xbf16, #tpu.memory_space<vmem>>, vector<32x120xbf16>,
    %48 = vector.extract_strided_slice %6 {offsets = [0, 9], sizes = [32, 119], strides = [1, 1]} : vector<32x128xbf16> to vector<32x119xbf16>
    %c672 = arith.constant 672 : index
    %c0_15 = arith.constant 0 : index
    %49 = vector.load %arg7[%c672, %c0_15] : memref<800x256xbf16, #tpu.memory_space<vmem>>, vector<32x119xbf16>
    tpu.vector_store %arg7[%c672, %c0_15], %48 {strides = array<i32>} : memref<800x256xbf16, #tpu.memory_space<vmem>>, vector<32x119xbf16>,
    %50 = vector.extract_strided_slice %6 {offsets = [0, 10], sizes = [32, 118], strides = [1, 1]} : vector<32x128xbf16> to vector<32x118xbf16>
    %c704 = arith.constant 704 : index
    %c0_16 = arith.constant 0 : index
    %51 = vector.load %arg7[%c704, %c0_16] : memref<800x256xbf16, #tpu.memory_space<vmem>>, vector<32x118xbf16>
    tpu.vector_store %arg7[%c704, %c0_16], %50 {strides = array<i32>} : memref<800x256xbf16, #tpu.memory_space<vmem>>, vector<32x118xbf16>,
    %52 = vector.extract_strided_slice %6 {offsets = [0, 11], sizes = [32, 117], strides = [1, 1]} : vector<32x128xbf16> to vector<32x117xbf16>
    %c736 = arith.constant 736 : index
    %c0_17 = arith.constant 0 : index
    %53 = vector.load %arg7[%c736, %c0_17] : memref<800x256xbf16, #tpu.memory_space<vmem>>, vector<32x117xbf16>
    tpu.vector_store %arg7[%c736, %c0_17], %52 {strides = array<i32>} : memref<800x256xbf16, #tpu.memory_space<vmem>>, vector<32x117xbf16>,
    %54 = vector.extract_strided_slice %6 {offsets = [0, 12], sizes = [32, 116], strides = [1, 1]} : vector<32x128xbf16> to vector<32x116xbf16>
    %c768 = arith.constant 768 : index
    %c0_18 = arith.constant 0 : index
    %55 = vector.load %arg7[%c768, %c0_18] : memref<800x256xbf16, #tpu.memory_space<vmem>>, vector<32x116xbf16>
    tpu.vector_store %arg7[%c768, %c0_18], %54 {strides = array<i32>} : memref<800x256xbf16, #tpu.memory_space<vmem>>, vector<32x116xbf16>,
    %c1_19 = arith.constant 1 : index
    %c0_20 = arith.constant 0 : index
    %c0_21 = arith.constant 0 : index
    %56 = vector.load %arg1[%c1_19, %c0_20, %c0_21] : memref<2x32x128xf32, #tpu.memory_space<vmem>>, vector<1x32x128xf32>
    %57 = vector.shape_cast %56 : vector<1x32x128xf32> to vector<32x128xf32>
    %c0_22 = arith.constant 0 : index
    %c128_23 = arith.constant 128 : index
    %58 = vector.load %arg8[%c0_22, %c128_23] : memref<32x256xf32, #tpu.memory_space<vmem>>, vector<32x128xf32>
    tpu.vector_store %arg8[%c0_22, %c128_23], %57 {strides = array<i32>} : memref<32x256xf32, #tpu.memory_space<vmem>>, vector<32x128xf32>,
    %59 = arith.truncf %57 : vector<32x128xf32> to vector<32x128xbf16>
    %60 = vector.extract_strided_slice %59 {offsets = [0, 0], sizes = [32, 116], strides = [1, 1]} : vector<32x128xbf16> to vector<32x116xbf16>
    %c0_24 = arith.constant 0 : index
    %c140 = arith.constant 140 : index
    %61 = vector.load %arg7[%c0_24, %c140] : memref<800x256xbf16, #tpu.memory_space<vmem>>, vector<32x116xbf16>
    tpu.vector_store %arg7[%c0_24, %c140], %60 {strides = array<i32>} : memref<800x256xbf16, #tpu.memory_space<vmem>>, vector<32x116xbf16>,
    %62 = vector.extract_strided_slice %59 {offsets = [0, 0], sizes = [32, 117], strides = [1, 1]} : vector<32x128xbf16> to vector<32x117xbf16>
    %c32_25 = arith.constant 32 : index
    %c139 = arith.constant 139 : index
    %63 = vector.load %arg7[%c32_25, %c139] : memref<800x256xbf16, #tpu.memory_space<vmem>>, vector<32x117xbf16>
    tpu.vector_store %arg7[%c32_25, %c139], %62 {strides = array<i32>} : memref<800x256xbf16, #tpu.memory_space<vmem>>, vector<32x117xbf16>,
    %64 = vector.extract_strided_slice %59 {offsets = [0, 0], sizes = [32, 118], strides = [1, 1]} : vector<32x128xbf16> to vector<32x118xbf16>
    %c64_26 = arith.constant 64 : index
    %c138 = arith.constant 138 : index
    %65 = vector.load %arg7[%c64_26, %c138] : memref<800x256xbf16, #tpu.memory_space<vmem>>, vector<32x118xbf16>
    tpu.vector_store %arg7[%c64_26, %c138], %64 {strides = array<i32>} : memref<800x256xbf16, #tpu.memory_space<vmem>>, vector<32x118xbf16>,
    %66 = vector.extract_strided_slice %59 {offsets = [0, 0], sizes = [32, 119], strides = [1, 1]} : vector<32x128xbf16> to vector<32x119xbf16>
    %c96_27 = arith.constant 96 : index
    %c137 = arith.constant 137 : index
    %67 = vector.load %arg7[%c96_27, %c137] : memref<800x256xbf16, #tpu.memory_space<vmem>>, vector<32x119xbf16>
    tpu.vector_store %arg7[%c96_27, %c137], %66 {strides = array<i32>} : memref<800x256xbf16, #tpu.memory_space<vmem>>, vector<32x119xbf16>,
    %68 = vector.extract_strided_slice %59 {offsets = [0, 0], sizes = [32, 120], strides = [1, 1]} : vector<32x128xbf16> to vector<32x120xbf16>
    %c128_28 = arith.constant 128 : index
    %c136 = arith.constant 136 : index
    %69 = vector.load %arg7[%c128_28, %c136] : memref<800x256xbf16, #tpu.memory_space<vmem>>, vector<32x120xbf16>
    tpu.vector_store %arg7[%c128_28, %c136], %68 {strides = array<i32>} : memref<800x256xbf16, #tpu.memory_space<vmem>>, vector<32x120xbf16>,
    %70 = vector.extract_strided_slice %59 {offsets = [0, 0], sizes = [32, 121], strides = [1, 1]} : vector<32x128xbf16> to vector<32x121xbf16>
    %c160_29 = arith.constant 160 : index
    %c135 = arith.constant 135 : index
    %71 = vector.load %arg7[%c160_29, %c135] : memref<800x256xbf16, #tpu.memory_space<vmem>>, vector<32x121xbf16>
    tpu.vector_store %arg7[%c160_29, %c135], %70 {strides = array<i32>} : memref<800x256xbf16, #tpu.memory_space<vmem>>, vector<32x121xbf16>,
    %72 = vector.extract_strided_slice %59 {offsets = [0, 0], sizes = [32, 122], strides = [1, 1]} : vector<32x128xbf16> to vector<32x122xbf16>
    %c192_30 = arith.constant 192 : index
    %c134 = arith.constant 134 : index
    %73 = vector.load %arg7[%c192_30, %c134] : memref<800x256xbf16, #tpu.memory_space<vmem>>, vector<32x122xbf16>
    tpu.vector_store %arg7[%c192_30, %c134], %72 {strides = array<i32>} : memref<800x256xbf16, #tpu.memory_space<vmem>>, vector<32x122xbf16>,
    %74 = vector.extract_strided_slice %59 {offsets = [0, 0], sizes = [32, 123], strides = [1, 1]} : vector<32x128xbf16> to vector<32x123xbf16>
    %c224_31 = arith.constant 224 : index
    %c133 = arith.constant 133 : index
    %75 = vector.load %arg7[%c224_31, %c133] : memref<800x256xbf16, #tpu.memory_space<vmem>>, vector<32x123xbf16>
    tpu.vector_store %arg7[%c224_31, %c133], %74 {strides = array<i32>} : memref<800x256xbf16, #tpu.memory_space<vmem>>, vector<32x123xbf16>,
    %76 = vector.extract_strided_slice %59 {offsets = [0, 0], sizes = [32, 124], strides = [1, 1]} : vector<32x128xbf16> to vector<32x124xbf16>
    %c256_32 = arith.constant 256 : index
    %c132 = arith.constant 132 : index
    %77 = vector.load %arg7[%c256_32, %c132] : memref<800x256xbf16, #tpu.memory_space<vmem>>, vector<32x124xbf16>
    tpu.vector_store %arg7[%c256_32, %c132], %76 {strides = array<i32>} : memref<800x256xbf16, #tpu.memory_space<vmem>>, vector<32x124xbf16>,
    %78 = vector.extract_strided_slice %59 {offsets = [0, 0], sizes = [32, 125], strides = [1, 1]} : vector<32x128xbf16> to vector<32x125xbf16>
    %c288_33 = arith.constant 288 : index
    %c131 = arith.constant 131 : index
    %79 = vector.load %arg7[%c288_33, %c131] : memref<800x256xbf16, #tpu.memory_space<vmem>>, vector<32x125xbf16>
    tpu.vector_store %arg7[%c288_33, %c131], %78 {strides = array<i32>} : memref<800x256xbf16, #tpu.memory_space<vmem>>, vector<32x125xbf16>,
    %80 = vector.extract_strided_slice %59 {offsets = [0, 0], sizes = [32, 126], strides = [1, 1]} : vector<32x128xbf16> to vector<32x126xbf16>
    %c320_34 = arith.constant 320 : index
    %c130 = arith.constant 130 : index
    %81 = vector.load %arg7[%c320_34, %c130] : memref<800x256xbf16, #tpu.memory_space<vmem>>, vector<32x126xbf16>
    tpu.vector_store %arg7[%c320_34, %c130], %80 {strides = array<i32>} : memref<800x256xbf16, #tpu.memory_space<vmem>>, vector<32x126xbf16>,
    %82 = vector.extract_strided_slice %59 {offsets = [0, 0], sizes = [32, 127], strides = [1, 1]} : vector<32x128xbf16> to vector<32x127xbf16>
    %c352_35 = arith.constant 352 : index
    %c129 = arith.constant 129 : index
    %83 = vector.load %arg7[%c352_35, %c129] : memref<800x256xbf16, #tpu.memory_space<vmem>>, vector<32x127xbf16>
    tpu.vector_store %arg7[%c352_35, %c129], %82 {strides = array<i32>} : memref<800x256xbf16, #tpu.memory_space<vmem>>, vector<32x127xbf16>,
    %c384_36 = arith.constant 384 : index
    %c128_37 = arith.constant 128 : index
    %84 = vector.load %arg7[%c384_36, %c128_37] : memref<800x256xbf16, #tpu.memory_space<vmem>>, vector<32x128xbf16>
    tpu.vector_store %arg7[%c384_36, %c128_37], %59 {strides = array<i32>} : memref<800x256xbf16, #tpu.memory_space<vmem>>, vector<32x128xbf16>,
    %85 = vector.extract_strided_slice %59 {offsets = [0, 1], sizes = [32, 127], strides = [1, 1]} : vector<32x128xbf16> to vector<32x127xbf16>
    %c416_38 = arith.constant 416 : index
    %c128_39 = arith.constant 128 : index
    %86 = vector.load %arg7[%c416_38, %c128_39] : memref<800x256xbf16, #tpu.memory_space<vmem>>, vector<32x127xbf16>
    tpu.vector_store %arg7[%c416_38, %c128_39], %85 {strides = array<i32>} : memref<800x256xbf16, #tpu.memory_space<vmem>>, vector<32x127xbf16>,
    %87 = vector.extract_strided_slice %59 {offsets = [0, 2], sizes = [32, 126], strides = [1, 1]} : vector<32x128xbf16> to vector<32x126xbf16>
    %c448_40 = arith.constant 448 : index
    %c128_41 = arith.constant 128 : index
    %88 = vector.load %arg7[%c448_40, %c128_41] : memref<800x256xbf16, #tpu.memory_space<vmem>>, vector<32x126xbf16>
    tpu.vector_store %arg7[%c448_40, %c128_41], %87 {strides = array<i32>} : memref<800x256xbf16, #tpu.memory_space<vmem>>, vector<32x126xbf16>,
    %89 = vector.extract_strided_slice %59 {offsets = [0, 3], sizes = [32, 125], strides = [1, 1]} : vector<32x128xbf16> to vector<32x125xbf16>
    %c480_42 = arith.constant 480 : index
    %c128_43 = arith.constant 128 : index
    %90 = vector.load %arg7[%c480_42, %c128_43] : memref<800x256xbf16, #tpu.memory_space<vmem>>, vector<32x125xbf16>
    tpu.vector_store %arg7[%c480_42, %c128_43], %89 {strides = array<i32>} : memref<800x256xbf16, #tpu.memory_space<vmem>>, vector<32x125xbf16>,
    %91 = vector.extract_strided_slice %59 {offsets = [0, 4], sizes = [32, 124], strides = [1, 1]} : vector<32x128xbf16> to vector<32x124xbf16>
    %c512_44 = arith.constant 512 : index
    %c128_45 = arith.constant 128 : index
    %92 = vector.load %arg7[%c512_44, %c128_45] : memref<800x256xbf16, #tpu.memory_space<vmem>>, vector<32x124xbf16>
    tpu.vector_store %arg7[%c512_44, %c128_45], %91 {strides = array<i32>} : memref<800x256xbf16, #tpu.memory_space<vmem>>, vector<32x124xbf16>,
    %93 = vector.extract_strided_slice %59 {offsets = [0, 5], sizes = [32, 123], strides = [1, 1]} : vector<32x128xbf16> to vector<32x123xbf16>
    %c544_46 = arith.constant 544 : index
    %c128_47 = arith.constant 128 : index
    %94 = vector.load %arg7[%c544_46, %c128_47] : memref<800x256xbf16, #tpu.memory_space<vmem>>, vector<32x123xbf16>
    tpu.vector_store %arg7[%c544_46, %c128_47], %93 {strides = array<i32>} : memref<800x256xbf16, #tpu.memory_space<vmem>>, vector<32x123xbf16>,
    %95 = vector.extract_strided_slice %59 {offsets = [0, 6], sizes = [32, 122], strides = [1, 1]} : vector<32x128xbf16> to vector<32x122xbf16>
    %c576_48 = arith.constant 576 : index
    %c128_49 = arith.constant 128 : index
    %96 = vector.load %arg7[%c576_48, %c128_49] : memref<800x256xbf16, #tpu.memory_space<vmem>>, vector<32x122xbf16>
    tpu.vector_store %arg7[%c576_48, %c128_49], %95 {strides = array<i32>} : memref<800x256xbf16, #tpu.memory_space<vmem>>, vector<32x122xbf16>,
    %97 = vector.extract_strided_slice %59 {offsets = [0, 7], sizes = [32, 121], strides = [1, 1]} : vector<32x128xbf16> to vector<32x121xbf16>
    %c608_50 = arith.constant 608 : index
    %c128_51 = arith.constant 128 : index
    %98 = vector.load %arg7[%c608_50, %c128_51] : memref<800x256xbf16, #tpu.memory_space<vmem>>, vector<32x121xbf16>
    tpu.vector_store %arg7[%c608_50, %c128_51], %97 {strides = array<i32>} : memref<800x256xbf16, #tpu.memory_space<vmem>>, vector<32x121xbf16>,
    %99 = vector.extract_strided_slice %59 {offsets = [0, 8], sizes = [32, 120], strides = [1, 1]} : vector<32x128xbf16> to vector<32x120xbf16>
    %c640_52 = arith.constant 640 : index
    %c128_53 = arith.constant 128 : index
    %100 = vector.load %arg7[%c640_52, %c128_53] : memref<800x256xbf16, #tpu.memory_space<vmem>>, vector<32x120xbf16>
    tpu.vector_store %arg7[%c640_52, %c128_53], %99 {strides = array<i32>} : memref<800x256xbf16, #tpu.memory_space<vmem>>, vector<32x120xbf16>,
    %101 = vector.extract_strided_slice %59 {offsets = [0, 9], sizes = [32, 119], strides = [1, 1]} : vector<32x128xbf16> to vector<32x119xbf16>
    %c672_54 = arith.constant 672 : index
    %c128_55 = arith.constant 128 : index
    %102 = vector.load %arg7[%c672_54, %c128_55] : memref<800x256xbf16, #tpu.memory_space<vmem>>, vector<32x119xbf16>
    tpu.vector_store %arg7[%c672_54, %c128_55], %101 {strides = array<i32>} : memref<800x256xbf16, #tpu.memory_space<vmem>>, vector<32x119xbf16>,
    %103 = vector.extract_strided_slice %59 {offsets = [0, 10], sizes = [32, 118], strides = [1, 1]} : vector<32x128xbf16> to vector<32x118xbf16>
    %c704_56 = arith.constant 704 : index
    %c128_57 = arith.constant 128 : index
    %104 = vector.load %arg7[%c704_56, %c128_57] : memref<800x256xbf16, #tpu.memory_space<vmem>>, vector<32x118xbf16>
    tpu.vector_store %arg7[%c704_56, %c128_57], %103 {strides = array<i32>} : memref<800x256xbf16, #tpu.memory_space<vmem>>, vector<32x118xbf16>,
    %105 = vector.extract_strided_slice %59 {offsets = [0, 11], sizes = [32, 117], strides = [1, 1]} : vector<32x128xbf16> to vector<32x117xbf16>
    %c736_58 = arith.constant 736 : index
    %c128_59 = arith.constant 128 : index
    %106 = vector.load %arg7[%c736_58, %c128_59] : memref<800x256xbf16, #tpu.memory_space<vmem>>, vector<32x117xbf16>
    tpu.vector_store %arg7[%c736_58, %c128_59], %105 {strides = array<i32>} : memref<800x256xbf16, #tpu.memory_space<vmem>>, vector<32x117xbf16>,
    %107 = vector.extract_strided_slice %59 {offsets = [0, 12], sizes = [32, 116], strides = [1, 1]} : vector<32x128xbf16> to vector<32x116xbf16>
    %c768_60 = arith.constant 768 : index
    %c128_61 = arith.constant 128 : index
    %108 = vector.load %arg7[%c768_60, %c128_61] : memref<800x256xbf16, #tpu.memory_space<vmem>>, vector<32x116xbf16>
    tpu.vector_store %arg7[%c768_60, %c128_61], %107 {strides = array<i32>} : memref<800x256xbf16, #tpu.memory_space<vmem>>, vector<32x116xbf16>,
    %c0_62 = arith.constant 0 : index
    %c0_63 = arith.constant 0 : index
    %109 = vector.load %arg2[%c0_62, %c0_63] : memref<32x800xbf16, #tpu.memory_space<vmem>>, vector<32x800xbf16>
    %c0_64 = arith.constant 0 : index
    %c0_65 = arith.constant 0 : index
    %110 = vector.load %arg7[%c0_64, %c0_65] : memref<800x256xbf16, #tpu.memory_space<vmem>>, vector<800x256xbf16>
    %cst = arith.constant dense<0.000000e+00> : vector<32x256xf32>
    %111 = tpu.matmul %109, %110, %cst {dimension_numbers = #tpu.dot_dimension_numbers<[1], [0], [0], [1], [0, 0, 1, 1], [], []>} : vector<32x800xbf16>, vector<800x256xbf16>, vector<32x256xf32> -> vector<32x256xf32>
    %c0_66 = arith.constant 0 : index
    %c0_67 = arith.constant 0 : index
    %112 = vector.load %arg3[%c0_66, %c0_67] : memref<32x1xf32, #tpu.memory_space<vmem>>, vector<32x1xf32>
    %113 = vector.broadcast %112 : vector<32x1xf32> to vector<32x256xf32>
    %114 = arith.addf %111, %113 : vector<32x256xf32>
    %cst_68 = arith.constant 5.000000e-01 : f32
    %115 = vector.broadcast %cst_68 : f32 to vector<32x256xf32>
    %116 = arith.mulf %115, %114 : vector<32x256xf32>
    %cst_69 = arith.constant 0.707106769 : f32
    %117 = vector.broadcast %cst_69 : f32 to vector<32x256xf32>
    %118 = arith.mulf %114, %117 : vector<32x256xf32>
    %119 = math.erf %118 : vector<32x256xf32>
    %cst_70 = arith.constant 1.000000e+00 : f32
    %120 = vector.broadcast %cst_70 : f32 to vector<32x256xf32>
    %121 = arith.addf %120, %119 : vector<32x256xf32>
    %122 = arith.mulf %116, %121 : vector<32x256xf32>
    %c0_71 = arith.constant 0 : index
    %c0_72 = arith.constant 0 : index
    %123 = vector.load %arg8[%c0_71, %c0_72] : memref<32x256xf32, #tpu.memory_space<vmem>>, vector<32x256xf32>
    %124 = arith.addf %123, %122 : vector<32x256xf32>
    %cst_73 = arith.constant dense<0.000000e+00> : vector<256xf32>
    %125 = vector.multi_reduction <add>, %124, %cst_73 [0] : vector<32x256xf32> to vector<256xf32>
    %126 = vector.shape_cast %125 : vector<256xf32> to vector<1x256xf32>
    %cst_74 = arith.constant 3.200000e+01 : f32
    %127 = vector.broadcast %cst_74 : f32 to vector<1x256xf32>
    %128 = arith.divf %126, %127 : vector<1x256xf32>
    %129 = vector.broadcast %128 : vector<1x256xf32> to vector<32x256xf32>
    %130 = arith.subf %124, %129 : vector<32x256xf32>
    %131 = arith.mulf %130, %130 : vector<32x256xf32>
    %cst_75 = arith.constant dense<0.000000e+00> : vector<256xf32>
    %132 = vector.multi_reduction <add>, %131, %cst_75 [0] : vector<32x256xf32> to vector<256xf32>
    %133 = vector.shape_cast %132 : vector<256xf32> to vector<1x256xf32>
    %cst_76 = arith.constant 3.200000e+01 : f32
    %134 = vector.broadcast %cst_76 : f32 to vector<1x256xf32>
    %135 = arith.divf %133, %134 : vector<1x256xf32>
    %136 = vector.broadcast %128 : vector<1x256xf32> to vector<32x256xf32>
    %137 = arith.subf %124, %136 : vector<32x256xf32>
    %cst_77 = arith.constant 9.99999974E-6 : f32
    %138 = vector.broadcast %cst_77 : f32 to vector<1x256xf32>
    %139 = arith.addf %135, %138 : vector<1x256xf32>
    %140 = math.rsqrt %139 : vector<1x256xf32>
    %141 = vector.broadcast %140 : vector<1x256xf32> to vector<32x256xf32>
    %142 = arith.mulf %137, %141 : vector<32x256xf32>
    %c0_78 = arith.constant 0 : index
    %c0_79 = arith.constant 0 : index
    %143 = vector.load %arg4[%c0_78, %c0_79] : memref<96x32xbf16, #tpu.memory_space<vmem>>, vector<96x32xbf16>
    %144 = arith.truncf %142 : vector<32x256xf32> to vector<32x256xbf16>
    %cst_80 = arith.constant dense<0.000000e+00> : vector<96x256xf32>
    %145 = tpu.matmul %143, %144, %cst_80 {dimension_numbers = #tpu.dot_dimension_numbers<[1], [0], [0], [1], [0, 0, 1, 1], [], []>} : vector<96x32xbf16>, vector<32x256xbf16>, vector<96x256xf32> -> vector<96x256xf32>
    %c0_81 = arith.constant 0 : index
    %c0_82 = arith.constant 0 : index
    %146 = vector.load %arg5[%c0_81, %c0_82] : memref<96x1xf32, #tpu.memory_space<vmem>>, vector<96x1xf32>
    %147 = vector.broadcast %146 : vector<96x1xf32> to vector<96x256xf32>
    %148 = arith.addf %145, %147 : vector<96x256xf32>
    %149 = vector.extract_strided_slice %148 {offsets = [0, 0], sizes = [96, 128], strides = [1, 1]} : vector<96x256xf32> to vector<96x128xf32>
    %c0_83 = arith.constant 0 : index
    %c0_84 = arith.constant 0 : index
    %c0_85 = arith.constant 0 : index
    %150 = vector.load %arg6[%c0_83, %c0_84, %c0_85] : memref<2x96x128xf32, #tpu.memory_space<vmem>>, vector<1x96x128xf32>
    %151 = vector.shape_cast %150 : vector<1x96x128xf32> to vector<96x128xf32>
    %152 = vector.shape_cast %149 : vector<96x128xf32> to vector<1x96x128xf32>
    tpu.vector_store %arg6[%c0_83, %c0_84, %c0_85], %152 {strides = array<i32>} : memref<2x96x128xf32, #tpu.memory_space<vmem>>, vector<1x96x128xf32>,
    %153 = vector.extract_strided_slice %148 {offsets = [0, 128], sizes = [96, 128], strides = [1, 1]} : vector<96x256xf32> to vector<96x128xf32>
    %c1_86 = arith.constant 1 : index
    %c0_87 = arith.constant 0 : index
    %c0_88 = arith.constant 0 : index
    %154 = vector.load %arg6[%c1_86, %c0_87, %c0_88] : memref<2x96x128xf32, #tpu.memory_space<vmem>>, vector<1x96x128xf32>
    %155 = vector.shape_cast %154 : vector<1x96x128xf32> to vector<96x128xf32>
    %156 = vector.shape_cast %153 : vector<96x128xf32> to vector<1x96x128xf32>
    tpu.vector_store %arg6[%c1_86, %c0_87, %c0_88], %156 {strides = array<i32>} : memref<2x96x128xf32, #tpu.memory_space<vmem>>, vector<1x96x128xf32>,
    return
  }
  func.func @transform_0(%arg0: i32) -> (i32, i32, i32) {
    %c0_i32 = arith.constant 0 : i32
    %c0_i32_0 = arith.constant 0 : i32
    %c0_i32_1 = arith.constant 0 : i32
    return %arg0, %c0_i32, %c0_i32_0 : i32, i32, i32
  }
  func.func @transform_1(%arg0: i32) -> (i32, i32) {
    %c0_i32 = arith.constant 0 : i32
    %c0_i32_0 = arith.constant 0 : i32
    %c0_i32_1 = arith.constant 0 : i32
    return %c0_i32, %c0_i32_0 : i32, i32
  }
  func.func @transform_2(%arg0: i32) -> (i32, i32) {
    %c0_i32 = arith.constant 0 : i32
    %c0_i32_0 = arith.constant 0 : i32
    %c0_i32_1 = arith.constant 0 : i32
    return %c0_i32, %c0_i32_0 : i32, i32
  }
  func.func @transform_3(%arg0: i32) -> (i32, i32) {
    %c0_i32 = arith.constant 0 : i32
    %c0_i32_0 = arith.constant 0 : i32
    %c0_i32_1 = arith.constant 0 : i32
    return %c0_i32, %c0_i32_0 : i32, i32
  }
  func.func @transform_4(%arg0: i32) -> (i32, i32) {
    %c0_i32 = arith.constant 0 : i32
    %c0_i32_0 = arith.constant 0 : i32
    %c0_i32_1 = arith.constant 0 : i32
    return %c0_i32, %c0_i32_0 : i32, i32
  }
  func.func @transform_5(%arg0: i32) -> (i32, i32, i32) {
    %c0_i32 = arith.constant 0 : i32
    %c0_i32_0 = arith.constant 0 : i32
    %c0_i32_1 = arith.constant 0 : i32
    return %arg0, %c0_i32, %c0_i32_0 : i32, i32, i32
  }
}

</mosaic_0001>

<bundles_post_ra>
// kernel: tpu_custom_call.1
= control target key start
LH: loop header
LB: loop body
LE: loop exit
PB: predicated region body
PF: predicated region fallthrough
CT: control target
= control target key end

     0   :  { %10 = vsyncpa [#allocation5], 0  ;;  %s5228_s0 = inlined_call_operand.vmem [shape: f32[4,32,128], index: 0, kind: input, shape index: {}]   ;;  %s5229_s1 = inlined_call_operand.hbm [shape: bf16[32,800], index: 1, kind: input, shape index: {}]   ;;  %s5230_s2 = inlined_call_operand.vmem [shape: f32[32,1], index: 2, kind: input, shape index: {}]   ;;  %s5231_s3 = inlined_call_operand.vmem [shape: bf16[96,32], index: 3, kind: input, shape index: {}]   ;;  %s5232_s4 = inlined_call_operand.vmem [shape: f32[96,1], index: 4, kind: input, shape index: {}]   ;;  %s5233_s5 = inlined_call_operand.hbm [shape: f32[4,96,128], index: 5, kind: output, shape index: {}]  }
   0x1   :  { %11 = vsyncpa [#allocation6], 0 }
   0x2   :  { %13 = vsyncpa [#allocation6 + $0x1], 0  ;;  %s3896_s18 = smov 0   ;;  %s3898_s19 = smov 0  }
   0x3   :  { %s3900_s20 = smov 0   ;;  %s3902_s21 = smov 0  }
   0x4 LB: > { %s3917_s22 = sadd.s32 4294967295, %s3833_s21   ;;  %s2958_s23 = sadd.s32 4294967294, %s3833_s21   ;;  %s3833_s21 = sphi %s3902_s21, %s5311_s21   ;;  %s3829_s20 = sphi %s3900_s20, %s5310_s20   ;;  %s3825_s19 = sphi %s3898_s19, %s5309_s19   ;;  %s3821_s18 = sphi %s3896_s18, %s5308_s18  }
   0x5   : > { %s3921_s24 = sadd.s32 1, %s3833_s21   ;;  %s136_s25 = sadd.s32 1, %s3829_s20 }
   0x6   : > { %s133_s26 = ssub.s32 %s3833_s21, %s3921_s24  ;;  %p146_p0 = scmp.ne.s32.totalorder %s3829_s20, %s3825_s19 }
   0x7   : > { %p134_p1 = scmp.eq.s32.totalorder %s133_s26, 0  ;;  %p147_p2 = scmp.eq.s32.totalorder %s3917_s22, 1 }
   0x8   : > { %p152_p3 = scmp.ne.s32.totalorder %s3825_s19, %s3821_s18  ;;  %p153_p4 = scmp.eq.s32.totalorder %s2958_s23, 1 }
   0x9   : > { %s3932_s27 = scalar_select %p134_p1, %s3829_s20, %s136_s25  }
   0xa   : > { %p3934_p5 = por %p147_p2, %p146_p0  ;;  %p3938_p6 = por %p153_p4, %p152_p3 }
   0xb   : > { %p2959_p7 = scmp.ge.s32.totalorder %s3833_s21, 1  ;;  %p160_p8 = scmp.lt.s32.totalorder %s3833_s21, 3 }
   0xc   : > { %p2960_p9 = scmp.ne.s32.totalorder %s3917_s22, 0  ;;  %p3638_p10 = scmp.eq.s32.totalorder %s3917_s22, 0 }
   0xd   : > { %p161_p11 = pnand %p2959_p7, %p160_p8  ;;  %s171_s7 = sshll.u32 %s5229_s1, 4  ;;  %s172_s7 = int_to_ptr.hbm [resolvable:$true] %s171_s7 }
   0xe   : > { %s3835_s8 = smov [#allocation4]   ;;  %s3836_s10 = smov 448  }
   0xf   : > { %p3630_p12 = pneg %p161_p11  ;;  %s173_s9 = sshll.u32 %s3835_s8, 4  ;;  %s174_s9 = int_to_ptr.vmem [resolvable:$true] %s173_s9 }
  0x10   : > { %s3837_s11 = smov 28   ;;  %208 = sbr.rel (%p161_p11) target bundleno = 1263 (0x4ef), region = 40 }
  0x11   : > { %p3631_p13 = pnand %p3638_p10, %p3630_p12 }
  0x13   : > { %3633 = dma.hbm_to_vmem [thread:$0]  (!%p3631_p13), %s172_s7, 1792, %s174_s9, [#allocation5], %s3836_s10, %s3836_s10, %s3837_s11  }
  0x15   : > { %3812 = dma.done.wait (%p3638_p10), [#allocation5], 1792  }
  0x16   : > { %3814 = vsyncadd (%p3638_p10), [#allocation5], 4294965504  ;;  %s5234_s12 = sand.u32 1, %s3825_s19   ;;  %s2964_s13 = sshll.u32 %s3917_s22, 1 }
  0x17   : > { %s3622_s14 = smul.u32 192, %s5234_s12  ;;  %p239_p0 = scmp.lt.s32.totalorder %s2964_s13, 3 }
  0x18   : > { %250 = sbr.rel (%p2960_p9) target bundleno = 130 (0x82), region = 48 }
  0x19   : > { %s5313_s13 = smov (!%p239_p0, %s2964_s13), 3  ;;  %s3964_s25 = scalar_lea.vmem [#allocation7], %s3622_s14 }
  0x1a   : > { %s3493_s15 = sshll.u32 %s5313_s13, 5 }
  0x1b   : > { %s3962_s23 = scalar_lea.vmem %s5228_s0, %s3493_s15 }
  0x1d   : > { %v3838_v0 = vmov 0  }
  0x1e   : > { %251 = vst [vmem:[#allocation2] sm:$0xff] %v3838_v0 }
  0x1f   : > { %252 = vst [vmem:[#allocation2 + $0x8] sm:$0xff] %v3838_v0 }
  0x20   : > { %253 = vst [vmem:[#allocation2 + $0x10] sm:$0xff] %v3838_v0 }
  0x21   : > { %254 = vst [vmem:[#allocation2 + $0x18] sm:$0xff] %v3838_v0 }
  0x22   : > { %255 = vst [vmem:[#allocation2 + $0x20] sm:$0xff] %v3838_v0 }
  0x23   : > { %256 = vst [vmem:[#allocation2 + $0x28] sm:$0xff] %v3838_v0 }
  0x24   : > { %257 = vst [vmem:[#allocation2 + $0x30] sm:$0xff] %v3838_v0 }
  0x25   : > { %258 = vst [vmem:[#allocation2 + $0x38] sm:$0xff] %v3838_v0 }
  0x26   : > { %259 = vst [vmem:[#allocation2 + $0x40] sm:$0xff] %v3838_v0 }
  0x27   : > { %260 = vst [vmem:[#allocation2 + $0x48] sm:$0xff] %v3838_v0 }
  0x28   : > { %261 = vst [vmem:[#allocation2 + $0x50] sm:$0xff] %v3838_v0 }
  0x29   : > { %262 = vst [vmem:[#allocation2 + $0x58] sm:$0xff] %v3838_v0 }
  0x2a   : > { %263 = vst [vmem:[#allocation2 + $0x60] sm:$0xff] %v3838_v0 }
  0x2b   : > { %264 = vst [vmem:[#allocation2 + $0x68] sm:$0xff] %v3838_v0 }
  0x2c   : > { %265 = vst [vmem:[#allocation2 + $0x70] sm:$0xff] %v3838_v0 }
  0x2d   : > { %266 = vst [vmem:[#allocation2 + $0x78] sm:$0xff] %v3838_v0 }
  0x2e   : > { %267 = vst [vmem:[#allocation2 + $0x80] sm:$0xff] %v3838_v0 }
  0x2f   : > { %268 = vst [vmem:[#allocation2 + $0x88] sm:$0xff] %v3838_v0 }
  0x30   : > { %269 = vst [vmem:[#allocation2 + $0x90] sm:$0xff] %v3838_v0 }
  0x31   : > { %270 = vst [vmem:[#allocation2 + $0x98] sm:$0xff] %v3838_v0 }
  0x32   : > { %271 = vst [vmem:[#allocation2 + $0xa0] sm:$0xff] %v3838_v0 }
  0x33   : > { %272 = vst [vmem:[#allocation2 + $0xa8] sm:$0xff] %v3838_v0 }
  0x34   : > { %273 = vst [vmem:[#allocation2 + $0xb0] sm:$0xff] %v3838_v0 }
  0x35   : > { %274 = vst [vmem:[#allocation2 + $0xb8] sm:$0xff] %v3838_v0 }
  0x36   : > { %275 = vst [vmem:[#allocation2 + $0xc0] sm:$0xff] %v3838_v0 }
  0x37   : > { %276 = vst [vmem:[#allocation2 + $0xc8] sm:$0xff] %v3838_v0 }
  0x38   : > { %277 = vst [vmem:[#allocation2 + $0xd0] sm:$0xff] %v3838_v0 }
  0x39   : > { %278 = vst [vmem:[#allocation2 + $0xd8] sm:$0xff] %v3838_v0 }
  0x3a   : > { %279 = vst [vmem:[#allocation2 + $0xe0] sm:$0xff] %v3838_v0 }
  0x3b   : > { %280 = vst [vmem:[#allocation2 + $0xe8] sm:$0xff] %v3838_v0 }
  0x3c   : > { %281 = vst [vmem:[#allocation2 + $0xf0] sm:$0xff] %v3838_v0 }
  0x3d   : > { %282 = vst [vmem:[#allocation2 + $0xf8] sm:$0xff] %v3838_v0 }
  0x3e   : > { %283 = vst [vmem:[#allocation2 + $0x100] sm:$0xff] %v3838_v0 }
  0x3f   : > { %284 = vst [vmem:[#allocation2 + $0x108] sm:$0xff] %v3838_v0 }
  0x40   : > { %285 = vst [vmem:[#allocation2 + $0x110] sm:$0xff] %v3838_v0 }
  0x41   : > { %286 = vst [vmem:[#allocation2 + $0x118] sm:$0xff] %v3838_v0 }
  0x42   : > { %287 = vst [vmem:[#allocation2 + $0x120] sm:$0xff] %v3838_v0 }
  0x43   : > { %288 = vst [vmem:[#allocation2 + $0x128] sm:$0xff] %v3838_v0 }
  0x44   : > { %289 = vst [vmem:[#allocation2 + $0x130] sm:$0xff] %v3838_v0 }
  0x45   : > { %290 = vst [vmem:[#allocation2 + $0x138] sm:$0xff] %v3838_v0 }
  0x46   : > { %291 = vst [vmem:[#allocation2 + $0x140] sm:$0xff] %v3838_v0 }
  0x47   : > { %292 = vst [vmem:[#allocation2 + $0x148] sm:$0xff] %v3838_v0 }
  0x48   : > { %293 = vst [vmem:[#allocation2 + $0x150] sm:$0xff] %v3838_v0 }
  0x49   : > { %294 = vst [vmem:[#allocation2 + $0x158] sm:$0xff] %v3838_v0 }
  0x4a   : > { %295 = vst [vmem:[#allocation2 + $0x160] sm:$0xff] %v3838_v0 }
  0x4b   : > { %296 = vst [vmem:[#allocation2 + $0x168] sm:$0xff] %v3838_v0 }
  0x4c   : > { %297 = vst [vmem:[#allocation2 + $0x170] sm:$0xff] %v3838_v0 }
  0x4d   : > { %298 = vst [vmem:[#allocation2 + $0x178] sm:$0xff] %v3838_v0 }
  0x4e   : > { %299 = vst [vmem:[#allocation2 + $0x180] sm:$0xff] %v3838_v0 }
  0x4f   : > { %300 = vst [vmem:[#allocation2 + $0x188] sm:$0xff] %v3838_v0 }
  0x50   : > { %301 = vst [vmem:[#allocation2 + $0x190] sm:$0xff] %v3838_v0 }
  0x51   : > { %302 = vst [vmem:[#allocation2 + $0x198] sm:$0xff] %v3838_v0 }
  0x52   : > { %303 = vst [vmem:[#allocation2 + $0x1a0] sm:$0xff] %v3838_v0 }
  0x53   : > { %304 = vst [vmem:[#allocation2 + $0x1a8] sm:$0xff] %v3838_v0 }
  0x54   : > { %305 = vst [vmem:[#allocation2 + $0x1b0] sm:$0xff] %v3838_v0 }
  0x55   : > { %306 = vst [vmem:[#allocation2 + $0x1b8] sm:$0xff] %v3838_v0 }
  0x56   : > { %307 = vst [vmem:[#allocation2 + $0x1c0] sm:$0xff] %v3838_v0 }
  0x57   : > { %308 = vst [vmem:[#allocation2 + $0x1c8] sm:$0xff] %v3838_v0 }
  0x58   : > { %309 = vst [vmem:[#allocation2 + $0x1d0] sm:$0xff] %v3838_v0 }
  0x59   : > { %310 = vst [vmem:[#allocation2 + $0x1d8] sm:$0xff] %v3838_v0 }
  0x5a   : > { %311 = vst [vmem:[#allocation2 + $0x1e0] sm:$0xff] %v3838_v0 }
  0x5b   : > { %312 = vst [vmem:[#allocation2 + $0x1e8] sm:$0xff] %v3838_v0 }
  0x5c   : > { %313 = vst [vmem:[#allocation2 + $0x1f0] sm:$0xff] %v3838_v0 }
  0x5d   : > { %314 = vst [vmem:[#allocation2 + $0x1f8] sm:$0xff] %v3838_v0 }
  0x5e   : > { %315 = vst [vmem:[#allocation2 + $0x200] sm:$0xff] %v3838_v0 }
  0x5f   : > { %316 = vst [vmem:[#allocation2 + $0x208] sm:$0xff] %v3838_v0 }
  0x60   : > { %317 = vst [vmem:[#allocation2 + $0x210] sm:$0xff] %v3838_v0 }
  0x61   : > { %318 = vst [vmem:[#allocation2 + $0x218] sm:$0xff] %v3838_v0 }
  0x62   : > { %319 = vst [vmem:[#allocation2 + $0x220] sm:$0xff] %v3838_v0 }
  0x63   : > { %320 = vst [vmem:[#allocation2 + $0x228] sm:$0xff] %v3838_v0 }
  0x64   : > { %321 = vst [vmem:[#allocation2 + $0x230] sm:$0xff] %v3838_v0 }
  0x65   : > { %322 = vst [vmem:[#allocation2 + $0x238] sm:$0xff] %v3838_v0 }
  0x66   : > { %323 = vst [vmem:[#allocation2 + $0x240] sm:$0xff] %v3838_v0 }
  0x67   : > { %324 = vst [vmem:[#allocation2 + $0x248] sm:$0xff] %v3838_v0 }
  0x68   : > { %325 = vst [vmem:[#allocation2 + $0x250] sm:$0xff] %v3838_v0 }
  0x69   : > { %326 = vst [vmem:[#allocation2 + $0x258] sm:$0xff] %v3838_v0 }
  0x6a   : > { %327 = vst [vmem:[#allocation2 + $0x260] sm:$0xff] %v3838_v0 }
  0x6b   : > { %328 = vst [vmem:[#allocation2 + $0x268] sm:$0xff] %v3838_v0 }
  0x6c   : > { %329 = vst [vmem:[#allocation2 + $0x270] sm:$0xff] %v3838_v0 }
  0x6d   : > { %330 = vst [vmem:[#allocation2 + $0x278] sm:$0xff] %v3838_v0 }
  0x6e   : > { %331 = vst [vmem:[#allocation2 + $0x280] sm:$0xff] %v3838_v0 }
  0x6f   : > { %332 = vst [vmem:[#allocation2 + $0x288] sm:$0xff] %v3838_v0 }
  0x70   : > { %333 = vst [vmem:[#allocation2 + $0x290] sm:$0xff] %v3838_v0 }
  0x71   : > { %334 = vst [vmem:[#allocation2 + $0x298] sm:$0xff] %v3838_v0 }
  0x72   : > { %335 = vst [vmem:[#allocation2 + $0x2a0] sm:$0xff] %v3838_v0 }
  0x73   : > { %336 = vst [vmem:[#allocation2 + $0x2a8] sm:$0xff] %v3838_v0 }
  0x74   : > { %337 = vst [vmem:[#allocation2 + $0x2b0] sm:$0xff] %v3838_v0 }
  0x75   : > { %338 = vst [vmem:[#allocation2 + $0x2b8] sm:$0xff] %v3838_v0 }
  0x76   : > { %339 = vst [vmem:[#allocation2 + $0x2c0] sm:$0xff] %v3838_v0 }
  0x77   : > { %340 = vst [vmem:[#allocation2 + $0x2c8] sm:$0xff] %v3838_v0 }
  0x78   : > { %341 = vst [vmem:[#allocation2 + $0x2d0] sm:$0xff] %v3838_v0 }
  0x79   : > { %342 = vst [vmem:[#allocation2 + $0x2d8] sm:$0xff] %v3838_v0 }
  0x7a   : > { %343 = vst [vmem:[#allocation2 + $0x2e0] sm:$0xff] %v3838_v0 }
  0x7b   : > { %344 = vst [vmem:[#allocation2 + $0x2e8] sm:$0xff] %v3838_v0 }
  0x7c   : > { %345 = vst [vmem:[#allocation2 + $0x2f0] sm:$0xff] %v3838_v0 }
  0x7d   : > { %346 = vst [vmem:[#allocation2 + $0x2f8] sm:$0xff] %v3838_v0 }
  0x7e   : > { %347 = vst [vmem:[#allocation2 + $0x300] sm:$0xff] %v3838_v0 }
  0x7f   : > { %348 = vst [vmem:[#allocation2 + $0x308] sm:$0xff] %v3838_v0 }
  0x80   : > { %349 = vst [vmem:[#allocation2 + $0x310] sm:$0xff] %v3838_v0 }
  0x81   : > { %350 = vst [vmem:[#allocation2 + $0x318] sm:$0xff] %v3838_v0 }
  0x82 PF: > { %v353_v1 = vld [vmem:[%s3962_s23 + $0x10] sm:$0xff]  ;;  %v351_v2 = vld [vmem:[%s3962_s23] sm:$0xff]  ;;  %v354_v3 = vld [vmem:[%s3962_s23 + $0x18] sm:$0xff]  ;;  %s3839_s26 = smov 6   ;;  %s3840_s30 = smov 5   ;;  %vm481_vm0 = vcmask 1043504  }
  0x83   : > { %v4071_v4 = vpack.c.bf16 %v353_v1, %v353_v1  ;;  %v4073_v5 = vpack.c.bf16 %v351_v2, %v351_v2  ;;  %v352_v6 = vld [vmem:[%s3962_s23 + $0x8] sm:$0xff]  ;;  %v4081_v7 = vpack.c.bf16 %v354_v3, %v354_v3  ;;  %s3841_s6 = smov 9   ;;  %s5237_s7 = smov 7   ;;  %vm498_vm1 = vcmask 1043496   ;;  %v2970_v2 = vld [vmem:[%s3962_s23 + $0x30] sm:$0xff] }
  0x84   : > { %v4086_v8 = vpack.c.bf16 %v352_v6, %v352_v6  ;;  %s3843_s8 = smov 10   ;;  %s5235_s9 = smov 8   ;;  %vm430_vm2 = vcmask 1043528   ;;  %vm413_vm3 = vcmask 1043536   ;;  %vm5255_vm4 = vcmask 1043512  }
  0x85   : > { %473 = vrot.lane.b32.xlu2 %v4071_v4, %s3839_s26  ;;  %573 = vst [vmem:[#allocation2 + $0x190] sm:$0xf] %v4071_v4  ;;  %490 = vrot.lane.b32.xlu0 %v4071_v4, %s3840_s30  ;;  %s3845_s10 = smov 11   ;;  %s3846_s11 = smov 125   ;;  %vm5253_vm5 = vcmask 1043520   ;;  %vm396_vm6 = vcmask 1043544   ;;  %v4248_v3 = vpack.c.bf16 %v2970_v2, %v2970_v2 }
  0x86   : > { %486 = vrot.lane.b32.xlu1 %v4073_v5, %s3840_s30  ;;  %571 = vst [vmem:[#allocation2 + $0x180] sm:$0xf] %v4073_v5  ;;  %s3847_s13 = smov 12   ;;  %s3848_s14 = smov 126   ;;  %vm621_vm7 = vcmask 1018880   ;;  %vm379_vm8 = vcmask 1043552  }
  0x87   : > { %574 = vst [vmem:[#allocation2 + $0x198] sm:$0xf] %v4081_v7  ;;  %s3849_s15 = smov 1   ;;  %s5241_s16 = smov 127   ;;  %vm566_vm9 = vcmask 1043464   ;;  %vm604_vm10 = vcmask 1027072  }
  0x88   : > { %572 = vst [vmem:[#allocation2 + $0x188] sm:$0xf] %v4086_v8  ;;  %s3851_s17 = smov 2   ;;  %s3852_s12 = smov 3   ;;  %vm5254_vm11 = vcmask 1035264   ;;  %vm549_vm12 = vcmask 1043472  }
  0x89   : > { %990 = vst [vmem:[#allocation2 + $0x194] sm:$0xf] %v4248_v3  ;;  %vm532_vm13 = vcmask 1043480   ;;  %vm5256_vm14 = vcmask 953344   ;;  %vm5257_vm15 = vcmask 1043488  }
  0x8d   : > { %475 = vrot.lane.b32.xlu2 %v4081_v7, %s3839_s26  ;;  %492 = vrot.lane.b32.xlu0 %v4081_v7, %s3840_s30 }
  0x8e   : > { %488 = vrot.lane.b32.xlu1 %v4086_v8, %s3840_s30 }
  0x95   : > { %422 = vrot.lane.b32.xlu0 %v4071_v4, %s3841_s6  ;;  %469 = vrot.lane.b32.xlu2 %v4073_v5, %s3839_s26 }
  0x96   : > { %424 = vrot.lane.b32.xlu1 %v4081_v7, %s3841_s6 }
  0x9d   : > { %471 = vrot.lane.b32.xlu0 %v4086_v8, %s3839_s26  ;;  %420 = vrot.lane.b32.xlu2 %v4086_v8, %s3841_s6 }
  0x9e   : > { %418 = vrot.lane.b32.xlu1 %v4073_v5, %s3841_s6 }
  0xa5   : > { %456 = vrot.lane.b32.xlu0 %v4071_v4, %s5237_s7  ;;  %405 = vrot.lane.b32.xlu2 %v4071_v4, %s3843_s8 }
  0xa6   : > { %458 = vrot.lane.b32.xlu1 %v4081_v7, %s5237_s7 }
  0xad   : > { %407 = vrot.lane.b32.xlu0 %v4081_v7, %s3843_s8  ;;  %454 = vrot.lane.b32.xlu2 %v4086_v8, %s5237_s7 }
  0xae   : > { %452 = vrot.lane.b32.xlu1 %v4073_v5, %s5237_s7  ;;  %s5245_s7 = smov 4  }
  0xb5   : > { %401 = vrot.lane.b32.xlu0 %v4073_v5, %s3843_s8  ;;  %439 = vrot.lane.b32.xlu2 %v4071_v4, %s5235_s9 }
  0xb6   : > { %403 = vrot.lane.b32.xlu1 %v4086_v8, %s3843_s8 }
  0xbd   : > { %441 = vrot.lane.b32.xlu0 %v4081_v7, %s5235_s9  ;;  %390 = vrot.lane.b32.xlu2 %v4081_v7, %s3845_s10 }
  0xbe   : > { %388 = vrot.lane.b32.xlu1 %v4071_v4, %s3845_s10 }
  0xc5   : > { %435 = vrot.lane.b32.xlu0 %v4073_v5, %s5235_s9  ;;  %384 = vrot.lane.b32.xlu2 %v4073_v5, %s3845_s10 }
  0xc6   : > { %437 = vrot.lane.b32.xlu1 %v4086_v8, %s5235_s9  ;;  %s5239_s9 = smov 117  }
  0xcd   : > { %386 = vrot.lane.b32.xlu0 %v4086_v8, %s3845_s10  ;;  %615 = vrot.lane.b32.xlu2 %v4081_v7, %s3846_s11 }
  0xce   : > { %613 = vrot.lane.b32.xlu1 %v4071_v4, %s3846_s11 }
  0xd5   : > { %371 = vrot.lane.b32.xlu0 %v4071_v4, %s3847_s13  ;;  %609 = vrot.lane.b32.xlu2 %v4073_v5, %s3846_s11 }
  0xd6   : > { %373 = vrot.lane.b32.xlu1 %v4081_v7, %s3847_s13 }
  0xdd   : > { %611 = vrot.lane.b32.xlu0 %v4086_v8, %s3846_s11  ;;  %369 = vrot.lane.b32.xlu2 %v4086_v8, %s3847_s13 }
  0xde   : > { %367 = vrot.lane.b32.xlu1 %v4073_v5, %s3847_s13 }
  0xdf   : > { %v474_v9 = vpop.permute.xlu2 %473 }
  0xe0   : > { %484 = vst.msk [vmem:[#allocation2 + $0xd0] sm:$0xf] %vm481_vm0, %v474_v9 }
  0xe5   : > { %596 = vrot.lane.b32.xlu0 %v4071_v4, %s3848_s14  ;;  %558 = vrot.lane.b32.xlu2 %v4071_v4, %s3849_s15 }
  0xe6   : > { %598 = vrot.lane.b32.xlu1 %v4081_v7, %s3848_s14 }
  0xe7   : > { %v476_v10 = vpop.permute.xlu2 %475  ;;  %v3134_v27 = vld [vmem:[#allocation2 + $0xd0] sm:$0xf] }
  0xe8   : > { %485 = vst.msk [vmem:[#allocation2 + $0xd8] sm:$0xf] %vm481_vm0, %v476_v10 }
  0xed   : > { %560 = vrot.lane.b32.xlu0 %v4081_v7, %s3849_s15  ;;  %594 = vrot.lane.b32.xlu2 %v4086_v8, %s3848_s14 }
  0xee   : > { %592 = vrot.lane.b32.xlu1 %v4073_v5, %s3848_s14 }
  0xef   : > { %v470_v11 = vpop.permute.xlu2 %469  ;;  %v3535_v28 = vld [vmem:[#allocation2 + $0xd4] sm:$0xf0] }
  0xf0   : > { %482 = vst.msk [vmem:[#allocation2 + $0xc0] sm:$0xf] %vm481_vm0, %v470_v11  ;;  %v3135_v33 = vor.u32 %v3535_v28, %v3134_v27 }
  0xf5   : > { %554 = vrot.lane.b32.xlu0 %v4073_v5, %s3849_s15  ;;  %579 = vrot.lane.b32.xlu2 %v4071_v4, %s5241_s16 }
  0xf6   : > { %556 = vrot.lane.b32.xlu1 %v4086_v8, %s3849_s15 }
  0xf7   : > { %v491_v12 = vpop.permute.xlu0 %490  ;;  %v421_v13 = vpop.permute.xlu2 %420  ;;  %v3126_v38 = vld [vmem:[#allocation2 + $0xc0] sm:$0xf] }
  0xf8   : > { %501 = vst.msk [vmem:[#allocation2 + $0xf0] sm:$0xf] %vm498_vm1, %v491_v12  ;;  %v487_v14 = vpop.permute.xlu1 %486 }
  0xf9   : > { %432 = vst.msk [vmem:[#allocation2 + $0x68] sm:$0xf] %vm430_vm2, %v421_v13 }
  0xfa   : > { %499 = vst.msk [vmem:[#allocation2 + $0xe0] sm:$0xf] %vm498_vm1, %v487_v14 }
  0xfd   : > { %581 = vrot.lane.b32.xlu0 %v4081_v7, %s5241_s16  ;;  %543 = vrot.lane.b32.xlu2 %v4081_v7, %s3851_s17 }
  0xfe   : > { %541 = vrot.lane.b32.xlu1 %v4071_v4, %s3851_s17 }
  0xff   : > { %v493_v15 = vpop.permute.xlu0 %492  ;;  %v406_v16 = vpop.permute.xlu2 %405  ;;  %v3150_v20 = vld [vmem:[#allocation2 + $0xf0] sm:$0xf] }
 0x100   : > { %502 = vst.msk [vmem:[#allocation2 + $0xf8] sm:$0xf] %vm498_vm1, %v493_v15  ;;  %v489_v17 = vpop.permute.xlu1 %488  ;;  %v3521_v40 = vld [vmem:[#allocation2 + $0x64] sm:$0xf0] }
 0x101   : > { %416 = vst.msk [vmem:[#allocation2 + $0x50] sm:$0xf] %vm413_vm3, %v406_v16  ;;  %v3142_v25 = vld [vmem:[#allocation2 + $0xe0] sm:$0xf] }
 0x102   : > { %500 = vst.msk [vmem:[#allocation2 + $0xe8] sm:$0xf] %vm498_vm1, %v489_v17  ;;  %v2971_v17 = vld [vmem:[%s3962_s23 + $0x38] sm:$0xff] }
 0x105   : > { %575 = vrot.lane.b32.xlu0 %v4073_v5, %s5241_s16  ;;  %537 = vrot.lane.b32.xlu2 %v4073_v5, %s3851_s17 }
 0x106   : > { %577 = vrot.lane.b32.xlu1 %v4086_v8, %s5241_s16  ;;  %s3856_s16 = smov 121  }
 0x107   : > { %v423_v18 = vpop.permute.xlu0 %422  ;;  %v455_v19 = vpop.permute.xlu2 %454  ;;  %v3539_v21 = vld [vmem:[#allocation2 + $0xf4] sm:$0xf0] }
 0x108   : > { %433 = vst.msk [vmem:[#allocation2 + $0x70] sm:$0xf] %vm430_vm2, %v423_v18  ;;  %v425_v22 = vpop.permute.xlu1 %424  ;;  %v3151_v23 = vor.u32 %v3539_v21, %v3150_v20  ;;  %v3070_v53 = vld [vmem:[#allocation2 + $0x50] sm:$0xf]  ;;  %v4257_v18 = vpack.c.bf16 %v2971_v17, %v2971_v17 }
 0x109   : > { %466 = vst.msk [vmem:[#allocation2 + $0xa8] sm:$0xf] %vm5255_vm4, %v455_v19  ;;  %v3537_v24 = vld [vmem:[#allocation2 + $0xe4] sm:$0xf0] }
 0x10a   : > { %434 = vst.msk [vmem:[#allocation2 + $0x78] sm:$0xf] %vm430_vm2, %v425_v22  ;;  %1920 = vmatpush.bf16.msra.mxu1 %v3151_v23  ;;  %v3143_v26 = vor.u32 %v3537_v24, %v3142_v25  ;;  %v2968_v25 = vld [vmem:[%s3962_s23 + $0x20] sm:$0xff] }
 0x10b   : > { %991 = vst [vmem:[#allocation2 + $0x19c] sm:$0xf] %v4257_v18 }
 0x10d   : > { %539 = vrot.lane.b32.xlu0 %v4086_v8, %s3851_s17  ;;  %526 = vrot.lane.b32.xlu2 %v4081_v7, %s3852_s12 }
 0x10e   : > { %524 = vrot.lane.b32.xlu1 %v4071_v4, %s3852_s12  ;;  %1921 = vmatpush.bf16.msra.mxu1 %v3143_v26  ;;  %v4274_v26 = vpack.c.bf16 %v2968_v25, %v2968_v25  ;;  %v3494_v25 = vld [vmem:[#allocation4 + $0x4] sm:$0xf] }
 0x10f   : > { %v472_v29 = vpop.permute.xlu0 %471  ;;  %v440_v30 = vpop.permute.xlu2 %439  ;;  %v3086_v31 = vld [vmem:[#allocation2 + $0x70] sm:$0xf] }
 0x110   : > { %483 = vst.msk [vmem:[#allocation2 + $0xc8] sm:$0xf] %vm481_vm0, %v472_v29  ;;  %v419_v32 = vpop.permute.xlu1 %418  ;;  %v3529_v55 = vld [vmem:[#allocation2 + $0xa4] sm:$0xf0] }
 0x111   : > { %450 = vst.msk [vmem:[#allocation2 + $0x90] sm:$0xf] %vm5253_vm5, %v440_v30  ;;  %v3523_v34 = vld [vmem:[#allocation2 + $0x74] sm:$0xf0] }
 0x112   : > { %431 = vst.msk [vmem:[#allocation2 + $0x60] sm:$0xf] %vm430_vm2, %v419_v32  ;;  %v3087_v35 = vor.u32 %v3523_v34, %v3086_v31  ;;  %1922 = vmatpush.bf16.msra.mxu1 %v3135_v33 }
 0x113   : > { %988 = vst [vmem:[#allocation2 + $0x184] sm:$0xf] %v4274_v26 }
 0x114   : > { %1901 = vmatpush.bf16.msra.mxu0 %v3087_v35 }
 0x115   : > { %520 = vrot.lane.b32.xlu0 %v4073_v5, %s3852_s12  ;;  %749 = vrot.lane.b32.xlu2 %v4071_v4, %s5239_s9 }
 0x116   : > { %522 = vrot.lane.b32.xlu1 %v4086_v8, %s3852_s12 }
 0x117   : > { %v457_v36 = vpop.permute.xlu0 %456  ;;  %v391_v37 = vpop.permute.xlu2 %390  ;;  %v3533_v39 = vld [vmem:[#allocation2 + $0xc4] sm:$0xf0] }
 0x118   : > { %467 = vst.msk [vmem:[#allocation2 + $0xb0] sm:$0xf] %vm5255_vm4, %v457_v36  ;;  %v459_v41 = vpop.permute.xlu1 %458  ;;  %v3127_v42 = vor.u32 %v3533_v39, %v3126_v38  ;;  %v3102_v6 = vld [vmem:[#allocation2 + $0x90] sm:$0xf]  ;;  %v2969_v36 = vld [vmem:[%s3962_s23 + $0x28] sm:$0xff] }
 0x119   : > { %400 = vst.msk [vmem:[#allocation2 + $0x38] sm:$0xf] %vm396_vm6, %v391_v37  ;;  %v3078_v43 = vld [vmem:[#allocation2 + $0x60] sm:$0xf]  ;;  %v4283_v37 = vpack.c.bf16 %v2969_v36, %v2969_v36 }
 0x11a   : > { %468 = vst.msk [vmem:[#allocation2 + $0xb8] sm:$0xf] %vm5255_vm4, %v459_v41  ;;  %1923 = vmatpush.bf16.msra.mxu1 %v3127_v42  ;;  %v3079_v44 = vor.u32 %v3521_v40, %v3078_v43 }
 0x11b   : > { %989 = vst [vmem:[#allocation2 + $0x18c] sm:$0xf] %v4283_v37 }
 0x11c   : > { %1902 = vmatpush.bf16.msra.mxu0 %v3079_v44 }
 0x11d   : > { %751 = vrot.lane.b32.xlu0 %v4081_v7, %s5239_s9  ;;  %509 = vrot.lane.b32.xlu2 %v4081_v7, %s5245_s7 }
 0x11e   : > { %507 = vrot.lane.b32.xlu1 %v4071_v4, %s5245_s7 }
 0x11f   : > { %v408_v45 = vpop.permute.xlu0 %407  ;;  %v385_v46 = vpop.permute.xlu2 %384  ;;  %v3118_v47 = vld [vmem:[#allocation2 + $0xb0] sm:$0xf] }
 0x120   : > { %417 = vst.msk [vmem:[#allocation2 + $0x58] sm:$0xf] %vm413_vm3, %v408_v45  ;;  %v453_v48 = vpop.permute.xlu1 %452  ;;  %v3515_v12 = vld [vmem:[#allocation2 + $0x34] sm:$0xf0] }
 0x121   : > { %397 = vst.msk [vmem:[#allocation2 + $0x20] sm:$0xf] %vm396_vm6, %v385_v46  ;;  %v3531_v49 = vld [vmem:[#allocation2 + $0xb4] sm:$0xf0] }
 0x122   : > { %465 = vst.msk [vmem:[#allocation2 + $0xa0] sm:$0xf] %vm5255_vm4, %v453_v48  ;;  %v3119_v50 = vor.u32 %v3531_v49, %v3118_v47  ;;  %vm5260_vm4 = vcmask 994304  }
 0x124   : > { %1924 = vmatpush.bf16.msra.mxu1 %v3119_v50 }
 0x125   : > { %745 = vrot.lane.b32.xlu0 %v4073_v5, %s5239_s9  ;;  %503 = vrot.lane.b32.xlu2 %v4073_v5, %s5245_s7 }
 0x126   : > { %747 = vrot.lane.b32.xlu1 %v4086_v8, %s5239_s9  ;;  %s5243_s9 = smov 118  }
 0x127   : > { %v402_v51 = vpop.permute.xlu0 %401  ;;  %v616_v52 = vpop.permute.xlu2 %615  ;;  %v3519_v54 = vld [vmem:[#allocation2 + $0x54] sm:$0xf0] }
 0x128   : > { %414 = vst.msk [vmem:[#allocation2 + $0x40] sm:$0xf] %vm413_vm3, %v402_v51  ;;  %v404_v56 = vpop.permute.xlu1 %403  ;;  %v3071_v57 = vor.u32 %v3519_v54, %v3070_v53  ;;  %v3046_v27 = vld [vmem:[#allocation2 + $0x20] sm:$0xf] }
 0x129   : > { %625 = vst.msk [vmem:[#allocation2 + $0x1f8] sm:$0xf] %vm621_vm7, %v616_v52  ;;  %v3110_v58 = vld [vmem:[#allocation2 + $0xa0] sm:$0xf] }
 0x12a   : > { %415 = vst.msk [vmem:[#allocation2 + $0x48] sm:$0xf] %vm413_vm3, %v404_v56  ;;  %1903 = vmatpush.bf16.msra.mxu0 %v3071_v57  ;;  %v3111_v59 = vor.u32 %v3529_v55, %v3110_v58 }
 0x12c   : > { %1925 = vmatpush.bf16.msra.mxu1 %v3111_v59 }
 0x12d   : > { %505 = vrot.lane.b32.xlu0 %v4086_v8, %s5245_s7  ;;  %734 = vrot.lane.b32.xlu2 %v4081_v7, %s5243_s9  ;;  %s5249_s7 = smov 122  }
 0x12e   : > { %732 = vrot.lane.b32.xlu1 %v4071_v4, %s5243_s9 }
 0x12f   : > { %v442_v60 = vpop.permute.xlu0 %441  ;;  %v610_v61 = vpop.permute.xlu2 %609  ;;  %v3062_v62 = vld [vmem:[#allocation2 + $0x40] sm:$0xf] }
 0x130   : > { %451 = vst.msk [vmem:[#allocation2 + $0x98] sm:$0xf] %vm5253_vm5, %v442_v60  ;;  %v389_v63 = vpop.permute.xlu1 %388  ;;  %v3571_v31 = vld [vmem:[#allocation2 + $0x1f4] sm:$0xf0] }
 0x131   : > { %622 = vst.msk [vmem:[#allocation2 + $0x1e0] sm:$0xf] %vm621_vm7, %v610_v61  ;;  %v3517_v0 = vld [vmem:[#allocation2 + $0x44] sm:$0xf0] }
 0x132   : > { %399 = vst.msk [vmem:[#allocation2 + $0x30] sm:$0xf] %vm396_vm6, %v389_v63  ;;  %v3063_v1 = vor.u32 %v3517_v0, %v3062_v62 }
 0x134   : > { %1904 = vmatpush.bf16.msra.mxu0 %v3063_v1 }
 0x135   : > { %681 = vrot.lane.b32.xlu0 %v4071_v4, %s3856_s16  ;;  %728 = vrot.lane.b32.xlu2 %v4073_v5, %s5243_s9 }
 0x136   : > { %683 = vrot.lane.b32.xlu1 %v4081_v7, %s3856_s16 }
 0x137   : > { %v436_v9 = vpop.permute.xlu0 %435  ;;  %v370_v10 = vpop.permute.xlu2 %369  ;;  %v3527_v11 = vld [vmem:[#allocation2 + $0x94] sm:$0xf0] }
 0x138   : > { %448 = vst.msk [vmem:[#allocation2 + $0x80] sm:$0xf] %vm5253_vm5, %v436_v9  ;;  %v438_v13 = vpop.permute.xlu1 %437  ;;  %v3103_v14 = vor.u32 %v3527_v11, %v3102_v6  ;;  %v3270_v46 = vld [vmem:[#allocation2 + $0x1e0] sm:$0xf] }
 0x139   : > { %381 = vst.msk [vmem:[#allocation2 + $0x8] sm:$0xf] %vm379_vm8, %v370_v10  ;;  %v3054_v15 = vld [vmem:[#allocation2 + $0x30] sm:$0xf] }
 0x13a   : > { %449 = vst.msk [vmem:[#allocation2 + $0x88] sm:$0xf] %vm5253_vm5, %v438_v13  ;;  %1926 = vmatpush.bf16.msra.mxu1 %v3103_v14  ;;  %v3055_v16 = vor.u32 %v3515_v12, %v3054_v15  ;;  %vm5259_vm5 = vcmask 961536  }
 0x13c   : > { %1905 = vmatpush.bf16.msra.mxu0 %v3055_v16 }
 0x13d   : > { %730 = vrot.lane.b32.xlu0 %v4086_v8, %s5243_s9  ;;  %679 = vrot.lane.b32.xlu2 %v4086_v8, %s3856_s16  ;;  %s5247_s9 = smov 119  }
 0x13e   : > { %677 = vrot.lane.b32.xlu1 %v4073_v5, %s3856_s16 }
 0x13f   : > { %v387_v19 = vpop.permute.xlu0 %386  ;;  %v559_v20 = vpop.permute.xlu2 %558  ;;  %v3094_v21 = vld [vmem:[#allocation2 + $0x80] sm:$0xf] }
 0x140   : > { %398 = vst.msk [vmem:[#allocation2 + $0x28] sm:$0xf] %vm396_vm6, %v387_v19  ;;  %v614_v22 = vpop.permute.xlu1 %613  ;;  %v3509_v48 = vld [vmem:[#allocation2 + $0x4] sm:$0xf0] }
 0x141   : > { %569 = vst.msk [vmem:[#allocation2 + $0x170] sm:$0xf] %vm566_vm9, %v559_v20  ;;  %v3525_v23 = vld [vmem:[#allocation2 + $0x84] sm:$0xf0] }
 0x142   : > { %624 = vst.msk [vmem:[#allocation2 + $0x1f0] sm:$0xf] %vm621_vm7, %v614_v22  ;;  %v3095_v24 = vor.u32 %v3525_v23, %v3094_v21 }
 0x144   : > { %1927 = vmatpush.bf16.msra.mxu1 %v3095_v24 }
 0x145   : > { %715 = vrot.lane.b32.xlu0 %v4071_v4, %s5247_s9  ;;  %664 = vrot.lane.b32.xlu2 %v4071_v4, %s5249_s7 }
 0x146   : > { %717 = vrot.lane.b32.xlu1 %v4081_v7, %s5247_s9 }
 0x147   : > { %v372_v28 = vpop.permute.xlu0 %371  ;;  %v595_v29 = vpop.permute.xlu2 %594  ;;  %v3513_v30 = vld [vmem:[#allocation2 + $0x24] sm:$0xf0] }
 0x148   : > { %382 = vst.msk [vmem:[#allocation2 + $0x10] sm:$0xf] %vm379_vm8, %v372_v28  ;;  %v374_v32 = vpop.permute.xlu1 %373  ;;  %v3047_v33 = vor.u32 %v3513_v30, %v3046_v27  ;;  %v3214_v61 = vld [vmem:[#allocation2 + $0x170] sm:$0xf]  ;;  %v2976_v27 = vld [vmem:[#allocation4 + $0x1c] sm:$0xf0] }
 0x149   : > { %606 = vst.msk [vmem:[#allocation2 + $0x1c8] sm:$0xf] %vm604_vm10, %v595_v29  ;;  %v3278_v34 = vld [vmem:[#allocation2 + $0x1f0] sm:$0xf]  ;;  %v4340_v28 = vor.u32 %v3494_v25, %v2976_v27 }
 0x14a   : > { %383 = vst.msk [vmem:[#allocation2 + $0x18] sm:$0xf] %vm379_vm8, %v374_v32  ;;  %1906 = vmatpush.bf16.msra.mxu0 %v3047_v33  ;;  %v3279_v35 = vor.u32 %v3571_v31, %v3278_v34  ;;  %v3230_v33 = vld [vmem:[#allocation2 + $0x190] sm:$0xf] }
 0x14b   : > { %1928 = vmatmul.bf16.vlgmr.msra.gmra.mxu1 %v4340_v28 }
 0x14c   : > { %1958 = vmatpush.bf16.msrb.mxu1 %v3279_v35  ;;  %v3559_v35 = vld [vmem:[#allocation2 + $0x194] sm:$0xf0] }
 0x14d   : > { %666 = vrot.lane.b32.xlu0 %v4081_v7, %s5249_s7  ;;  %713 = vrot.lane.b32.xlu2 %v4086_v8, %s5247_s9 }
 0x14e   : > { %711 = vrot.lane.b32.xlu1 %v4073_v5, %s5247_s9  ;;  %s5251_s9 = smov 120  }
 0x14f   : > { %v612_v38 = vpop.permute.xlu0 %611  ;;  %v580_v39 = vpop.permute.xlu2 %579  ;;  %v3038_v40 = vld [vmem:[#allocation2 + $0x10] sm:$0xf] }
 0x150   : > { %623 = vst.msk [vmem:[#allocation2 + $0x1e8] sm:$0xf] %vm621_vm7, %v612_v38  ;;  %v368_v41 = vpop.permute.xlu1 %367  ;;  %v3565_v63 = vld [vmem:[#allocation2 + $0x1c4] sm:$0xf0]  ;;  %v3231_v38 = vor.u32 %v3559_v35, %v3230_v33 }
 0x151   : > { %590 = vst.msk [vmem:[#allocation2 + $0x1b0] sm:$0xf] %vm5254_vm11, %v580_v39  ;;  %v3511_v42 = vld [vmem:[#allocation2 + $0x14] sm:$0xf0]  ;;  %v3222_v39 = vld [vmem:[#allocation2 + $0x180] sm:$0xf] }
 0x152   : > { %380 = vst.msk [vmem:[#allocation2] sm:$0xf] %vm379_vm8, %v368_v41  ;;  %v3039_v43 = vor.u32 %v3511_v42, %v3038_v40  ;;  %v3557_v40 = vld [vmem:[#allocation2 + $0x184] sm:$0xf0] }
 0x154   : > { %1907 = vmatpush.bf16.msra.mxu0 %v3039_v43 }
 0x155   : > { %660 = vrot.lane.b32.xlu0 %v4073_v5, %s5249_s7  ;;  %848 = vrot.lane.b32.xlu2 %v4248_v3, %s3841_s6 }
 0x156   : > { %662 = vrot.lane.b32.xlu1 %v4086_v8, %s5249_s7  ;;  %s3860_s7 = smov 123  }
 0x157   : > { %v597_v44 = vpop.permute.xlu0 %596  ;;  %v544_v45 = vpop.permute.xlu2 %543  ;;  %v3569_v47 = vld [vmem:[#allocation2 + $0x1e4] sm:$0xf0] }
 0x158   : > { %607 = vst.msk [vmem:[#allocation2 + $0x1d0] sm:$0xf] %vm604_vm10, %v597_v44  ;;  %v599_v49 = vpop.permute.xlu1 %598  ;;  %v3271_v50 = vor.u32 %v3569_v47, %v3270_v46  ;;  %v3246_v17 = vld [vmem:[#allocation2 + $0x1b0] sm:$0xf] }
 0x159   : > { %553 = vst.msk [vmem:[#allocation2 + $0x158] sm:$0xf] %vm549_vm12, %v544_v45  ;;  %v3030_v51 = vld [vmem:[#allocation2] sm:$0xf] }
 0x15a   : > { %608 = vst.msk [vmem:[#allocation2 + $0x1d8] sm:$0xf] %vm604_vm10, %v599_v49  ;;  %1959 = vmatpush.bf16.msrb.mxu1 %v3271_v50  ;;  %v3031_v52 = vor.u32 %v3509_v48, %v3030_v51  ;;  %v3223_v48 = vor.u32 %v3557_v40, %v3222_v39 }
 0x15c   : > { %1908 = vmatpush.bf16.msra.mxu0 %v3031_v52 }
 0x15d   : > { %850 = vrot.lane.b32.xlu0 %v4257_v18, %s3841_s6  ;;  %700 = vrot.lane.b32.xlu2 %v4081_v7, %s5251_s9 }
 0x15e   : > { %698 = vrot.lane.b32.xlu1 %v4071_v4, %s5251_s9 }
 0x15f   : > { %v561_v53 = vpop.permute.xlu0 %560  ;;  %v538_v54 = vpop.permute.xlu2 %537  ;;  %v3262_v55 = vld [vmem:[#allocation2 + $0x1d0] sm:$0xf] }
 0x160   : > { %570 = vst.msk [vmem:[#allocation2 + $0x178] sm:$0xf] %vm566_vm9, %v561_v53  ;;  %v593_v56 = vpop.permute.xlu1 %592  ;;  %v3551_v20 = vld [vmem:[#allocation2 + $0x154] sm:$0xf0] }
 0x161   : > { %550 = vst.msk [vmem:[#allocation2 + $0x140] sm:$0xf] %vm549_vm12, %v538_v54  ;;  %v3567_v57 = vld [vmem:[#allocation2 + $0x1d4] sm:$0xf0] }
 0x162   : > { %605 = vst.msk [vmem:[#allocation2 + $0x1c0] sm:$0xf] %vm604_vm10, %v593_v56  ;;  %v3263_v58 = vor.u32 %v3567_v57, %v3262_v55  ;;  %v2974_v55 = vld [vmem:[#allocation4] sm:$0xf]  ;;  %v3497_v56 = vld [vmem:[#allocation4 + $0x18] sm:$0xf0] }
 0x163   : > { %v4370_v57 = vor.u32 %v3497_v56, %v2974_v55 }
 0x164   : > { %1960 = vmatpush.bf16.msrb.mxu1 %v3263_v58 }
 0x165   : > { %647 = vrot.lane.b32.xlu0 %v4071_v4, %s3860_s7  ;;  %844 = vrot.lane.b32.xlu2 %v4274_v26, %s3841_s6 }
 0x166   : > { %649 = vrot.lane.b32.xlu1 %v4081_v7, %s3860_s7  ;;  %1909 = vmatmul.bf16.vlgmr.msra.gmra.mxu0 %v4370_v57 }
 0x167   : > { %v555_v59 = vpop.permute.xlu0 %554  ;;  %v527_v60 = vpop.permute.xlu2 %526  ;;  %v3555_v62 = vld [vmem:[#allocation2 + $0x174] sm:$0xf0] }
 0x168   : > { %567 = vst.msk [vmem:[#allocation2 + $0x160] sm:$0xf] %vm566_vm9, %v555_v59  ;;  %v557_v0 = vpop.permute.xlu1 %556  ;;  %v3215_v1 = vor.u32 %v3555_v62, %v3214_v61  ;;  %v3190_v43 = vld [vmem:[#allocation2 + $0x140] sm:$0xf] }
 0x169   : > { %536 = vst.msk [vmem:[#allocation2 + $0x138] sm:$0xf] %vm532_vm13, %v527_v60  ;;  %v3254_v2 = vld [vmem:[#allocation2 + $0x1c0] sm:$0xf] }
 0x16a   : > { %568 = vst.msk [vmem:[#allocation2 + $0x168] sm:$0xf] %vm566_vm9, %v557_v0  ;;  %1939 = vmatpush.bf16.msrb.mxu0 %v3215_v1  ;;  %v3255_v6 = vor.u32 %v3565_v63, %v3254_v2 }
 0x16c   : > { %1961 = vmatpush.bf16.msrb.mxu1 %v3255_v6 }
 0x16d   : > { %846 = vrot.lane.b32.xlu0 %v4283_v37, %s3841_s6  ;;  %696 = vrot.lane.b32.xlu2 %v4086_v8, %s5251_s9  ;;  %s3861_s6 = smov 116  }
 0x16e   : > { %694 = vrot.lane.b32.xlu1 %v4073_v5, %s5251_s9  ;;  %s3862_s9 = smov 124  }
 0x16f   : > { %v582_v9 = vpop.permute.xlu0 %581  ;;  %v750_v10 = vpop.permute.xlu2 %749  ;;  %v3206_v11 = vld [vmem:[#allocation2 + $0x160] sm:$0xf] }
 0x170   : > { %591 = vst.msk [vmem:[#allocation2 + $0x1b8] sm:$0xf] %vm5254_vm11, %v582_v9  ;;  %v542_v12 = vpop.permute.xlu1 %541  ;;  %v3547_v45 = vld [vmem:[#allocation2 + $0x134] sm:$0xf0] }
 0x171   : > { %760 = vst.msk [vmem:[#allocation2 + $0x2f0] sm:$0xf] %vm5256_vm14, %v750_v10  ;;  %v3553_v13 = vld [vmem:[#allocation2 + $0x164] sm:$0xf0] }
 0x172   : > { %552 = vst.msk [vmem:[#allocation2 + $0x150] sm:$0xf] %vm549_vm12, %v542_v12  ;;  %v3207_v14 = vor.u32 %v3553_v13, %v3206_v11 }
 0x174   : > { %1940 = vmatpush.bf16.msrb.mxu0 %v3207_v14 }
 0x175   : > { %643 = vrot.lane.b32.xlu0 %v4073_v5, %s3860_s7  ;;  %832 = vrot.lane.b32.xlu2 %v4248_v3, %s3843_s8 }
 0x176   : > { %645 = vrot.lane.b32.xlu1 %v4086_v8, %s3860_s7 }
 0x177   : > { %v576_v15 = vpop.permute.xlu0 %575  ;;  %v510_v16 = vpop.permute.xlu2 %509  ;;  %v3563_v19 = vld [vmem:[#allocation2 + $0x1b4] sm:$0xf0] }
 0x178   : > { %588 = vst.msk [vmem:[#allocation2 + $0x1a0] sm:$0xf] %vm5254_vm11, %v576_v15  ;;  %v578_v21 = vpop.permute.xlu1 %577  ;;  %v3247_v22 = vor.u32 %v3563_v19, %v3246_v17  ;;  %v3406_v60 = vld [vmem:[#allocation2 + $0x2f0] sm:$0xf] }
 0x179   : > { %519 = vst.msk [vmem:[#allocation2 + $0x118] sm:$0xf] %vm5257_vm15, %v510_v16  ;;  %v3198_v23 = vld [vmem:[#allocation2 + $0x150] sm:$0xf] }
 0x17a   : > { %589 = vst.msk [vmem:[#allocation2 + $0x1a8] sm:$0xf] %vm5254_vm11, %v578_v21  ;;  %1962 = vmatpush.bf16.msrb.mxu1 %v3247_v22  ;;  %v3199_v24 = vor.u32 %v3551_v20, %v3198_v23  ;;  %vm689_vm11 = vcmask 986112  }
 0x17c   : > { %1941 = vmatpush.bf16.msrb.mxu0 %v3199_v24 }
 0x17d   : > { %834 = vrot.lane.b32.xlu0 %v4257_v18, %s3843_s8  ;;  %768 = vrot.lane.b32.xlu2 %v4081_v7, %s3861_s6 }
 0x17e   : > { %766 = vrot.lane.b32.xlu1 %v4071_v4, %s3861_s6 }
 0x17f   : > { %v540_v29 = vpop.permute.xlu0 %539  ;;  %v504_v30 = vpop.permute.xlu2 %503  ;;  %v3238_v31 = vld [vmem:[#allocation2 + $0x1a0] sm:$0xf] }
 0x180   : > { %551 = vst.msk [vmem:[#allocation2 + $0x148] sm:$0xf] %vm549_vm12, %v540_v29  ;;  %v525_v32 = vpop.permute.xlu1 %524  ;;  %v3543_v62 = vld [vmem:[#allocation2 + $0x114] sm:$0xf0] }
 0x181   : > { %516 = vst.msk [vmem:[#allocation2 + $0x100] sm:$0xf] %vm5257_vm15, %v504_v30  ;;  %v3561_v34 = vld [vmem:[#allocation2 + $0x1a4] sm:$0xf0] }
 0x182   : > { %535 = vst.msk [vmem:[#allocation2 + $0x130] sm:$0xf] %vm532_vm13, %v525_v32  ;;  %v3239_v36 = vor.u32 %v3561_v34, %v3238_v31 }
 0x184   : > { %1963 = vmatpush.bf16.msrb.mxu1 %v3239_v36 }
 0x185   : > { %976 = vrot.lane.b32.xlu0 %v4248_v3, %s3849_s15  ;;  %630 = vrot.lane.b32.xlu2 %v4071_v4, %s3862_s9 }
 0x186   : > { %978 = vrot.lane.b32.xlu1 %v4257_v18, %s3849_s15 }
 0x187   : > { %v521_v41 = vpop.permute.xlu0 %520  ;;  %v735_v42 = vpop.permute.xlu2 %734  ;;  %v3549_v44 = vld [vmem:[#allocation2 + $0x144] sm:$0xf0] }
 0x188   : > { %533 = vst.msk [vmem:[#allocation2 + $0x120] sm:$0xf] %vm532_vm13, %v521_v41  ;;  %v523_v46 = vpop.permute.xlu1 %522  ;;  %v3191_v47 = vor.u32 %v3549_v44, %v3190_v43  ;;  %1964 = vmatpush.bf16.msrb.mxu1 %v3231_v38  ;;  %v3158_v14 = vld [vmem:[#allocation2 + $0x100] sm:$0xf] }
 0x189   : > { %744 = vst.msk [vmem:[#allocation2 + $0x2d8] sm:$0xf] %vm5259_vm5, %v735_v42  ;;  %v3182_v4 = vld [vmem:[#allocation2 + $0x130] sm:$0xf] }
 0x18a   : > { %534 = vst.msk [vmem:[#allocation2 + $0x128] sm:$0xf] %vm532_vm13, %v523_v46  ;;  %1942 = vmatpush.bf16.msrb.mxu0 %v3191_v47  ;;  %v3183_v49 = vor.u32 %v3547_v45, %v3182_v4 }
 0x18c   : > { %1965 = vmatpush.bf16.msrb.mxu1 %v3223_v48 }
 0x18d   : > { %632 = vrot.lane.b32.xlu0 %v4081_v7, %s3862_s9  ;;  %830 = vrot.lane.b32.xlu2 %v4283_v37, %s3843_s8 }
 0x18e   : > { %828 = vrot.lane.b32.xlu1 %v4274_v26, %s3843_s8  ;;  %1943 = vmatpush.bf16.msrb.mxu0 %v3183_v49  ;;  %s5266_s8 = smov 122  }
 0x18f   : > { %v752_v50 = vpop.permute.xlu0 %751  ;;  %v729_v51 = vpop.permute.xlu2 %728  ;;  %v3174_v52 = vld [vmem:[#allocation2 + $0x120] sm:$0xf] }
 0x190   : > { %761 = vst.msk [vmem:[#allocation2 + $0x2f8] sm:$0xf] %vm5256_vm14, %v752_v50  ;;  %v508_v53 = vpop.permute.xlu1 %507  ;;  %v3599_v16 = vld [vmem:[#allocation2 + $0x2d4] sm:$0xf0] }
 0x191   : > { %741 = vst.msk [vmem:[#allocation2 + $0x2c0] sm:$0xf] %vm5259_vm5, %v729_v51  ;;  %v3545_v54 = vld [vmem:[#allocation2 + $0x124] sm:$0xf0] }
 0x192   : > { %518 = vst.msk [vmem:[#allocation2 + $0x110] sm:$0xf] %vm5257_vm15, %v508_v53  ;;  %v3175_v7 = vor.u32 %v3545_v54, %v3174_v52 }
 0x194   : > { %1944 = vmatpush.bf16.msrb.mxu0 %v3175_v7 }
 0x195   : > { %762 = vrot.lane.b32.xlu0 %v4073_v5, %s3861_s6  ;;  %972 = vrot.lane.b32.xlu2 %v4274_v26, %s3849_s15 }
 0x196   : > { %764 = vrot.lane.b32.xlu1 %v4086_v8, %s3861_s6 }
 0x197   : > { %v746_v58 = vpop.permute.xlu0 %745  ;;  %v680_v59 = vpop.permute.xlu2 %679  ;;  %v3603_v61 = vld [vmem:[#allocation2 + $0x2f4] sm:$0xf0] }
 0x198   : > { %758 = vst.msk [vmem:[#allocation2 + $0x2e0] sm:$0xf] %vm5256_vm14, %v746_v58  ;;  %v748_v63 = vpop.permute.xlu1 %747  ;;  %v3407_v0 = vor.u32 %v3603_v61, %v3406_v60  ;;  %v3382_v32 = vld [vmem:[#allocation2 + $0x2c0] sm:$0xf]  ;;  %v3004_v61 = vld [vmem:[#allocation4 + $0x54] sm:$0xf0] }
 0x199   : > { %691 = vst.msk [vmem:[#allocation2 + $0x268] sm:$0xf] %vm689_vm11, %v680_v59  ;;  %v3166_v1 = vld [vmem:[#allocation2 + $0x110] sm:$0xf]  ;;  %v3501_v59 = vld [vmem:[#allocation4 + $0x3c] sm:$0xf] }
 0x19a   : > { %759 = vst.msk [vmem:[#allocation2 + $0x2e8] sm:$0xf] %vm5256_vm14, %v748_v63  ;;  %1996 = vmatpush.bf16.msra.mxu1 %v3407_v0  ;;  %v3167_v2 = vor.u32 %v3543_v62, %v3166_v1  ;;  %vm5258_vm14 = vcmask 969728   ;;  %v4445_v62 = vor.u32 %v3501_v59, %v3004_v61  ;;  %v3002_v61 = vld [vmem:[#allocation4 + $0x38] sm:$0xf] }
 0x19c   : > { %1945 = vmatpush.bf16.msrb.mxu0 %v3167_v2  ;;  %1933 = vmatmul.bf16.gmra.mxu1 %v4445_v62 }
 0x19d   : > { %974 = vrot.lane.b32.xlu0 %v4283_v37, %s3849_s15  ;;  %628 = vrot.lane.b32.xlu2 %v4086_v8, %s3862_s9 }
 0x19e   : > { %626 = vrot.lane.b32.xlu1 %v4073_v5, %s3862_s9 }
 0x19f   : > { %v506_v6 = vpop.permute.xlu0 %505  ;;  %v665_v9 = vpop.permute.xlu2 %664  ;;  %v3398_v10 = vld [vmem:[#allocation2 + $0x2e0] sm:$0xf] }
 0x1a0   : > { %517 = vst.msk [vmem:[#allocation2 + $0x108] sm:$0xf] %vm5257_vm15, %v506_v6  ;;  %v733_v11 = vpop.permute.xlu1 %732  ;;  %vm706_vm15 = vcmask 977920   ;;  %v3585_v34 = vld [vmem:[#allocation2 + $0x264] sm:$0xf0] }
 0x1a1   : > { %675 = vst.msk [vmem:[#allocation2 + $0x250] sm:$0xf] %vm5260_vm4, %v665_v9  ;;  %v3601_v12 = vld [vmem:[#allocation2 + $0x2e4] sm:$0xf0] }
 0x1a2   : > { %743 = vst.msk [vmem:[#allocation2 + $0x2d0] sm:$0xf] %vm5259_vm5, %v733_v11  ;;  %v3399_v13 = vor.u32 %v3601_v12, %v3398_v10 }
 0x1a4   : > { %1997 = vmatpush.bf16.msra.mxu1 %v3399_v13 }
 0x1a5   : > { %816 = vrot.lane.b32.xlu0 %v4248_v3, %s3845_s10  ;;  %960 = vrot.lane.b32.xlu2 %v4248_v3, %s3851_s17 }
 0x1a6   : > { %818 = vrot.lane.b32.xlu1 %v4257_v18, %s3845_s10 }
 0x1a7   : > { %v682_v5 = vpop.permute.xlu0 %681  ;;  %v714_v8 = vpop.permute.xlu2 %713  ;;  %v3541_v15 = vld [vmem:[#allocation2 + $0x104] sm:$0xf0] }
 0x1a8   : > { %692 = vst.msk [vmem:[#allocation2 + $0x270] sm:$0xf] %vm689_vm11, %v682_v5  ;;  %v684_v17 = vpop.permute.xlu1 %683  ;;  %v3159_v19 = vor.u32 %v3541_v15, %v3158_v14  ;;  %v3326_v48 = vld [vmem:[#allocation2 + $0x250] sm:$0xf] }
 0x1a9   : > { %725 = vst.msk [vmem:[#allocation2 + $0x2a8] sm:$0xf] %vm5258_vm14, %v714_v8  ;;  %v3390_v20 = vld [vmem:[#allocation2 + $0x2d0] sm:$0xf] }
 0x1aa   : > { %693 = vst.msk [vmem:[#allocation2 + $0x278] sm:$0xf] %vm689_vm11, %v684_v17  ;;  %1946 = vmatpush.bf16.msrb.mxu0 %v3159_v19  ;;  %v3391_v21 = vor.u32 %v3599_v16, %v3390_v20  ;;  %v3495_v16 = vld [vmem:[#allocation4 + $0xc] sm:$0xf]  ;;  %v2984_v19 = vld [vmem:[#allocation4 + $0x24] sm:$0xf0] }
 0x1ab   : > { %v4466_v20 = vor.u32 %v3495_v16, %v2984_v19 }
 0x1ac   : > { %1998 = vmatpush.bf16.msra.mxu1 %v3391_v21 }
 0x1ad   : > { %962 = vrot.lane.b32.xlu0 %v4257_v18, %s3851_s17  ;;  %1030 = vrot.lane.b32.xlu2 %v4257_v18, %s3846_s11 }
 0x1ae   : > { %1028 = vrot.lane.b32.xlu1 %v4248_v3, %s3846_s11  ;;  %1966 = vmatmul.bf16.vlgmr.msrb.gmra.mxu1 %v4466_v20 }
 0x1af   : > { %v731_v22 = vpop.permute.xlu0 %730  ;;  %v849_v23 = vpop.permute.xlu2 %848  ;;  %v3342_v24 = vld [vmem:[#allocation2 + $0x270] sm:$0xf] }
 0x1b0   : > { %742 = vst.msk [vmem:[#allocation2 + $0x2c8] sm:$0xf] %vm5259_vm5, %v731_v22  ;;  %v678_v25 = vpop.permute.xlu1 %677  ;;  %v3593_v49 = vld [vmem:[#allocation2 + $0x2a4] sm:$0xf0]  ;;  %vm774_vm5 = vcmask 945152  }
 0x1b1   : > { %858 = vst.msk [vmem:[#allocation2 + $0x74] sm:$0xf] %vm430_vm2, %v849_v23  ;;  %v3587_v27 = vld [vmem:[#allocation2 + $0x274] sm:$0xf0] }
 0x1b2   : > { %690 = vst.msk [vmem:[#allocation2 + $0x260] sm:$0xf] %vm689_vm11, %v678_v25  ;;  %v3343_v29 = vor.u32 %v3587_v27, %v3342_v24 }
 0x1b4   : > { %1977 = vmatpush.bf16.msra.mxu0 %v3343_v29 }
 0x1b5   : > { %812 = vrot.lane.b32.xlu0 %v4274_v26, %s3845_s10  ;;  %912 = vrot.lane.b32.xlu2 %v4248_v3, %s3840_s30 }
 0x1b6   : > { %814 = vrot.lane.b32.xlu1 %v4283_v37, %s3845_s10  ;;  %s5267_s10 = smov 8  }
 0x1b7   : > { %v716_v30 = vpop.permute.xlu0 %715  ;;  %v701_v31 = vpop.permute.xlu2 %700  ;;  %v3597_v33 = vld [vmem:[#allocation2 + $0x2c4] sm:$0xf0] }
 0x1b8   : > { %726 = vst.msk [vmem:[#allocation2 + $0x2b0] sm:$0xf] %vm5258_vm14, %v716_v30  ;;  %v718_v35 = vpop.permute.xlu1 %717  ;;  %v3383_v36 = vor.u32 %v3597_v33, %v3382_v32  ;;  %v3522_v1 = vld [vmem:[#allocation2 + $0x74] sm:$0xf] }
 0x1b9   : > { %710 = vst.msk [vmem:[#allocation2 + $0x298] sm:$0xf] %vm706_vm15, %v701_v31  ;;  %v3334_v38 = vld [vmem:[#allocation2 + $0x260] sm:$0xf] }
 0x1ba   : > { %727 = vst.msk [vmem:[#allocation2 + $0x2b8] sm:$0xf] %vm5258_vm14, %v718_v35  ;;  %1999 = vmatpush.bf16.msra.mxu1 %v3383_v36  ;;  %v3335_v39 = vor.u32 %v3585_v34, %v3334_v38 }
 0x1bc   : > { %1978 = vmatpush.bf16.msra.mxu0 %v3335_v39 }
 0x1bd   : > { %914 = vrot.lane.b32.xlu0 %v4257_v18, %s3840_s30  ;;  %958 = vrot.lane.b32.xlu2 %v4283_v37, %s3851_s17 }
 0x1be   : > { %956 = vrot.lane.b32.xlu1 %v4274_v26, %s3851_s17 }
 0x1bf   : > { %v667_v40 = vpop.permute.xlu0 %666  ;;  %v845_v41 = vpop.permute.xlu2 %844  ;;  %v3374_v42 = vld [vmem:[#allocation2 + $0x2b0] sm:$0xf] }
 0x1c0   : > { %676 = vst.msk [vmem:[#allocation2 + $0x258] sm:$0xf] %vm5260_vm4, %v667_v40  ;;  %v712_v43 = vpop.permute.xlu1 %711  ;;  %v3591_v6 = vld [vmem:[#allocation2 + $0x294] sm:$0xf0] }
 0x1c1   : > { %856 = vst.msk [vmem:[#allocation2 + $0x64] sm:$0xf] %vm430_vm2, %v845_v41  ;;  %v3595_v44 = vld [vmem:[#allocation2 + $0x2b4] sm:$0xf0] }
 0x1c2   : > { %724 = vst.msk [vmem:[#allocation2 + $0x2a0] sm:$0xf] %vm5258_vm14, %v712_v43  ;;  %v3375_v45 = vor.u32 %v3595_v44, %v3374_v42  ;;  %vm655_vm14 = vcmask 1002496  }
 0x1c4   : > { %2000 = vmatpush.bf16.msra.mxu1 %v3375_v45 }
 0x1c5   : > { %1024 = vrot.lane.b32.xlu0 %v4274_v26, %s3846_s11  ;;  %800 = vrot.lane.b32.xlu2 %v4248_v3, %s3847_s13 }
 0x1c6   : > { %1026 = vrot.lane.b32.xlu1 %v4283_v37, %s3846_s11  ;;  %s5268_s11 = smov 117  }
 0x1c7   : > { %v661_v46 = vpop.permute.xlu0 %660  ;;  %v697_v47 = vpop.permute.xlu2 %696  ;;  %v3583_v4 = vld [vmem:[#allocation2 + $0x254] sm:$0xf0] }
 0x1c8   : > { %673 = vst.msk [vmem:[#allocation2 + $0x240] sm:$0xf] %vm5260_vm4, %v661_v46  ;;  %v663_v50 = vpop.permute.xlu1 %662  ;;  %v3327_v51 = vor.u32 %v3583_v4, %v3326_v48  ;;  %v3520_v23 = vld [vmem:[#allocation2 + $0x64] sm:$0xf] }
 0x1c9   : > { %708 = vst.msk [vmem:[#allocation2 + $0x288] sm:$0xf] %vm706_vm15, %v697_v47  ;;  %v3366_v52 = vld [vmem:[#allocation2 + $0x2a0] sm:$0xf] }
 0x1ca   : > { %674 = vst.msk [vmem:[#allocation2 + $0x248] sm:$0xf] %vm5260_vm4, %v663_v50  ;;  %1979 = vmatpush.bf16.msra.mxu0 %v3327_v51  ;;  %v3367_v53 = vor.u32 %v3593_v49, %v3366_v52  ;;  %vm638_vm4 = vcmask 1010688  }
 0x1cc   : > { %2001 = vmatpush.bf16.msra.mxu1 %v3367_v53 }
 0x1cd   : > { %802 = vrot.lane.b32.xlu0 %v4257_v18, %s3847_s13  ;;  %910 = vrot.lane.b32.xlu2 %v4283_v37, %s3840_s30 }
 0x1ce   : > { %908 = vrot.lane.b32.xlu1 %v4274_v26, %s3840_s30  ;;  %s5265_s30 = smov 7  }
 0x1cf   : > { %v851_v54 = vpop.permute.xlu0 %850  ;;  %v833_v55 = vpop.permute.xlu2 %832  ;;  %v3318_v7 = vld [vmem:[#allocation2 + $0x240] sm:$0xf] }
 0x1d0   : > { %859 = vst.msk [vmem:[#allocation2 + $0x7c] sm:$0xf] %vm430_vm2, %v851_v54  ;;  %v699_v56 = vpop.permute.xlu1 %698  ;;  %v3589_v25 = vld [vmem:[#allocation2 + $0x284] sm:$0xf0] }
 0x1d1   : > { %842 = vst.msk [vmem:[#allocation2 + $0x54] sm:$0xf] %vm413_vm3, %v833_v55  ;;  %v3581_v58 = vld [vmem:[#allocation2 + $0x244] sm:$0xf0] }
 0x1d2   : > { %709 = vst.msk [vmem:[#allocation2 + $0x290] sm:$0xf] %vm706_vm15, %v699_v56  ;;  %v3319_v60 = vor.u32 %v3581_v58, %v3318_v7 }
 0x1d4   : > { %1980 = vmatpush.bf16.msra.mxu0 %v3319_v60 }
 0x1d5   : > { %944 = vrot.lane.b32.xlu0 %v4248_v3, %s3852_s12  ;;  %1012 = vrot.lane.b32.xlu2 %v4248_v3, %s3848_s14 }
 0x1d6   : > { %946 = vrot.lane.b32.xlu1 %v4257_v18, %s3852_s12 }
 0x1d7   : > { %v648_v63 = vpop.permute.xlu0 %647  ;;  %v769_v0 = vpop.permute.xlu2 %768  ;;  %v3088_v2 = vld [vmem:[#allocation2 + $0x78] sm:$0xf0] }
 0x1d8   : > { %658 = vst.msk [vmem:[#allocation2 + $0x230] sm:$0xf] %vm655_vm14, %v648_v63  ;;  %v650_v9 = vpop.permute.xlu1 %649  ;;  %v3091_v10 = vor.u32 %v3522_v1, %v3088_v2  ;;  %v3518_v41 = vld [vmem:[#allocation2 + $0x54] sm:$0xf] }
 0x1d9   : > { %778 = vst.msk [vmem:[#allocation2 + $0x318] sm:$0xf] %vm774_vm5, %v769_v0  ;;  %v3358_v11 = vld [vmem:[#allocation2 + $0x290] sm:$0xf]  ;;  %v3504_v0 = vld [vmem:[#allocation4 + $0x50] sm:$0xf0] }
 0x1da   : > { %659 = vst.msk [vmem:[#allocation2 + $0x238] sm:$0xf] %vm655_vm14, %v650_v9  ;;  %2034 = vmatpush.bf16.msra.mxu3 %v3091_v10  ;;  %v3359_v12 = vor.u32 %v3591_v6, %v3358_v11  ;;  %v4514_v1 = vor.u32 %v3504_v0, %v3002_v61 }
 0x1dc   : > { %2002 = vmatpush.bf16.msra.mxu1 %v3359_v12  ;;  %1914 = vmatmul.bf16.gmra.mxu0 %v4514_v1 }
 0x1dd   : > { %1014 = vrot.lane.b32.xlu0 %v4257_v18, %s3848_s14  ;;  %798 = vrot.lane.b32.xlu2 %v4283_v37, %s3847_s13 }
 0x1de   : > { %796 = vrot.lane.b32.xlu1 %v4274_v26, %s3847_s13  ;;  %s5275_s13 = smov 120  }
 0x1df   : > { %v847_v13 = vpop.permute.xlu0 %846  ;;  %v631_v5 = vpop.permute.xlu2 %630  ;;  %v3310_v8 = vld [vmem:[#allocation2 + $0x230] sm:$0xf] }
 0x1e0   : > { %857 = vst.msk [vmem:[#allocation2 + $0x6c] sm:$0xf] %vm430_vm2, %v847_v13  ;;  %v695_v14 = vpop.permute.xlu1 %694  ;;  %v3607_v43 = vld [vmem:[#allocation2 + $0x314] sm:$0xf0]  ;;  %vm1894_vm2 = vcmask 261120  }
 0x1e1   : > { %641 = vst.msk [vmem:[#allocation2 + $0x210] sm:$0xf] %vm638_vm4, %v631_v5  ;;  %v3579_v15 = vld [vmem:[#allocation2 + $0x234] sm:$0xf0] }
 0x1e2   : > { %707 = vst.msk [vmem:[#allocation2 + $0x280] sm:$0xf] %vm706_vm15, %v695_v14  ;;  %v3311_v17 = vor.u32 %v3579_v15, %v3310_v8 }
 0x1e4   : > { %1981 = vmatpush.bf16.msra.mxu0 %v3311_v17 }
 0x1e5   : > { %896 = vrot.lane.b32.xlu0 %v4248_v3, %s3839_s26  ;;  %940 = vrot.lane.b32.xlu2 %v4274_v26, %s3852_s12 }
 0x1e6   : > { %898 = vrot.lane.b32.xlu1 %v4257_v18, %s3839_s26 }
 0x1e7   : > { %v644_v21 = vpop.permute.xlu0 %643  ;;  %v831_v22 = vpop.permute.xlu2 %830  ;;  %v3080_v24 = vld [vmem:[#allocation2 + $0x68] sm:$0xf0] }
 0x1e8   : > { %656 = vst.msk [vmem:[#allocation2 + $0x220] sm:$0xf] %vm655_vm14, %v644_v21  ;;  %v646_v27 = vpop.permute.xlu1 %645  ;;  %v3083_v29 = vor.u32 %v3520_v23, %v3080_v24  ;;  %v3294_v55 = vld [vmem:[#allocation2 + $0x210] sm:$0xf]  ;;  %v2982_v21 = vld [vmem:[#allocation4 + $0x8] sm:$0xf] }
 0x1e9   : > { %841 = vst.msk [vmem:[#allocation2 + $0x4c] sm:$0xf] %vm413_vm3, %v831_v22  ;;  %v3350_v30 = vld [vmem:[#allocation2 + $0x280] sm:$0xf]  ;;  %v3498_v23 = vld [vmem:[#allocation4 + $0x20] sm:$0xf0] }
 0x1ea   : > { %657 = vst.msk [vmem:[#allocation2 + $0x228] sm:$0xf] %vm655_vm14, %v646_v27  ;;  %2035 = vmatpush.bf16.msra.mxu3 %v3083_v29  ;;  %v3351_v31 = vor.u32 %v3589_v25, %v3350_v30  ;;  %v4535_v24 = vor.u32 %v3498_v23, %v2982_v21 }
 0x1ec   : > { %2003 = vmatpush.bf16.msra.mxu1 %v3351_v31  ;;  %1947 = vmatmul.bf16.vlgmr.msrb.gmra.mxu0 %v4535_v24 }
 0x1ed   : > { %942 = vrot.lane.b32.xlu0 %v4283_v37, %s3852_s12  ;;  %1010 = vrot.lane.b32.xlu2 %v4283_v37, %s3848_s14  ;;  %s5263_s12 = smov 4  }
 0x1ee   : > { %1008 = vrot.lane.b32.xlu1 %v4274_v26, %s3848_s14 }
 0x1ef   : > { %v835_v32 = vpop.permute.xlu0 %834  ;;  %v973_v33 = vpop.permute.xlu2 %972  ;;  %v3302_v34 = vld [vmem:[#allocation2 + $0x220] sm:$0xf] }
 0x1f0   : > { %843 = vst.msk [vmem:[#allocation2 + $0x5c] sm:$0xf] %vm413_vm3, %v835_v32  ;;  %v767_v35 = vpop.permute.xlu1 %766  ;;  %v3064_v56 = vld [vmem:[#allocation2 + $0x48] sm:$0xf0] }
 0x1f1   : > { %984 = vst.msk [vmem:[#allocation2 + $0x164] sm:$0xf] %vm566_vm9, %v973_v33  ;;  %v3577_v36 = vld [vmem:[#allocation2 + $0x224] sm:$0xf0] }
 0x1f2   : > { %777 = vst.msk [vmem:[#allocation2 + $0x310] sm:$0xf] %vm774_vm5, %v767_v35  ;;  %v3303_v38 = vor.u32 %v3577_v36, %v3302_v34 }
 0x1f4   : > { %1982 = vmatpush.bf16.msra.mxu0 %v3303_v38 }
 0x1f5   : > { %892 = vrot.lane.b32.xlu0 %v4274_v26, %s3839_s26  ;;  %1092 = vrot.lane.b32.xlu2 %v4248_v3, %s3856_s16 }
 0x1f6   : > { %894 = vrot.lane.b32.xlu1 %v4283_v37, %s3839_s26  ;;  %s5264_s26 = smov 127  }
 0x1f7   : > { %v977_v39 = vpop.permute.xlu0 %976  ;;  %v629_v40 = vpop.permute.xlu2 %628  ;;  %v3072_v42 = vld [vmem:[#allocation2 + $0x58] sm:$0xf0] }
 0x1f8   : > { %986 = vst.msk [vmem:[#allocation2 + $0x174] sm:$0xf] %vm566_vm9, %v977_v39  ;;  %v979_v44 = vpop.permute.xlu1 %978  ;;  %v3075_v45 = vor.u32 %v3518_v41, %v3072_v42  ;;  %v3552_v8 = vld [vmem:[#allocation2 + $0x164] sm:$0xf]  ;;  %v3010_v42 = vld [vmem:[#allocation4 + $0x40] sm:$0xf] }
 0x1f9   : > { %640 = vst.msk [vmem:[#allocation2 + $0x208] sm:$0xf] %vm638_vm4, %v629_v40  ;;  %v3422_v46 = vld [vmem:[#allocation2 + $0x310] sm:$0xf] }
 0x1fa   : > { %987 = vst.msk [vmem:[#allocation2 + $0x17c] sm:$0xf] %vm566_vm9, %v979_v44  ;;  %2036 = vmatpush.bf16.msra.mxu3 %v3075_v45  ;;  %v3423_v47 = vor.u32 %v3607_v43, %v3422_v46  ;;  %v3505_v44 = vld [vmem:[#allocation4 + $0x58] sm:$0xf0]  ;;  %v3502_v45 = vld [vmem:[#allocation4 + $0x44] sm:$0xf] }
 0x1fb   : > { %v4556_v46 = vor.u32 %v3505_v44, %v3010_v42 }
 0x1fc   : > { %2021 = vmatpush.bf16.msra.mxu2 %v3423_v47  ;;  %v3012_v47 = vld [vmem:[#allocation4 + $0x5c] sm:$0xf0] }
 0x1fd   : > { %1094 = vrot.lane.b32.xlu0 %v4257_v18, %s3856_s16  ;;  %930 = vrot.lane.b32.xlu2 %v4257_v18, %s5263_s12 }
 0x1fe   : > { %928 = vrot.lane.b32.xlu1 %v4248_v3, %s5263_s12  ;;  %1952 = vmatmul.bf16.gmra.mxu0 %v4556_v46 }
 0x1ff   : > { %v633_v48 = vpop.permute.xlu0 %632  ;;  %v961_v4 = vpop.permute.xlu2 %960  ;;  %v3554_v49 = vld [vmem:[#allocation2 + $0x174] sm:$0xf] }
 0x200   : > { %642 = vst.msk [vmem:[#allocation2 + $0x218] sm:$0xf] %vm638_vm4, %v633_v48  ;;  %v829_v50 = vpop.permute.xlu1 %828  ;;  %v3573_v15 = vld [vmem:[#allocation2 + $0x204] sm:$0xf0]  ;;  %v4558_v48 = vor.u32 %v3502_v45, %v3012_v47 }
 0x201   : > { %970 = vst.msk [vmem:[#allocation2 + $0x154] sm:$0xf] %vm549_vm12, %v961_v4  ;;  %v3216_v51 = vld [vmem:[#allocation2 + $0x178] sm:$0xf0] }
 0x202   : > { %840 = vst.msk [vmem:[#allocation2 + $0x44] sm:$0xf] %vm413_vm3, %v829_v50  ;;  %v3219_v52 = vor.u32 %v3554_v49, %v3216_v51  ;;  %1971 = vmatmul.bf16.gmra.mxu1 %v4558_v48  ;;  %vm5271_vm3 = vcmask 1043512  }
 0x204   : > { %2072 = vmatpush.bf16.msrb.mxu1 %v3219_v52 }
 0x205   : > { %996 = vrot.lane.b32.xlu0 %v4248_v3, %s5264_s26  ;;  %880 = vrot.lane.b32.xlu2 %v4248_v3, %s5265_s30 }
 0x206   : > { %998 = vrot.lane.b32.xlu1 %v4257_v18, %s5264_s26 }
 0x207   : > { %v763_v53 = vpop.permute.xlu0 %762  ;;  %v1031_v54 = vpop.permute.xlu2 %1030  ;;  %v3575_v7 = vld [vmem:[#allocation2 + $0x214] sm:$0xf0] }
 0x208   : > { %775 = vst.msk [vmem:[#allocation2 + $0x300] sm:$0xf] %vm774_vm5, %v763_v53  ;;  %v765_v58 = vpop.permute.xlu1 %764  ;;  %v3295_v59 = vor.u32 %v3575_v7, %v3294_v55  ;;  %v3550_v35 = vld [vmem:[#allocation2 + $0x154] sm:$0xf] }
 0x209   : > { %1039 = vst.msk [vmem:[#allocation2 + $0x1fc] sm:$0xf] %vm621_vm7, %v1031_v54  ;;  %v3516_v60 = vld [vmem:[#allocation2 + $0x44] sm:$0xf] }
 0x20a   : > { %776 = vst.msk [vmem:[#allocation2 + $0x308] sm:$0xf] %vm774_vm5, %v765_v58  ;;  %1983 = vmatpush.bf16.msra.mxu0 %v3295_v59  ;;  %v3067_v63 = vor.u32 %v3516_v60, %v3064_v56  ;;  %v2998_v59 = vld [vmem:[#allocation4 + $0x18] sm:$0xf]  ;;  %v3500_v60 = vld [vmem:[#allocation4 + $0x30] sm:$0xf0] }
 0x20b   : > { %v4578_v0 = vor.u32 %v3500_v60, %v2998_v59 }
 0x20c   : > { %2037 = vmatpush.bf16.msra.mxu3 %v3067_v63 }
 0x20d   : > { %882 = vrot.lane.b32.xlu0 %v4257_v18, %s5265_s30  ;;  %1090 = vrot.lane.b32.xlu2 %v4283_v37, %s3856_s16 }
 0x20e   : > { %1088 = vrot.lane.b32.xlu1 %v4274_v26, %s3856_s16  ;;  %s3787_s16 = scalar_lea.hbm %s5233_s5, 384 }
 0x20f   : > { %v975_v2 = vpop.permute.xlu0 %974  ;;  %v913_v6 = vpop.permute.xlu2 %912  ;;  %v3414_v9 = vld [vmem:[#allocation2 + $0x300] sm:$0xf] }
 0x210   : > { %985 = vst.msk [vmem:[#allocation2 + $0x16c] sm:$0xf] %vm566_vm9, %v975_v2  ;;  %v627_v10 = vpop.permute.xlu1 %626  ;;  %v3280_v38 = vld [vmem:[#allocation2 + $0x1f8] sm:$0xf0] }
 0x211   : > { %922 = vst.msk [vmem:[#allocation2 + $0xf4] sm:$0xf] %vm498_vm1, %v913_v6  ;;  %v3605_v11 = vld [vmem:[#allocation2 + $0x304] sm:$0xf0] }
 0x212   : > { %639 = vst.msk [vmem:[#allocation2 + $0x200] sm:$0xf] %vm638_vm4, %v627_v10  ;;  %v3415_v12 = vor.u32 %v3605_v11, %v3414_v9  ;;  %v2990_v9 = vld [vmem:[#allocation4 + $0x10] sm:$0xf]  ;;  %v3499_v10 = vld [vmem:[#allocation4 + $0x28] sm:$0xf0] }
 0x213   : > { %v4584_v11 = vor.u32 %v3499_v10, %v2990_v9 }
 0x214   : > { %2022 = vmatpush.bf16.msra.mxu2 %v3415_v12  ;;  %v3496_v12 = vld [vmem:[#allocation4 + $0x14] sm:$0xf] }
 0x215   : > { %924 = vrot.lane.b32.xlu0 %v4274_v26, %s5263_s12  ;;  %992 = vrot.lane.b32.xlu2 %v4274_v26, %s5264_s26 }
 0x216   : > { %926 = vrot.lane.b32.xlu1 %v4283_v37, %s5263_s12 }
 0x217   : > { %v817_v13 = vpop.permute.xlu0 %816  ;;  %v959_v5 = vpop.permute.xlu2 %958  ;;  %v3208_v14 = vld [vmem:[#allocation2 + $0x168] sm:$0xf0]  ;;  %3428 = vmatmul.msk.bf16.vlgmr.msra.gmra.mxu2 %vm1894_vm2, %v4578_v0 }
 0x218   : > { %826 = vst.msk [vmem:[#allocation2 + $0x34] sm:$0xf] %vm396_vm6, %v817_v13  ;;  %v819_v16 = vpop.permute.xlu1 %818  ;;  %v3211_v17 = vor.u32 %v3552_v8, %v3208_v14  ;;  %v3538_v54 = vld [vmem:[#allocation2 + $0xf4] sm:$0xf]  ;;  %v2992_v13 = vld [vmem:[#allocation4 + $0x2c] sm:$0xf0] }
 0x219   : > { %969 = vst.msk [vmem:[#allocation2 + $0x14c] sm:$0xf] %vm549_vm12, %v959_v5  ;;  %v3286_v19 = vld [vmem:[#allocation2 + $0x200] sm:$0xf]  ;;  %v4586_v5 = vor.u32 %v3496_v12, %v2992_v13 }
 0x21a   : > { %827 = vst.msk [vmem:[#allocation2 + $0x3c] sm:$0xf] %vm396_vm6, %v819_v16  ;;  %2073 = vmatpush.bf16.msrb.mxu1 %v3211_v17  ;;  %v3287_v22 = vor.u32 %v3573_v15, %v3286_v19 }
 0x21b   : > { %2004 = vmatmul.bf16.vlgmr.msra.gmra.mxu1 %v4586_v5 }
 0x21c   : > { %1984 = vmatpush.bf16.msra.mxu0 %v3287_v22 }
 0x21d   : > { %994 = vrot.lane.b32.xlu0 %v4283_v37, %s5264_s26  ;;  %878 = vrot.lane.b32.xlu2 %v4283_v37, %s5265_s30 }
 0x21e   : > { %876 = vrot.lane.b32.xlu1 %v4274_v26, %s5265_s30 }
 0x21f   : > { %v963_v25 = vpop.permute.xlu0 %962  ;;  %v801_v27 = vpop.permute.xlu2 %800  ;;  %v3514_v29 = vld [vmem:[#allocation2 + $0x34] sm:$0xf]  ;;  %1985 = vmatmul.bf16.vlgmr.msra.gmra.mxu0 %v4584_v11 }
 0x220   : > { %971 = vst.msk [vmem:[#allocation2 + $0x15c] sm:$0xf] %vm549_vm12, %v963_v25  ;;  %v1029_v30 = vpop.permute.xlu1 %1028  ;;  %v3192_v55 = vld [vmem:[#allocation2 + $0x148] sm:$0xf0] }
 0x221   : > { %810 = vst.msk [vmem:[#allocation2 + $0x14] sm:$0xf] %vm379_vm8, %v801_v27  ;;  %v3056_v31 = vld [vmem:[#allocation2 + $0x38] sm:$0xf0] }
 0x222   : > { %1038 = vst.msk [vmem:[#allocation2 + $0x1f4] sm:$0xf] %vm621_vm7, %v1029_v30  ;;  %v3059_v32 = vor.u32 %v3514_v29, %v3056_v31  ;;  %v3026_v29 = vld [vmem:[#allocation4 + $0x50] sm:$0xf]  ;;  %v3507_v30 = vld [vmem:[#allocation4 + $0x68] sm:$0xf0] }
 0x224   : > { %2038 = vmatpush.bf16.msra.mxu3 %v3059_v32 }
 0x225   : > { %1076 = vrot.lane.b32.xlu0 %v4248_v3, %s5266_s8  ;;  %864 = vrot.lane.b32.xlu2 %v4248_v3, %s5267_s10 }
 0x226   : > { %1078 = vrot.lane.b32.xlu1 %v4257_v18, %s5266_s8 }
 0x227   : > { %v813_v33 = vpop.permute.xlu0 %812  ;;  %v911_v34 = vpop.permute.xlu2 %910  ;;  %v3200_v36 = vld [vmem:[#allocation2 + $0x158] sm:$0xf0] }
 0x228   : > { %824 = vst.msk [vmem:[#allocation2 + $0x24] sm:$0xf] %vm396_vm6, %v813_v33  ;;  %v815_v39 = vpop.permute.xlu1 %814  ;;  %v3203_v40 = vor.u32 %v3550_v35, %v3200_v36  ;;  %v3510_v21 = vld [vmem:[#allocation2 + $0x14] sm:$0xf]  ;;  %v4606_v33 = vor.u32 %v3507_v30, %v3026_v29  ;;  %v3018_v35 = vld [vmem:[#allocation4 + $0x48] sm:$0xf] }
 0x229   : > { %921 = vst.msk [vmem:[#allocation2 + $0xec] sm:$0xf] %vm498_vm1, %v911_v34  ;;  %v3570_v41 = vld [vmem:[#allocation2 + $0x1f4] sm:$0xf] }
 0x22a   : > { %825 = vst.msk [vmem:[#allocation2 + $0x2c] sm:$0xf] %vm396_vm6, %v815_v39  ;;  %2074 = vmatpush.bf16.msrb.mxu1 %v3203_v40  ;;  %v3283_v43 = vor.u32 %v3570_v41, %v3280_v38  ;;  %3429 = vmatmul.msk.bf16.gmra.mxu2 %vm1894_vm2, %v4606_v33  ;;  %v3506_v38 = vld [vmem:[#allocation4 + $0x60] sm:$0xf0]  ;;  %v3503_v39 = vld [vmem:[#allocation4 + $0x4c] sm:$0xf] }
 0x22b   : > { %v4612_v40 = vor.u32 %v3506_v38, %v3018_v35  ;;  %v3020_v41 = vld [vmem:[#allocation4 + $0x64] sm:$0xf0] }
 0x22c   : > { %2091 = vmatpush.bf16.msrb.mxu2 %v3283_v43  ;;  %v4614_v42 = vor.u32 %v3503_v39, %v3020_v41 }
 0x22d   : > { %866 = vrot.lane.b32.xlu0 %v4257_v18, %s5267_s10  ;;  %1074 = vrot.lane.b32.xlu2 %v4283_v37, %s5266_s8 }
 0x22e   : > { %1072 = vrot.lane.b32.xlu1 %v4274_v26, %s5266_s8  ;;  %2009 = vmatmul.bf16.gmra.mxu1 %v4614_v42  ;;  %s2881_s8 = sshll.u32 %s3964_s25, 4  ;;  %s2882_s8 = int_to_ptr.vmem [resolvable:$true] %s2881_s8 }
 0x22f   : > { %v915_v4 = vpop.permute.xlu0 %914  ;;  %v1013_v49 = vpop.permute.xlu2 %1012  ;;  %v3512_v50 = vld [vmem:[#allocation2 + $0x24] sm:$0xf]  ;;  %1990 = vmatmul.bf16.gmra.mxu0 %v4612_v40 }
 0x230   : > { %923 = vst.msk [vmem:[#allocation2 + $0xfc] sm:$0xf] %vm498_vm1, %v915_v4  ;;  %v957_v51 = vpop.permute.xlu1 %956  ;;  %v3144_v22 = vld [vmem:[#allocation2 + $0xe8] sm:$0xf0] }
 0x231   : > { %1022 = vst.msk [vmem:[#allocation2 + $0x1d4] sm:$0xf] %vm604_vm10, %v1013_v49  ;;  %v3048_v52 = vld [vmem:[#allocation2 + $0x28] sm:$0xf0] }
 0x232   : > { %968 = vst.msk [vmem:[#allocation2 + $0x144] sm:$0xf] %vm549_vm12, %v957_v51  ;;  %v3051_v53 = vor.u32 %v3512_v50, %v3048_v52  ;;  %vm5280_vm12 = vcmask 1043520  }
 0x234   : > { %2039 = vmatpush.bf16.msra.mxu3 %v3051_v53 }
 0x235   : > { %860 = vrot.lane.b32.xlu0 %v4274_v26, %s5267_s10  ;;  %1060 = vrot.lane.b32.xlu2 %v4248_v3, %s3860_s7 }
 0x236   : > { %862 = vrot.lane.b32.xlu1 %v4283_v37, %s5267_s10 }
 0x237   : > { %v1025_v7 = vpop.permute.xlu0 %1024  ;;  %v799_v56 = vpop.permute.xlu2 %798  ;;  %v3152_v58 = vld [vmem:[#allocation2 + $0xf8] sm:$0xf0] }
 0x238   : > { %1036 = vst.msk [vmem:[#allocation2 + $0x1e4] sm:$0xf] %vm621_vm7, %v1025_v7  ;;  %v1027_v61 = vpop.permute.xlu1 %1026  ;;  %v3155_v63 = vor.u32 %v3538_v54, %v3152_v58  ;;  %v3566_v52 = vld [vmem:[#allocation2 + $0x1d4] sm:$0xf] }
 0x239   : > { %809 = vst.msk [vmem:[#allocation2 + $0xc] sm:$0xf] %vm379_vm8, %v799_v56  ;;  %v3548_v2 = vld [vmem:[#allocation2 + $0x144] sm:$0xf] }
 0x23a   : > { %1037 = vst.msk [vmem:[#allocation2 + $0x1ec] sm:$0xf] %vm621_vm7, %v1027_v61  ;;  %2053 = vmatpush.bf16.msrb.mxu0 %v3155_v63  ;;  %v3195_v6 = vor.u32 %v3548_v2, %v3192_v55 }
 0x23c   : > { %2075 = vmatpush.bf16.msrb.mxu1 %v3195_v6 }
 0x23d   : > { %1062 = vrot.lane.b32.xlu0 %v4257_v18, %s3860_s7  ;;  %1158 = vrot.lane.b32.xlu2 %v4257_v18, %s5268_s11 }
 0x23e   : > { %1156 = vrot.lane.b32.xlu1 %v4248_v3, %s5268_s11 }
 0x23f   : > { %v803_v8 = vpop.permute.xlu0 %802  ;;  %v941_v14 = vpop.permute.xlu2 %940  ;;  %v3568_v15 = vld [vmem:[#allocation2 + $0x1e4] sm:$0xf] }
 0x240   : > { %811 = vst.msk [vmem:[#allocation2 + $0x1c] sm:$0xf] %vm379_vm8, %v803_v8  ;;  %v909_v16 = vpop.permute.xlu1 %908  ;;  %v3032_v54 = vld [vmem:[#allocation2 + $0x8] sm:$0xf0] }
 0x241   : > { %952 = vst.msk [vmem:[#allocation2 + $0x124] sm:$0xf] %vm532_vm13, %v941_v14  ;;  %v3272_v17 = vld [vmem:[#allocation2 + $0x1e8] sm:$0xf0] }
 0x242   : > { %920 = vst.msk [vmem:[#allocation2 + $0xe4] sm:$0xf] %vm498_vm1, %v909_v16  ;;  %v3275_v19 = vor.u32 %v3568_v15, %v3272_v17  ;;  %vm5270_vm1 = vcmask 1043488  }
 0x243   : > { %vm5274_vm6 = vmmov %vm5270_vm1 }
 0x244   : > { %2092 = vmatpush.bf16.msrb.mxu2 %v3275_v19 }
 0x245   : > { %1056 = vrot.lane.b32.xlu0 %v4274_v26, %s3860_s7  ;;  %1152 = vrot.lane.b32.xlu2 %v4274_v26, %s5268_s11 }
 0x246   : > { %1058 = vrot.lane.b32.xlu1 %v4283_v37, %s3860_s7  ;;  %s5269_s7 = smov 118  }
 0x247   : > { %v945_v23 = vpop.permute.xlu0 %944  ;;  %v1011_v25 = vpop.permute.xlu2 %1010  ;;  %v3040_v27 = vld [vmem:[#allocation2 + $0x18] sm:$0xf0] }
 0x248   : > { %954 = vst.msk [vmem:[#allocation2 + $0x134] sm:$0xf] %vm532_vm13, %v945_v23  ;;  %v947_v31 = vpop.permute.xlu1 %946  ;;  %v3043_v32 = vor.u32 %v3510_v21, %v3040_v27  ;;  %v3544_v12 = vld [vmem:[#allocation2 + $0x124] sm:$0xf] }
 0x249   : > { %1021 = vst.msk [vmem:[#allocation2 + $0x1cc] sm:$0xf] %vm604_vm10, %v1011_v25  ;;  %v3536_v34 = vld [vmem:[#allocation2 + $0xe4] sm:$0xf] }
 0x24a   : > { %955 = vst.msk [vmem:[#allocation2 + $0x13c] sm:$0xf] %vm532_vm13, %v947_v31  ;;  %2040 = vmatpush.bf16.msra.mxu3 %v3043_v32  ;;  %v3147_v36 = vor.u32 %v3536_v34, %v3144_v22 }
 0x24c   : > { %2054 = vmatpush.bf16.msrb.mxu0 %v3147_v36 }
 0x24d   : > { %1154 = vrot.lane.b32.xlu0 %v4283_v37, %s5268_s11  ;;  %1046 = vrot.lane.b32.xlu2 %v4257_v18, %s3862_s9 }
 0x24e   : > { %1044 = vrot.lane.b32.xlu1 %v4248_v3, %s3862_s9 }
 0x24f   : > { %v1015_v43 = vpop.permute.xlu0 %1014  ;;  %v1093_v44 = vpop.permute.xlu2 %1092  ;;  %v3546_v45 = vld [vmem:[#allocation2 + $0x134] sm:$0xf] }
 0x250   : > { %1023 = vst.msk [vmem:[#allocation2 + $0x1dc] sm:$0xf] %vm604_vm10, %v1015_v43  ;;  %v797_v47 = vpop.permute.xlu1 %796  ;;  %v3256_v8 = vld [vmem:[#allocation2 + $0x1c8] sm:$0xf0] }
 0x251   : > { %1102 = vst.msk [vmem:[#allocation2 + $0x274] sm:$0xf] %vm689_vm11, %v1093_v44  ;;  %v3184_v4 = vld [vmem:[#allocation2 + $0x138] sm:$0xf0]  ;;  %v4681_v44 = vpop.f32.mrf.mxu0 }
 0x252   : > { %808 = vst.msk [vmem:[#allocation2 + $0x4] sm:$0xf] %vm379_vm8, %v797_v47  ;;  %v3187_v49 = vor.u32 %v3546_v45, %v3184_v4  ;;  %vm5277_vm8 = vmmov %vm5271_vm3  ;;  %v4691_v47 = vpop.f32.mrf.mxu1  ;;  %v1301_v4 = vld [vmem:[%s5230_s2 + $0x8] sm:$0xff] }
 0x254   : > { %2076 = vmatpush.bf16.msrb.mxu1 %v3187_v49 }
 0x255   : > { %1140 = vrot.lane.b32.xlu0 %v4248_v3, %s5269_s7  ;;  %1040 = vrot.lane.b32.xlu2 %v4274_v26, %s3862_s9 }
 0x256   : > { %1142 = vrot.lane.b32.xlu1 %v4257_v18, %s5269_s7 }
 0x257   : > { %v897_v50 = vpop.permute.xlu0 %896  ;;  %v931_v51 = vpop.permute.xlu2 %930  ;;  %v3264_v53 = vld [vmem:[#allocation2 + $0x1d8] sm:$0xf0] }
 0x258   : > { %906 = vst.msk [vmem:[#allocation2 + $0xd4] sm:$0xf] %vm481_vm0, %v897_v50  ;;  %v899_v55 = vpop.permute.xlu1 %898  ;;  %v3267_v7 = vor.u32 %v3566_v52, %v3264_v53  ;;  %v3586_v30 = vld [vmem:[#allocation2 + $0x274] sm:$0xf] }
 0x259   : > { %939 = vst.msk [vmem:[#allocation2 + $0x11c] sm:$0xf] %vm5270_vm1, %v931_v51  ;;  %v3508_v56 = vld [vmem:[#allocation2 + $0x4] sm:$0xf] }
 0x25a   : > { %907 = vst.msk [vmem:[#allocation2 + $0xdc] sm:$0xf] %vm481_vm0, %v899_v55  ;;  %2093 = vmatpush.bf16.msrb.mxu2 %v3267_v7  ;;  %v3035_v58 = vor.u32 %v3508_v56, %v3032_v54 }
 0x25c   : > { %2041 = vmatpush.bf16.msra.mxu3 %v3035_v58  ;;  %v4699_v58 = vpop.f32.mrf.mxu0 }
 0x25d   : > { %1042 = vrot.lane.b32.xlu0 %v4283_v37, %s3862_s9  ;;  %1138 = vrot.lane.b32.xlu2 %v4283_v37, %s5269_s7  ;;  %s5272_s9 = smov 119  }
 0x25e   : > { %1136 = vrot.lane.b32.xlu1 %v4274_v26, %s5269_s7  ;;  %s5307_s7 = sand.u32 1, %s3825_s19  }
 0x25f   : > { %v943_v59 = vpop.permute.xlu0 %942  ;;  %v881_v60 = vpop.permute.xlu2 %880  ;;  %v3534_v61 = vld [vmem:[#allocation2 + $0xd4] sm:$0xf]  ;;  %2042 = vmatmul.bf16.vlgmr.msra.gmra.mxu3 %v4370_v57  ;;  %v3863_v57 = vmov 0  }
 0x260   : > { %953 = vst.msk [vmem:[#allocation2 + $0x12c] sm:$0xf] %vm532_vm13, %v943_v59  ;;  %v1009_v63 = vpop.permute.xlu1 %1008  ;;  %3706 = vset.pattern.permute.xlu2 %v3863_v57  ;;  %3705 = vset.pattern.permute.xlu1 %v3863_v57  ;;  %v3168_v32 = vld [vmem:[#allocation2 + $0x118] sm:$0xf0]  ;;  %vm5282_vm13 = vcmask 994304  }
 0x261   : > { %890 = vst.msk [vmem:[#allocation2 + $0xb4] sm:$0xf] %vm5271_vm3, %v881_v60  ;;  %v3136_v2 = vld [vmem:[#allocation2 + $0xd8] sm:$0xf0]  ;;  %3704 = vset.pattern.permute.xlu0 %v3863_v57  ;;  %v4704_v60 = vpop.f32.mrf.mxu1 }
 0x262   : > { %1020 = vst.msk [vmem:[#allocation2 + $0x1c4] sm:$0xf] %vm604_vm10, %v1009_v63  ;;  %v3139_v6 = vor.u32 %v3534_v61, %v3136_v2  ;;  %vm5279_vm10 = vmmov %vm5271_vm3  ;;  %v1303_v59 = vld [vmem:[%s5230_s2 + $0x18] sm:$0xff] }
 0x264   : > { %2055 = vmatpush.bf16.msrb.mxu0 %v3139_v6 }
 0x265   : > { %1124 = vrot.lane.b32.xlu0 %v4248_v3, %s5272_s9  ;;  %1172 = vrot.lane.b32.xlu2 %v4248_v3, %s3861_s6 }
 0x266   : > { %1126 = vrot.lane.b32.xlu1 %v4257_v18, %s5272_s9 }
 0x267   : > { %v893_v9 = vpop.permute.xlu0 %892  ;;  %v1091_v10 = vpop.permute.xlu2 %1090  ;;  %v3176_v13 = vld [vmem:[#allocation2 + $0x128] sm:$0xf0] }
 0x268   : > { %904 = vst.msk [vmem:[#allocation2 + $0xc4] sm:$0xf] %vm481_vm0, %v893_v9  ;;  %v895_v14 = vpop.permute.xlu1 %894  ;;  %v3179_v15 = vor.u32 %v3544_v12, %v3176_v13  ;;  %v3530_v51 = vld [vmem:[#allocation2 + $0xb4] sm:$0xf] }
 0x269   : > { %1101 = vst.msk [vmem:[#allocation2 + $0x26c] sm:$0xf] %vm689_vm11, %v1091_v10  ;;  %v3564_v16 = vld [vmem:[#allocation2 + $0x1c4] sm:$0xf]  ;;  %v4709_v10 = vpop.f32.mrf.mxu0  ;;  %v4711_v12 = vpop.f32.mrf.mxu1 }
 0x26a   : > { %905 = vst.msk [vmem:[#allocation2 + $0xcc] sm:$0xf] %vm481_vm0, %v895_v14  ;;  %2077 = vmatpush.bf16.msrb.mxu1 %v3179_v15  ;;  %v3259_v17 = vor.u32 %v3564_v16, %v3256_v8  ;;  %vm5273_vm0 = vcmask 1035264  }
 0x26b   : > { %vm5276_vm7 = vmmov %vm5273_vm0 }
 0x26c   : > { %2094 = vmatpush.bf16.msrb.mxu2 %v3259_v17  ;;  %vm5278_vm9 = vmmov %vm5273_vm0 }
 0x26d   : > { %1174 = vrot.lane.b32.xlu0 %v4257_v18, %s3861_s6  ;;  %1122 = vrot.lane.b32.xlu2 %v4283_v37, %s5272_s9  ;;  %vm5283_vm3 = vmmov %vm5273_vm0 }
 0x26e   : > { %1120 = vrot.lane.b32.xlu1 %v4274_v26, %s5272_s9  ;;  %s2868_s9 = scalar_lea.sflag [#allocation6], %s5307_s7 }
 0x26f   : > { %v1095_v19 = vpop.permute.xlu0 %1094  ;;  %v993_v21 = vpop.permute.xlu2 %992  ;;  %v3532_v22 = vld [vmem:[#allocation2 + $0xc4] sm:$0xf]  ;;  %2047 = vmatmul.bf16.gmra.mxu3 %v4514_v1 }
 0x270   : > { %1103 = vst.msk [vmem:[#allocation2 + $0x27c] sm:$0xf] %vm689_vm11, %v1095_v19  ;;  %v929_v23 = vpop.permute.xlu1 %928  ;;  %v3336_v53 = vld [vmem:[#allocation2 + $0x268] sm:$0xf0] }
 0x271   : > { %1004 = vst.msk [vmem:[#allocation2 + $0x1a4] sm:$0xf] %vm5273_vm0, %v993_v21  ;;  %v3128_v25 = vld [vmem:[#allocation2 + $0xc8] sm:$0xf0]  ;;  %vm5284_vm0 = vmmov %vm5277_vm8  ;;  %v3558_v21 = vld [vmem:[#allocation2 + $0x194] sm:$0xf] }
 0x272   : > { %938 = vst.msk [vmem:[#allocation2 + $0x114] sm:$0xf] %vm5274_vm6, %v929_v23  ;;  %v3131_v27 = vor.u32 %v3532_v22, %v3128_v25  ;;  %vm5285_vm6 = vmmov %vm5282_vm13  ;;  %v3232_v22 = vld [vmem:[#allocation2 + $0x198] sm:$0xf0] }
 0x274   : > { %2056 = vmatpush.bf16.msrb.mxu0 %v3131_v27  ;;  %v3235_v27 = vor.u32 %v3558_v21, %v3232_v22 }
 0x275   : > { %1168 = vrot.lane.b32.xlu0 %v4274_v26, %s3861_s6  ;;  %1108 = vrot.lane.b32.xlu2 %v4248_v3, %s5275_s13 }
 0x276   : > { %1170 = vrot.lane.b32.xlu1 %v4283_v37, %s3861_s6 }
 0x277   : > { %v997_v1 = vpop.permute.xlu0 %996  ;;  %v879_v29 = vpop.permute.xlu2 %878  ;;  %v3344_v31 = vld [vmem:[#allocation2 + $0x278] sm:$0xf0] }
 0x278   : > { %1006 = vst.msk [vmem:[#allocation2 + $0x1b4] sm:$0xf] %vm5276_vm7, %v997_v1  ;;  %v999_v34 = vpop.permute.xlu1 %998  ;;  %v3347_v35 = vor.u32 %v3586_v30, %v3344_v31  ;;  %v3560_v14 = vld [vmem:[#allocation2 + $0x1a4] sm:$0xf]  ;;  %vm5286_vm7 = vcmask 953344   ;;  %v4717_v30 = vpop.f32.mrf.mxu0 }
 0x279   : > { %889 = vst.msk [vmem:[#allocation2 + $0xac] sm:$0xf] %vm5277_vm8, %v879_v29  ;;  %v3542_v36 = vld [vmem:[#allocation2 + $0x114] sm:$0xf]  ;;  %vm5287_vm8 = vmmov %vm5285_vm6  ;;  %v3556_v1 = vld [vmem:[#allocation2 + $0x184] sm:$0xf] }
 0x27a   : > { %1007 = vst.msk [vmem:[#allocation2 + $0x1bc] sm:$0xf] %vm5278_vm9, %v999_v34  ;;  %2110 = vmatpush.bf16.msrb.mxu3 %v3347_v35  ;;  %v3171_v38 = vor.u32 %v3542_v36, %v3168_v32  ;;  %v3224_v29 = vld [vmem:[#allocation2 + $0x188] sm:$0xf0]  ;;  %vm5288_vm9 = vmmov %vm5280_vm12  ;;  %v4720_v36 = vpop.f32.mrf.mxu1 }
 0x27c   : > { %2078 = vmatpush.bf16.msrb.mxu1 %v3171_v38 }
 0x27d   : > { %1110 = vrot.lane.b32.xlu0 %v4257_v18, %s5275_s13  ;;  %1106 = vrot.lane.b32.xlu2 %v4283_v37, %s5275_s13  ;;  %v1300_v37 = vld [vmem:[%s5230_s2] sm:$0xff] }
 0x27e   : > { %1104 = vrot.lane.b32.xlu1 %v4274_v26, %s5275_s13  ;;  %v1302_v26 = vld [vmem:[%s5230_s2 + $0x10] sm:$0xff] }
 0x27f   : > { %v883_v3 = vpop.permute.xlu0 %882  ;;  %v865_v39 = vpop.permute.xlu2 %864  ;;  %v3562_v41 = vld [vmem:[#allocation2 + $0x1b4] sm:$0xf] }
 0x280   : > { %891 = vst.msk [vmem:[#allocation2 + $0xbc] sm:$0xf] %vm5279_vm10, %v883_v3  ;;  %v1089_v43 = vpop.permute.xlu1 %1088  ;;  %v3112_v16 = vld [vmem:[#allocation2 + $0xa8] sm:$0xf0]  ;;  %vm5289_vm10 = vmmov %vm5286_vm7 }
 0x281   : > { %874 = vst.msk [vmem:[#allocation2 + $0x94] sm:$0xf] %vm5280_vm12, %v865_v39  ;;  %v3248_v45 = vld [vmem:[#allocation2 + $0x1b8] sm:$0xf0]  ;;  %vm5290_vm12 = vmmov %vm5285_vm6 }
 0x282   : > { %1100 = vst.msk [vmem:[#allocation2 + $0x264] sm:$0xf] %vm689_vm11, %v1089_v43  ;;  %v3251_v18 = vor.u32 %v3562_v41, %v3248_v45  ;;  %vm5281_vm11 = vmmov %vm5270_vm1 }
 0x284   : > { %2095 = vmatpush.bf16.msrb.mxu2 %v3251_v18 }
 0x285   : > { %1306 = vperm.xlu0 %3704, %v1300_v37   ;;  %1316 = vperm.xlu2 %3706, %v1302_v26  }
 0x286   : > { %1311 = vperm.xlu1 %3705, %v1301_v4   ;;  %v4727_v4 = vpop.f32.mrf.mxu0 }
 0x287   : > { %v925_v49 = vpop.permute.xlu0 %924  ;;  %v1075_v50 = vpop.permute.xlu2 %1074  ;;  %v3120_v52 = vld [vmem:[#allocation2 + $0xb8] sm:$0xf0] }
 0x288   : > { %936 = vst.msk [vmem:[#allocation2 + $0x104] sm:$0xf] %vm5281_vm11, %v925_v49  ;;  %v927_v54 = vpop.permute.xlu1 %926  ;;  %v3123_v55 = vor.u32 %v3530_v51, %v3120_v52  ;;  %v3526_v43 = vld [vmem:[#allocation2 + $0x94] sm:$0xf]  ;;  %vm5291_vm11 = vmmov %vm5288_vm9 }
 0x289   : > { %1085 = vst.msk [vmem:[#allocation2 + $0x24c] sm:$0xf] %vm5282_vm13, %v1075_v50  ;;  %v3584_v7 = vld [vmem:[#allocation2 + $0x264] sm:$0xf]  ;;  %vm5292_vm13 = vmmov %vm5288_vm9  ;;  %v4731_v50 = vpop.f32.mrf.mxu1 }
 0x28a   : > { %937 = vst.msk [vmem:[#allocation2 + $0x10c] sm:$0xf] %vm5270_vm1, %v927_v54  ;;  %2057 = vmatpush.bf16.msrb.mxu0 %v3123_v55  ;;  %v3339_v56 = vor.u32 %v3584_v7, %v3336_v53  ;;  %vm5293_vm1 = vmmov %vm5286_vm7 }
 0x28c   : > { %2111 = vmatpush.bf16.msrb.mxu3 %v3339_v56 }
 0x28e   : > { %1321 = vperm.xlu1 %3705, %v1303_v59   ;;  %v4736_v7 = vpop.f32.mrf.mxu0 }
 0x28f   : > { %v995_v61 = vpop.permute.xlu0 %994  ;;  %v1061_v63 = vpop.permute.xlu2 %1060  ;;  %v3540_v2 = vld [vmem:[#allocation2 + $0x104] sm:$0xf] }
 0x290   : > { %1005 = vst.msk [vmem:[#allocation2 + $0x1ac] sm:$0xf] %vm5283_vm3, %v995_v61  ;;  %v877_v6 = vpop.permute.xlu1 %876  ;;  %v3320_v18 = vld [vmem:[#allocation2 + $0x248] sm:$0xf0]  ;;  %vm5294_vm3 = vcmask 961536  }
 0x291   : > { %1070 = vst.msk [vmem:[#allocation2 + $0x234] sm:$0xf] %vm655_vm14, %v1061_v63  ;;  %v3160_v57 = vld [vmem:[#allocation2 + $0x108] sm:$0xf0]  ;;  %v4738_v56 = vpop.f32.mrf.mxu1 }
 0x292   : > { %888 = vst.msk [vmem:[#allocation2 + $0xa4] sm:$0xf] %vm5284_vm0, %v877_v6  ;;  %v3163_v9 = vor.u32 %v3540_v2, %v3160_v57  ;;  %vm5295_vm0 = vmmov %vm5293_vm1 }
 0x294   : > { %2079 = vmatpush.bf16.msrb.mxu1 %v3163_v9 }
 0x297   : > { %v1077_v13 = vpop.permute.xlu0 %1076  ;;  %v1159_v8 = vpop.permute.xlu2 %1158  ;;  %v3240_v15 = vld [vmem:[#allocation2 + $0x1a8] sm:$0xf0]  ;;  %2080 = vmatmul.bf16.vlgmr.msrb.gmra.mxu1 %v4535_v24  ;;  %v3227_v24 = vor.u32 %v3556_v1, %v3224_v29 }
 0x298   : > { %1086 = vst.msk [vmem:[#allocation2 + $0x254] sm:$0xf] %vm5285_vm6, %v1077_v13  ;;  %v1079_v17 = vpop.permute.xlu1 %1078  ;;  %v3243_v19 = vor.u32 %v3560_v14, %v3240_v15  ;;  %v3578_v63 = vld [vmem:[#allocation2 + $0x234] sm:$0xf]  ;;  %vm5297_vm6 = vcmask 969728  }
 0x299   : > { %1167 = vst.msk [vmem:[#allocation2 + $0x2fc] sm:$0xf] %vm5286_vm7, %v1159_v8  ;;  %v3528_v23 = vld [vmem:[#allocation2 + $0xa4] sm:$0xf]  ;;  %v4747_v14 = vpop.f32.mrf.mxu1  ;;  %vm5298_vm7 = vmmov %vm5294_vm3 }
 0x29a   : > { %1087 = vst.msk [vmem:[#allocation2 + $0x25c] sm:$0xf] %vm5287_vm8, %v1079_v17  ;;  %2096 = vmatpush.bf16.msrb.mxu2 %v3243_v19  ;;  %v3115_v25 = vor.u32 %v3528_v23, %v3112_v16  ;;  %vm5299_vm8 = vmmov %vm5294_vm3 }
 0x29c   : > { %2058 = vmatpush.bf16.msrb.mxu0 %v3115_v25 }
 0x29e   : > { %2097 = vmatpush.bf16.msrb.mxu2 %v3235_v27 }
 0x29f   : > { %v867_v31 = vpop.permute.xlu0 %866  ;;  %v1153_v32 = vpop.permute.xlu2 %1152  ;;  %v3582_v34 = vld [vmem:[#allocation2 + $0x254] sm:$0xf] }
 0x2a0   : > { %875 = vst.msk [vmem:[#allocation2 + $0x9c] sm:$0xf] %vm5288_vm9, %v867_v31  ;;  %v1073_v35 = vpop.permute.xlu1 %1072  ;;  %v3408_v6 = vld [vmem:[#allocation2 + $0x2f8] sm:$0xf0] }
 0x2a1   : > { %1164 = vst.msk [vmem:[#allocation2 + $0x2e4] sm:$0xf] %vm5289_vm10, %v1153_v32  ;;  %v3328_v38 = vld [vmem:[#allocation2 + $0x258] sm:$0xf0] }
 0x2a2   : > { %1084 = vst.msk [vmem:[#allocation2 + $0x244] sm:$0xf] %vm5290_vm12, %v1073_v35  ;;  %v3331_v3 = vor.u32 %v3582_v34, %v3328_v38  ;;  %2098 = vmatpush.bf16.msrb.mxu2 %v3227_v24  ;;  %v4757_v34 = vpop.f32.mrf.mxu1 }
 0x2a4   : > { %2112 = vmatpush.bf16.msrb.mxu3 %v3331_v3 }
 0x2a5   : > { %2099 = vmatmul.bf16.vlgmr.msrb.gmra.mxu2 %v4466_v20 }
 0x2a7   : > { %v861_v39 = vpop.permute.xlu0 %860  ;;  %v1047_v41 = vpop.permute.xlu2 %1046  ;;  %v3104_v45 = vld [vmem:[#allocation2 + $0x98] sm:$0xf0]  ;;  %2085 = vmatmul.bf16.gmra.mxu1 %v4556_v46 }
 0x2a8   : > { %872 = vst.msk [vmem:[#allocation2 + $0x84] sm:$0xf] %vm5291_vm11, %v861_v39  ;;  %v863_v37 = vpop.permute.xlu1 %862  ;;  %v3107_v26 = vor.u32 %v3526_v43, %v3104_v45  ;;  %v3600_v27 = vld [vmem:[#allocation2 + $0x2e4] sm:$0xf]  ;;  %v2646_v45 = vld [vmem:[%s5232_s4 + $0x10] sm:$0xff] }
 0x2a9   : > { %1055 = vst.msk [vmem:[#allocation2 + $0x21c] sm:$0xf] %vm638_vm4, %v1047_v41  ;;  %v3580_v49 = vld [vmem:[#allocation2 + $0x244] sm:$0xf]  ;;  %2668 = vperm.xlu1 %3705, %v2646_v45  }
 0x2aa   : > { %873 = vst.msk [vmem:[#allocation2 + $0x8c] sm:$0xf] %vm5292_vm13, %v863_v37  ;;  %2059 = vmatpush.bf16.msrb.mxu0 %v3107_v26  ;;  %v3323_v20 = vor.u32 %v3580_v49, %v3320_v18  ;;  %v4768_v37 = vpop.f32.mrf.mxu1  ;;  %v4770_v26 = vpop.f32.mrf.mxu2  ;;  %v2645_v49 = vld [vmem:[%s5232_s4 + $0x8] sm:$0xff] }
 0x2ab   : > { %2663 = vperm.xlu0 %3704, %v2645_v49  }
 0x2ac   : > { %2113 = vmatpush.bf16.msrb.mxu3 %v3323_v20 }
 0x2af   : > { %v1063_v51 = vpop.permute.xlu0 %1062  ;;  %v1041_v52 = vpop.permute.xlu2 %1040  ;;  %v3524_v53 = vld [vmem:[#allocation2 + $0x84] sm:$0xf] }
 0x2b0   : > { %1071 = vst.msk [vmem:[#allocation2 + $0x23c] sm:$0xf] %vm655_vm14, %v1063_v51  ;;  %v1157_v46 = vpop.permute.xlu1 %1156  ;;  %v3296_v29 = vld [vmem:[#allocation2 + $0x218] sm:$0xf0] }
 0x2b1   : > { %1052 = vst.msk [vmem:[#allocation2 + $0x204] sm:$0xf] %vm638_vm4, %v1041_v52  ;;  %v3096_v54 = vld [vmem:[#allocation2 + $0x88] sm:$0xf0] }
 0x2b2   : > { %1166 = vst.msk [vmem:[#allocation2 + $0x2f4] sm:$0xf] %vm5293_vm1, %v1157_v46  ;;  %v3099_v55 = vor.u32 %v3524_v53, %v3096_v54 }
 0x2b4   : > { %2060 = vmatpush.bf16.msrb.mxu0 %v3099_v55 }
 0x2b5   : > { %2104 = vmatmul.bf16.gmra.mxu2 %v4558_v48  ;;  %v4745_v48 = vpop.f32.mrf.mxu0 }
 0x2b7   : > { %v1057_v59 = vpop.permute.xlu0 %1056  ;;  %v1139_v61 = vpop.permute.xlu2 %1138  ;;  %v3312_v2 = vld [vmem:[#allocation2 + $0x238] sm:$0xf0]  ;;  %2061 = vmatmul.bf16.vlgmr.msrb.gmra.mxu0 %v4340_v28 }
 0x2b8   : > { %1068 = vst.msk [vmem:[#allocation2 + $0x224] sm:$0xf] %vm655_vm14, %v1057_v59  ;;  %v1059_v57 = vpop.permute.xlu1 %1058  ;;  %v3315_v9 = vor.u32 %v3578_v63, %v3312_v2  ;;  %v3572_v52 = vld [vmem:[#allocation2 + $0x204] sm:$0xf] }
 0x2b9   : > { %1149 = vst.msk [vmem:[#allocation2 + $0x2cc] sm:$0xf] %vm5294_vm3, %v1139_v61  ;;  %v3602_v13 = vld [vmem:[#allocation2 + $0x2f4] sm:$0xf]  ;;  %v2649_v61 = vld [vmem:[%s5232_s4 + $0x28] sm:$0xff] }
 0x2ba   : > { %1069 = vst.msk [vmem:[#allocation2 + $0x22c] sm:$0xf] %vm655_vm14, %v1059_v57  ;;  %2114 = vmatpush.bf16.msrb.mxu3 %v3315_v9  ;;  %v3411_v8 = vor.u32 %v3602_v13, %v3408_v6  ;;  %vm5296_vm14 = vmmov %vm5294_vm3  ;;  %2683 = vperm.xlu1 %3705, %v2649_v61   ;;  %v4784_v6 = vpop.f32.mrf.mxu1  ;;  %v2648_v57 = vld [vmem:[%s5232_s4 + $0x20] sm:$0xff]  ;;  %v4789_v9 = vpop.f32.mrf.mxu2 }
 0x2bb   : > { %2678 = vperm.xlu0 %3704, %v2648_v57  }
 0x2bc   : > { %2129 = vmatpush.bf16.msra.mxu0 %v3411_v8  ;;  %3614 = vmatpush.bf16.msra.mxu2 %v3411_v8 }
 0x2bd   : > { %v4752_v22 = vpop.f32.mrf.mxu0 }
 0x2bf   : > { %v1155_v15 = vpop.permute.xlu0 %1154  ;;  %v1173_v16 = vpop.permute.xlu2 %1172  ;;  %v3576_v28 = vld [vmem:[#allocation2 + $0x224] sm:$0xf] }
 0x2c0   : > { %1165 = vst.msk [vmem:[#allocation2 + $0x2ec] sm:$0xf] %vm5295_vm0, %v1155_v15  ;;  %v1045_v17 = vpop.permute.xlu1 %1044  ;;  %v3384_v46 = vld [vmem:[#allocation2 + $0x2c8] sm:$0xf0] }
 0x2c1   : > { %1182 = vst.msk [vmem:[#allocation2 + $0x314] sm:$0xf] %vm774_vm5, %v1173_v16  ;;  %v3304_v19 = vld [vmem:[#allocation2 + $0x228] sm:$0xf0] }
 0x2c2   : > { %1054 = vst.msk [vmem:[#allocation2 + $0x214] sm:$0xf] %vm638_vm4, %v1045_v17  ;;  %v3307_v21 = vor.u32 %v3576_v28, %v3304_v19  ;;  %v2652_v17 = vld [vmem:[%s5232_s4 + $0x40] sm:$0xff] }
 0x2c3   : > { %2698 = vperm.xlu1 %3705, %v2652_v17  }
 0x2c4   : > { %2115 = vmatpush.bf16.msrb.mxu3 %v3307_v21 }
 0x2c5   : > { %v4762_v43 = vpop.f32.mrf.mxu0 }
 0x2c7   : > { %v1141_v23 = vpop.permute.xlu0 %1140  ;;  %v1123_v25 = vpop.permute.xlu2 %1122  ;;  %v3400_v1 = vld [vmem:[#allocation2 + $0x2e8] sm:$0xf0]  ;;  %2066 = vmatmul.bf16.gmra.mxu0 %v4445_v62 }
 0x2c8   : > { %1150 = vst.msk [vmem:[#allocation2 + $0x2d4] sm:$0xf] %vm5296_vm14, %v1141_v23  ;;  %v1143_v24 = vpop.permute.xlu1 %1142  ;;  %v3403_v31 = vor.u32 %v3600_v27, %v3400_v1 }
 0x2c9   : > { %1133 = vst.msk [vmem:[#allocation2 + $0x2ac] sm:$0xf] %vm5297_vm6, %v1123_v25  ;;  %v3574_v32 = vld [vmem:[#allocation2 + $0x214] sm:$0xf] }
 0x2ca   : > { %1151 = vst.msk [vmem:[#allocation2 + $0x2dc] sm:$0xf] %vm5298_vm7, %v1143_v24  ;;  %2130 = vmatpush.bf16.msra.mxu0 %v3403_v31  ;;  %3615 = vmatpush.bf16.msra.mxu2 %v3403_v31  ;;  %v3299_v35 = vor.u32 %v3574_v32, %v3296_v29  ;;  %v2010_v24 = vpop.f32.mrf.mxu1  ;;  %v3606_v31 = vld [vmem:[#allocation2 + $0x314] sm:$0xf] }
 0x2cc   : > { %2116 = vmatpush.bf16.msrb.mxu3 %v3299_v35 }
 0x2cd   : > { %v4781_v2 = vpop.f32.mrf.mxu0 }
 0x2cf   : > { %v1043_v38 = vpop.permute.xlu0 %1042  ;;  %v1109_v3 = vpop.permute.xlu2 %1108  ;;  %v3598_v39 = vld [vmem:[#allocation2 + $0x2d4] sm:$0xf] }
 0x2d0   : > { %1053 = vst.msk [vmem:[#allocation2 + $0x20c] sm:$0xf] %vm638_vm4, %v1043_v38  ;;  %v1137_v62 = vpop.permute.xlu1 %1136  ;;  %vm5300_vm4 = vmmov %vm5297_vm6  ;;  %v3368_v1 = vld [vmem:[#allocation2 + $0x2a8] sm:$0xf0] }
 0x2d1   : > { %1118 = vst.msk [vmem:[#allocation2 + $0x294] sm:$0xf] %vm706_vm15, %v1109_v3  ;;  %v3392_v41 = vld [vmem:[#allocation2 + $0x2d8] sm:$0xf0]  ;;  %vm5301_vm9 = vmmov %vm5300_vm4 }
 0x2d2   : > { %1148 = vst.msk [vmem:[#allocation2 + $0x2c4] sm:$0xf] %vm5299_vm8, %v1137_v62  ;;  %v3395_v18 = vor.u32 %v3598_v39, %v3392_v41  ;;  %vm5302_vm10 = vmmov %vm5300_vm4 }
 0x2d4   : > { %2131 = vmatpush.bf16.msra.mxu0 %v3395_v18  ;;  %3616 = vmatpush.bf16.msra.mxu2 %v3395_v18 }
 0x2d5   : > { %v1991_v25 = vpop.f32.mrf.mxu0 }
 0x2d7   : > { %v1125_v20 = vpop.permute.xlu0 %1124  ;;  %v1107_v51 = vpop.permute.xlu2 %1106  ;;  %v3288_v53 = vld [vmem:[#allocation2 + $0x208] sm:$0xf0] }
 0x2d8   : > { %1134 = vst.msk [vmem:[#allocation2 + $0x2b4] sm:$0xf] %vm5300_vm4, %v1125_v20  ;;  %v1127_v54 = vpop.permute.xlu1 %1126  ;;  %v3291_v55 = vor.u32 %v3572_v52, %v3288_v53  ;;  %v2654_v53 = vld [vmem:[%s5232_s4 + $0x50] sm:$0xff] }
 0x2d9   : > { %1117 = vst.msk [vmem:[#allocation2 + $0x28c] sm:$0xf] %vm706_vm15, %v1107_v51  ;;  %v3596_v59 = vld [vmem:[#allocation2 + $0x2c4] sm:$0xf] }
 0x2da   : > { %1135 = vst.msk [vmem:[#allocation2 + $0x2bc] sm:$0xf] %vm5301_vm9, %v1127_v54  ;;  %2117 = vmatpush.bf16.msrb.mxu3 %v3291_v55  ;;  %v3387_v63 = vor.u32 %v3596_v59, %v3384_v46  ;;  %v2644_v54 = vld [vmem:[%s5232_s4] sm:$0xff] }
 0x2db   : > { %2658 = vperm.xlu2 %3706, %v2644_v54  }
 0x2dc   : > { %2132 = vmatpush.bf16.msra.mxu0 %v3387_v63  ;;  %3617 = vmatpush.bf16.msra.mxu2 %v3387_v63  ;;  %v3590_v63 = vld [vmem:[#allocation2 + $0x294] sm:$0xf] }
 0x2dd   : > { %2118 = vmatmul.bf16.vlgmr.msrb.gmra.mxu3 %v4584_v11 }
 0x2df   : > { %v1175_v13 = vpop.permute.xlu0 %1174  ;;  %v4791_v8 = vpop.permute.xlu2 %1316  ;;  %v3594_v15 = vld [vmem:[#allocation2 + $0x2b4] sm:$0xf] }
 0x2e0   : > { %1183 = vst.msk [vmem:[#allocation2 + $0x31c] sm:$0xf] %vm774_vm5, %v1175_v13  ;;  %v1916_v16 = vadd.f32 %v4709_v10, %v4791_v8  ;;  %v1121_v28 = vpop.permute.xlu1 %1120  ;;  %v2651_v10 = vld [vmem:[%s5232_s4 + $0x38] sm:$0xff]  ;;  %v3352_v13 = vld [vmem:[#allocation2 + $0x288] sm:$0xf0] }
 0x2e1   : > { %1132 = vst.msk [vmem:[#allocation2 + $0x2a4] sm:$0xf] %vm5302_vm10, %v1121_v28  ;;  %v3376_v11 = vld [vmem:[#allocation2 + $0x2b8] sm:$0xf0]  ;;  %2693 = vperm.xlu0 %3704, %v2651_v10  }
 0x2e2   : > { %v1935_v19 = vadd.f32 %v4711_v12, %v1916_v16  ;;  %v3379_v21 = vor.u32 %v3594_v15, %v3376_v11 }
 0x2e4   : > { %2133 = vmatpush.bf16.msra.mxu0 %v3379_v21  ;;  %3618 = vmatpush.bf16.msra.mxu2 %v3379_v21  ;;  %v1954_v23 = vadd.f32 %v4745_v48, %v1935_v19  ;;  %v2029_v48 = vpop.f32.mrf.mxu2 }
 0x2e6   : > { %v1973_v27 = vadd.f32 %v4747_v14, %v1954_v23  ;;  %v2655_v14 = vld [vmem:[%s5232_s4 + $0x58] sm:$0xff] }
 0x2e7   : > { %v1169_v29 = vpop.permute.xlu0 %1168  ;;  %v3424_v32 = vld [vmem:[#allocation2 + $0x318] sm:$0xf0]  ;;  %2713 = vperm.xlu1 %3705, %v2655_v14  }
 0x2e8   : > { %1180 = vst.msk [vmem:[#allocation2 + $0x304] sm:$0xf] %vm774_vm5, %v1169_v29  ;;  %v1992_v12 = vadd.f32 %v1991_v25, %v1973_v27  ;;  %v1171_v35 = vpop.permute.xlu1 %1170  ;;  %v3427_v38 = vor.u32 %v3606_v31, %v3424_v32  ;;  %v3592_v3 = vld [vmem:[#allocation2 + $0x2a4] sm:$0xf]  ;;  %v2647_v25 = vld [vmem:[%s5232_s4 + $0x18] sm:$0xff] }
 0x2e9   : > { %1181 = vst.msk [vmem:[#allocation2 + $0x30c] sm:$0xf] %vm774_vm5, %v1171_v35  ;;  %v3371_v39 = vor.u32 %v3592_v3, %v3368_v1  ;;  %2708 = vperm.xlu0 %3704, %v2654_v53   ;;  %2673 = vperm.xlu2 %3706, %v2647_v25   ;;  %v2012_v3 = vpop.f32.mrf.mxu1 }
 0x2ea   : > { %v2011_v62 = vadd.f32 %v2010_v24, %v1992_v12  ;;  %2154 = vmatpush.bf16.msra.mxu1 %v3427_v38 }
 0x2eb   : > { %2134 = vmatpush.bf16.msra.mxu0 %v3371_v39  ;;  %3619 = vmatpush.bf16.msra.mxu2 %v3371_v39 }
 0x2ec   : > { %v4811_v41 = vadd.f32 %v2029_v48, %v2011_v62  ;;  %v2031_v14 = vpop.f32.mrf.mxu2 }
 0x2ed   : > { %2123 = vmatmul.bf16.gmra.mxu3 %v4612_v40 }
 0x2ee   : > { %v4815_v45 = vmul.f32 0.70710677, %v4811_v41 }
 0x2ef   : > { %v1111_v18 = vpop.permute.xlu0 %1110  ;;  %v3604_v49 = vld [vmem:[#allocation2 + $0x304] sm:$0xf] }
 0x2f0   : > { %v2343_v20 = vmul.f32 %v4815_v45, %v4815_v45  ;;  %1119 = vst.msk [vmem:[#allocation2 + $0x29c] sm:$0xf] %vm706_vm15, %v1111_v18  ;;  %v1105_v51 = vpop.permute.xlu1 %1104  ;;  %v3416_v52 = vld [vmem:[#allocation2 + $0x308] sm:$0xf0] }
 0x2f1   : > { %1116 = vst.msk [vmem:[#allocation2 + $0x284] sm:$0xf] %vm706_vm15, %v1105_v51  ;;  %v3419_v46 = vor.u32 %v3604_v49, %v3416_v52 }
 0x2f2   : > { %v4824_v40 = vmin.f32 %v2343_v20, 16.0 }
 0x2f3   : > { %2155 = vmatpush.bf16.msra.mxu1 %v3419_v46 }
 0x2f4   : > { %v2356_v55 = vmul.f32 3.8918573e-05, %v4824_v40 }
 0x2f6   : > { %v2357_v59 = vadd.f32 0.001143296, %v2356_v55  ;;  %3430 = vmatmul.msk.bf16.vlgmr.msra.gmra.mxu1 %vm1894_vm2, %v4578_v0 }
 0x2f7   : > { %v4832_v61 = vpop.permute.xlu0 %1306  ;;  %v3360_v57 = vld [vmem:[#allocation2 + $0x298] sm:$0xf0] }
 0x2f8   : > { %v2358_v15 = vmul.f32 %v2357_v59, %v4824_v40  ;;  %v1911_v16 = vadd.f32 %v4681_v44, %v4832_v61  ;;  %v4837_v28 = vpop.permute.xlu1 %1311  ;;  %v3363_v11 = vor.u32 %v3590_v63, %v3360_v57  ;;  %v3588_v17 = vld [vmem:[#allocation2 + $0x284] sm:$0xf] }
 0x2f9   : > { %v1913_v19 = vadd.f32 %v4699_v58, %v4837_v28  ;;  %v3355_v23 = vor.u32 %v3588_v17, %v3352_v13 }
 0x2fa   : > { %v2359_v21 = vadd.f32 0.014752088, %v2358_v15  ;;  %v1930_v0 = vadd.f32 %v4691_v47, %v1911_v16  ;;  %2135 = vmatpush.bf16.msra.mxu0 %v3363_v11  ;;  %3620 = vmatpush.bf16.msra.mxu2 %v3363_v11 }
 0x2fb   : > { %v1932_v10 = vadd.f32 %v4704_v60, %v1913_v19 }
 0x2fc   : > { %v2360_v44 = vmul.f32 %v2359_v21, %v4824_v40  ;;  %v1949_v27 = vadd.f32 %v4727_v4, %v1930_v0 }
 0x2fd   : > { %v1951_v1 = vadd.f32 %v4736_v7, %v1932_v10 }
 0x2fe   : > { %v2361_v58 = vadd.f32 0.112945676, %v2360_v44  ;;  %v1968_v29 = vadd.f32 %v4731_v50, %v1949_v27  ;;  %2136 = vmatpush.bf16.msra.mxu0 %v3355_v23  ;;  %3621 = vmatpush.bf16.msra.mxu2 %v3355_v23 }
 0x2ff   : > { %v1970_v47 = vadd.f32 %v4738_v56, %v1951_v1  ;;  %v2650_v56 = vld [vmem:[%s5232_s4 + $0x30] sm:$0xff] }
 0x300   : > { %v2362_v24 = vmul.f32 %v2361_v58, %v4824_v40  ;;  %v1987_v31 = vadd.f32 %v4762_v43, %v1968_v29  ;;  %v4853_v32 = vpop.permute.xlu1 %1321  ;;  %v2345_v43 = vmul.f32 2.1237322e-06, %v4824_v40  ;;  %2688 = vperm.xlu2 %3706, %v2650_v56  }
 0x301   : > { %v1989_v60 = vadd.f32 %v4781_v2, %v1970_v47  ;;  %v1918_v4 = vadd.f32 %v4717_v30, %v4853_v32  ;;  %2137 = vmatmul.bf16.vlgmr.msra.gmra.mxu0 %v4586_v5  ;;  %2142 = vmatmul.bf16.vlgmr.msra.gmra.mxu2 %v4614_v42 }
 0x302   : > { %v2363_v50 = vadd.f32 0.4994258, %v2362_v24  ;;  %v2006_v7 = vadd.f32 %v4768_v37, %v1987_v31  ;;  %v2346_v38 = vadd.f32 0.00028619796, %v2345_v43 }
 0x303   : > { %v2008_v12 = vadd.f32 %v4784_v6, %v1989_v60  ;;  %v1937_v2 = vadd.f32 %v4720_v36, %v1918_v4  ;;  %v1993_v6 = vpop.f32.mrf.mxu0 }
 0x304   : > { %v4868_v30 = vadd.f32 %v4770_v26, %v2006_v7  ;;  %v2364_v37 = vmul.f32 %v2363_v50, %v4824_v40  ;;  %v2347_v62 = vmul.f32 %v2346_v38, %v4824_v40 }
 0x305   : > { %v4871_v5 = vadd.f32 %v4789_v9, %v2008_v12  ;;  %v1956_v42 = vadd.f32 %v4752_v22, %v1937_v2 }
 0x306   : > { %v4876_v35 = vmul.f32 0.70710677, %v4868_v30  ;;  %3431 = vmatmul.msk.bf16.gmra.mxu1 %vm1894_vm2, %v4606_v33  ;;  %v4888_v39 = vadd.f32 1.0, %v2364_v37  ;;  %v2653_v33 = vld [vmem:[%s5232_s4 + $0x48] sm:$0xff]  ;;  %v2348_v54 = vadd.f32 0.0036580483, %v2347_v62 }
 0x307   : > { %v4881_v36 = vmul.f32 0.70710677, %v4871_v5  ;;  %v1975_v26 = vadd.f32 %v4757_v34, %v1956_v42 }
 0x308   : > { %v2183_v9 = vmul.f32 %v4876_v35, %v4876_v35  ;;  %2703 = vperm.xlu2 %3706, %v2653_v33   ;;  %3707 = vrcp.f32 %v4888_v39  ;;  %v2349_v19 = vmul.f32 %v2348_v54, %v4824_v40  ;;  %vm2371_vm5 = vweird.f32 %v4888_v39 }
 0x309   : > { %v2263_v22 = vmul.f32 %v4881_v36, %v4881_v36  ;;  %v1994_v48 = vadd.f32 %v1993_v6, %v1975_v26 }
 0x30a   : > { %v4894_v18 = vmin.f32 %v2183_v9, 16.0  ;;  %v2350_v47 = vadd.f32 0.05243302, %v2349_v19 }
 0x30b   : > { %v4896_v34 = vmin.f32 %v2263_v22, 16.0  ;;  %v2013_v49 = vadd.f32 %v2012_v3, %v1994_v48 }
 0x30c   : > { %v2185_v20 = vmul.f32 2.1237322e-06, %v4894_v18  ;;  %v2196_v53 = vmul.f32 3.8918573e-05, %v4894_v18  ;;  %v2351_v37 = vmul.f32 %v2350_v47, %v4824_v40 }
 0x30d   : > { %v2265_v51 = vmul.f32 2.1237322e-06, %v4896_v34  ;;  %v4900_v52 = vadd.f32 %v2031_v14, %v2013_v49  ;;  %v2276_v46 = vmul.f32 3.8918573e-05, %v4896_v34 }
 0x30e   : > { %v2186_v55 = vadd.f32 0.00028619796, %v2185_v20  ;;  %v2197_v57 = vadd.f32 0.001143296, %v2196_v53  ;;  %v4915_v23 = vpop.eup %3707  ;;  %v2352_v49 = vadd.f32 0.18741608, %v2351_v37 }
 0x30f   : > { %v2266_v59 = vadd.f32 0.00028619796, %v2265_v51  ;;  %v4906_v63 = vmul.f32 0.70710677, %v4900_v52  ;;  %v2277_v16 = vadd.f32 0.001143296, %v2276_v46  ;;  %v2367_v24 = vmul.f32 %v4915_v23, %v4888_v39 }
 0x310   : > { %v2187_v13 = vmul.f32 %v2186_v55, %v4894_v18  ;;  %v2198_v11 = vmul.f32 %v2197_v57, %v4894_v18  ;;  %vm2372_vm15 = vweird.f32 %v4915_v23 }
 0x311   : > { %v2267_v15 = vmul.f32 %v2266_v59, %v4896_v34  ;;  %v2423_v17 = vmul.f32 %v4906_v63, %v4906_v63  ;;  %v2278_v0 = vmul.f32 %v2277_v16, %v4896_v34  ;;  %v2368_v6 = vsub.f32 1.0, %v2367_v24  ;;  %vm4946_vm12 = vmor %vm2371_vm5, %vm2372_vm15 }
 0x312   : > { %v2188_v21 = vadd.f32 0.0036580483, %v2187_v13  ;;  %v2199_v10 = vadd.f32 0.014752088, %v2198_v11  ;;  %v2353_v13 = vmul.f32 %v2352_v49, %v4824_v40 }
 0x313   : > { %v2268_v25 = vadd.f32 0.0036580483, %v2267_v15  ;;  %v4917_v44 = vmin.f32 %v2423_v17, 16.0  ;;  %v2279_v27 = vadd.f32 0.014752088, %v2278_v0  ;;  %v2369_v53 = vmul.f32 %v4915_v23, %v2368_v6 }
 0x314   : > { %v2200_v1 = vmul.f32 %v2199_v10, %v4894_v18  ;;  %v2189_v31 = vmul.f32 %v2188_v21, %v4894_v18  ;;  %v2377_v15 = vand.u32 2147483648, %v4888_v39  ;;  %v2375_v17 = vand.u32 2147483647, %v4888_v39 }
 0x315   : > { %v2425_v58 = vmul.f32 2.1237322e-06, %v4917_v44  ;;  %v2436_v29 = vmul.f32 3.8918573e-05, %v4917_v44  ;;  %v2280_v60 = vmul.f32 %v2279_v27, %v4896_v34  ;;  %v2269_v4 = vmul.f32 %v2268_v25, %v4896_v34 }
 0x316   : > { %v2201_v50 = vadd.f32 0.112945676, %v2200_v1  ;;  %v2190_v38 = vadd.f32 0.05243302, %v2189_v31  ;;  %v2370_v11 = vadd.f32 %v4915_v23, %v2369_v53  ;;  %v2354_v27 = vadd.f32 1.1283791, %v2353_v13 }
 0x317   : > { %v2426_v7 = vadd.f32 0.00028619796, %v2425_v58  ;;  %v2437_v56 = vadd.f32 0.001143296, %v2436_v29  ;;  %v2281_v43 = vadd.f32 0.112945676, %v2280_v60 }
 0x318   : > { %v2202_v12 = vmul.f32 %v2201_v50, %v4894_v18  ;;  %v2270_v3 = vadd.f32 0.05243302, %v2269_v4  ;;  %v2191_v20 = vmul.f32 %v2190_v38, %v4894_v18  ;;  %v2378_v1 = vor.u32 1.1754944e-38, %v2377_v15 }
 0x319   : > { %v2427_v2 = vmul.f32 %v2426_v7, %v4917_v44  ;;  %v2438_v42 = vmul.f32 %v2437_v56, %v4917_v44  ;;  %v2282_v26 = vmul.f32 %v2281_v43, %v4896_v34  ;;  %v2374_v29 = vsel %vm4946_vm12, %v4915_v23, %v2370_v11 }
 0x31a   : > { %v2203_v9 = vadd.f32 0.4994258, %v2202_v12  ;;  %v2271_v46 = vmul.f32 %v2270_v3, %v4896_v34  ;;  %v2192_v16 = vadd.f32 0.18741608, %v2191_v20  ;;  %vm2376_vm11 = vcmp.eq.f32.partialorder %v2375_v17, 8.507059e+37 }
 0x31b   : > { %v2439_v22 = vadd.f32 0.014752088, %v2438_v42  ;;  %v2283_v48 = vadd.f32 0.4994258, %v2282_v26  ;;  %v2428_v33 = vadd.f32 0.0036580483, %v2427_v2  ;;  %v2355_v7 = vmul.f32 %v2354_v27, %v4815_v45 }
 0x31c   : > { %v2204_v14 = vmul.f32 %v2203_v9, %v4894_v18  ;;  %v2272_v19 = vadd.f32 0.18741608, %v2271_v46  ;;  %v2193_v40 = vmul.f32 %v2192_v16, %v4894_v18  ;;  %v2379_v18 = vsel %vm2376_vm11, %v2378_v1, %v2374_v29 }
 0x31d   : > { %v2440_v62 = vmul.f32 %v2439_v22, %v4917_v44  ;;  %v2284_v51 = vmul.f32 %v2283_v48, %v4896_v34  ;;  %v2429_v57 = vmul.f32 %v2428_v33, %v4917_v44  ;;  %v2380_v3 = vmul.f32 %v2379_v18, %v2355_v7 }
 0x31e   : > { %v2205_v54 = vadd.f32 1.0, %v2204_v14  ;;  %v2273_v39 = vmul.f32 %v2272_v19, %v4896_v34  ;;  %v2194_v56 = vadd.f32 1.1283791, %v2193_v40 }
 0x31f   : > { %v2441_v55 = vadd.f32 0.112945676, %v2440_v62  ;;  %v2285_v59 = vadd.f32 1.0, %v2284_v51  ;;  %v2430_v25 = vadd.f32 0.05243302, %v2429_v57  ;;  %v3436_v57 = vclamps-f32 %v2380_v3, 1.0 }
 0x320   : > { %3709 = vrcp.f32 %v2205_v54  ;;  %v2274_v12 = vadd.f32 1.1283791, %v2273_v39  ;;  %v2217_v2 = vand.u32 2147483648, %v2205_v54  ;;  %v2215_v42 = vand.u32 2147483647, %v2205_v54 }
 0x321   : > { %3711 = vrcp.f32 %v2285_v59  ;;  %v2442_v21 = vmul.f32 %v2441_v55, %v4917_v44  ;;  %v2431_v4 = vmul.f32 %v2430_v25, %v4917_v44  ;;  %v2297_v37 = vand.u32 2147483648, %v2285_v59 }
 0x322   : > { %v2295_v38 = vand.u32 2147483647, %v2285_v59  ;;  %vm2211_vm3 = vweird.f32 %v2205_v54  ;;  %v2195_v45 = vmul.f32 %v2194_v56, %v4876_v35  ;;  %v2218_v22 = vor.u32 1.1754944e-38, %v2217_v2  ;;  %v2043_v2 = vpop.f32.mrf.mxu3 }
 0x323   : > { %v2443_v10 = vadd.f32 0.4994258, %v2442_v21  ;;  %v2432_v26 = vadd.f32 0.18741608, %v2431_v4  ;;  %vm2291_vm14 = vweird.f32 %v2285_v59  ;;  %v2275_v14 = vmul.f32 %v2274_v12, %v4881_v36 }
 0x324   : > { %vm2216_vm6 = vcmp.eq.f32.partialorder %v2215_v42, 8.507059e+37  ;;  %v2298_v62 = vor.u32 1.1754944e-38, %v2297_v37  ;;  %vm2296_vm8 = vcmp.eq.f32.partialorder %v2295_v38, 8.507059e+37  ;;  %v2507_v40 = vadd.f32 1.0, %v3436_v57  ;;  %v3732_v37 = vld [vmem:[%s3962_s23 + $0x18] sm:$0xff] }
 0x325   : > { %v2444_v47 = vmul.f32 %v2443_v10, %v4917_v44  ;;  %v2433_v53 = vmul.f32 %v2432_v26, %v4917_v44  ;;  %v2169_v44 = vmul.f32 0.5, %v4871_v5  ;;  %v3864_v10 = vmov 32.0  }
 0x326   : > { %v3710_v58 = vpop.eup %3709  ;;  %v2171_v5 = vmul.f32 0.5, %v4811_v41  ;;  %v2173_v56 = vmul.f32 0.5, %v4900_v52 }
 0x327   : > { %v3712_v24 = vpop.eup %3711  ;;  %v2207_v31 = vmul.f32 %v3710_v58, %v2205_v54  ;;  %v4957_v50 = vadd.f32 1.0, %v2444_v47  ;;  %vm2212_vm13 = vweird.f32 %v3710_v58  ;;  %v2434_v16 = vadd.f32 1.1283791, %v2433_v53 }
 0x328   : > { %v2287_v60 = vmul.f32 %v3712_v24, %v2285_v59  ;;  %vm2292_vm1 = vweird.f32 %v3712_v24  ;;  %vm2213_vm0 = vmor %vm2211_vm3, %vm2212_vm13  ;;  %v2167_v59 = vmul.f32 0.5, %v4868_v30  ;;  %v2515_v7 = vmul.f32 %v2507_v40, %v2171_v5 }
 0x329   : > { %v2208_v43 = vsub.f32 1.0, %v2207_v31  ;;  %3713 = vrcp.f32 %v4957_v50  ;;  %vm2293_vm7 = vmor %vm2291_vm14, %vm2292_vm1  ;;  %v2457_v11 = vand.u32 2147483648, %v4957_v50  ;;  %v2455_v19 = vand.u32 2147483647, %v4957_v50 }
 0x32a   : > { %v2288_v23 = vsub.f32 1.0, %v2287_v60  ;;  %vm2451_vm9 = vweird.f32 %v4957_v50  ;;  %3715 = vrcp.f32 %v3864_v10  ;;  %v3730_v60 = vld [vmem:[%s3962_s23 + $0x8] sm:$0xff] }
 0x32b   : > { %v2209_v34 = vmul.f32 %v3710_v58, %v2208_v43  ;;  %v2458_v27 = vor.u32 1.1754944e-38, %v2457_v11  ;;  %vm2456_vm5 = vcmp.eq.f32.partialorder %v2455_v19, 8.507059e+37  ;;  %v2100_v19 = vpop.f32.mrf.mxu2 }
 0x32c   : > { %v2289_v6 = vmul.f32 %v3712_v24, %v2288_v23  ;;  %v3731_v23 = vld [vmem:[%s3962_s23 + $0x10] sm:$0xff] }
 0x32d   : > { %v2210_v9 = vadd.f32 %v3710_v58, %v2209_v34  ;;  %v2531_v34 = vadd.f32 %v3731_v23, %v2515_v7 }
 0x32e   : > { %v2290_v48 = vadd.f32 %v3712_v24, %v2289_v6 }
 0x32f   : > { %v2214_v33 = vsel %vm2213_vm0, %v3710_v58, %v2210_v9  ;;  %v3714_v49 = vpop.eup %3713  ;;  %v2435_v58 = vmul.f32 %v2434_v16, %v4906_v63 }
 0x330   : > { %v2219_v20 = vsel %vm2216_vm6, %v2218_v22, %v2214_v33  ;;  %v2294_v51 = vsel %vm2293_vm7, %v3712_v24, %v2290_v48  ;;  %v2447_v35 = vmul.f32 %v3714_v49, %v4957_v50  ;;  %vm2452_vm4 = vweird.f32 %v3714_v49  ;;  %v3729_v24 = vld [vmem:[%s3962_s23] sm:$0xff]  ;;  %v3716_v50 = vpop.eup %3715  ;;  %v2045_v22 = vpop.f32.mrf.mxu3 }
 0x331   : > { %v2220_v46 = vmul.f32 %v2219_v20, %v2195_v45  ;;  %v2299_v54 = vsel %vm2296_vm8, %v2298_v62, %v2294_v51  ;;  %vm2453_vm10 = vmor %vm2451_vm9, %vm2452_vm4  ;;  %v2554_v63 = vmul.f32 32.0, %v3716_v50  ;;  %vm2558_vm15 = vweird.f32 %v3716_v50 }
 0x332   : > { %v2300_v55 = vmul.f32 %v2299_v54, %v2275_v14  ;;  %v2448_v36 = vsub.f32 1.0, %v2447_v35  ;;  %v2081_v14 = vpop.f32.mrf.mxu1 }
 0x333   : > { %v3432_v13 = vclamps-f32 %v2220_v46, 1.0  ;;  %v2555_v38 = vsub.f32 1.0, %v2554_v63  ;;  %v2102_v40 = vpop.f32.mrf.mxu2 }
 0x334   : > { %v3434_v15 = vclamps-f32 %v2300_v55, 1.0  ;;  %v2449_v17 = vmul.f32 %v3714_v49, %v2448_v36  ;;  %v2062_v57 = vpop.f32.mrf.mxu0 }
 0x335   : > { %v2503_v21 = vadd.f32 1.0, %v3432_v13  ;;  %v2556_v9 = vmul.f32 %v3716_v50, %v2555_v38 }
 0x336   : > { %v2505_v0 = vadd.f32 1.0, %v3434_v15  ;;  %v2450_v25 = vadd.f32 %v3714_v49, %v2449_v17 }
 0x337   : > { %v2511_v30 = vmul.f32 %v2503_v21, %v2167_v59  ;;  %v2557_v33 = vadd.f32 %v3716_v50, %v2556_v9 }
 0x338   : > { %v2513_v1 = vmul.f32 %v2505_v0, %v2169_v44  ;;  %v2454_v29 = vsel %vm2453_vm10, %v3714_v49, %v2450_v25  ;;  %v2048_v53 = vpop.f32.mrf.mxu3 }
 0x339   : > { %v2459_v39 = vsel %vm2456_vm5, %v2458_v27, %v2454_v29  ;;  %v2527_v31 = vadd.f32 %v3729_v24, %v2511_v30  ;;  %v4977_v49 = vsel %vm2558_vm15, %v3716_v50, %v2557_v33 }
 0x33a   : > { %v2460_v47 = vmul.f32 %v2459_v39, %v2435_v58  ;;  %v2529_v4 = vadd.f32 %v3730_v60, %v2513_v1  ;;  %v2083_v35 = vpop.f32.mrf.mxu1 }
 0x33c   : > { %v3438_v18 = vclamps-f32 %v2460_v47, 1.0  ;;  %v2535_v12 = vadd.f32 %v2529_v4, %v2527_v31  ;;  %v2064_v30 = vpop.f32.mrf.mxu0 }
 0x33e   : > { %v2509_v43 = vadd.f32 1.0, %v3438_v18  ;;  %v2536_v6 = vadd.f32 %v2535_v12, %v2531_v34 }
 0x340   : > { %v2517_v42 = vmul.f32 %v2509_v43, %v2173_v56  ;;  %v2050_v44 = vpop.f32.mrf.mxu3  ;;  %v2049_v56 = vadd.f32 %v2048_v53, %v4791_v8  ;;  %v2046_v43 = vadd.f32 %v2045_v22, %v4837_v28 }
 0x342   : > { %v2533_v41 = vadd.f32 %v3732_v37, %v2517_v42  ;;  %v2086_v0 = vpop.f32.mrf.mxu1  ;;  %v2065_v37 = vadd.f32 %v2064_v30, %v2046_v43 }
 0x344   : > { %v2537_v26 = vadd.f32 %v2536_v6, %v2533_v41  ;;  %v2067_v47 = vpop.f32.mrf.mxu0 }
 0x345   : > { %v2068_v42 = vadd.f32 %v2067_v47, %v2049_v56 }
 0x346   : > { %v2538_v3 = vrot.slane %v2537_v26, 4 }
 0x348   : > { %v2539_v45 = vadd.f32 %v2538_v3, %v2537_v26  ;;  %v2087_v3 = vadd.f32 %v2086_v0, %v2068_v42 }
 0x34a   : > { %v2540_v48 = vrot.slane %v2539_v45, 2  ;;  %v2088_v39 = vpop.f32.mrf.mxu1 }
 0x34c   : > { %v2541_v52 = vadd.f32 %v2540_v48, %v2539_v45  ;;  %v2069_v12 = vpop.f32.mrf.mxu0  ;;  %v2084_v45 = vadd.f32 %v2083_v35, %v2065_v37 }
 0x34e   : > { %v2542_v62 = vrot.slane %v2541_v52, 1 }
 0x350   : > { %v2543_v20 = vadd.f32 %v2542_v62, %v2541_v52 }
 0x352   : > { %v2560_v51 = vmul.f32 %v4977_v49, %v2543_v20  ;;  %v2103_v20 = vadd.f32 %v2102_v40, %v2084_v45 }
 0x354   : > { %v4980_v46 = vsub.f32 %v2527_v31, %v2560_v51  ;;  %v4982_v54 = vsub.f32 %v2529_v4, %v2560_v51  ;;  %v4984_v55 = vsub.f32 %v2531_v34, %v2560_v51  ;;  %v4986_v59 = vsub.f32 %v2533_v41, %v2560_v51  ;;  %v2105_v4 = vpop.f32.mrf.mxu2 }
 0x355   : > { %v2044_v31 = vadd.f32 %v2043_v2, %v4832_v61  ;;  %v2051_v61 = vadd.f32 %v2050_v44, %v4853_v32  ;;  %v2106_v52 = vadd.f32 %v2105_v4, %v2087_v3 }
 0x356   : > { %v2570_v13 = vmul.f32 %v4980_v46, %v4980_v46  ;;  %v2572_v36 = vmul.f32 %v4982_v54, %v4982_v54  ;;  %v2574_v15 = vmul.f32 %v4984_v55, %v4984_v55  ;;  %v2576_v11 = vmul.f32 %v4986_v59, %v4986_v59 }
 0x357   : > { %v2063_v50 = vadd.f32 %v2062_v57, %v2044_v31  ;;  %v2070_v22 = vadd.f32 %v2069_v12, %v2051_v61 }
 0x358   : > { %v2578_v16 = vadd.f32 %v2572_v36, %v2570_v13 }
 0x359   : > { %v2082_v23 = vadd.f32 %v2081_v14, %v2063_v50  ;;  %v2089_v13 = vadd.f32 %v2088_v39, %v2070_v22 }
 0x35a   : > { %v2579_v17 = vadd.f32 %v2578_v16, %v2574_v15 }
 0x35b   : > { %v2101_v6 = vadd.f32 %v2100_v19, %v2082_v23 }
 0x35c   : > { %v2580_v21 = vadd.f32 %v2579_v17, %v2576_v11  ;;  %v2107_v2 = vpop.f32.mrf.mxu2 }
 0x35d   : > { %v2108_v30 = vadd.f32 %v2107_v2, %v2089_v13 }
 0x35e   : > { %v2581_v25 = vrot.slane %v2580_v21, 4 }
 0x360   : > { %v2582_v10 = vadd.f32 %v2581_v25, %v2580_v21  ;;  %v2119_v29 = vpop.f32.mrf.mxu3 }
 0x361   : > { %v2120_v9 = vadd.f32 %v2119_v29, %v2101_v6 }
 0x362   : > { %v2583_v27 = vrot.slane %v2582_v10, 2 }
 0x364   : > { %v2584_v1 = vadd.f32 %v2583_v27, %v2582_v10 }
 0x366   : > { %v2585_v58 = vrot.slane %v2584_v1, 1 }
 0x368   : > { %v2586_v5 = vadd.f32 %v2585_v58, %v2584_v1  ;;  %v2121_v18 = vpop.f32.mrf.mxu3 }
 0x369   : > { %v2122_v36 = vadd.f32 %v2121_v18, %v2103_v20 }
 0x36a   : > { %v2596_v24 = vmul.f32 %v2586_v5, %v4977_v49 }
 0x36c   : > { %v2598_v60 = vadd.f32 1e-05, %v2596_v24 }
 0x36e   : > { %3717 = vrsqrt.f32 %v2598_v60  ;;  %vm2606_vm11 = vweird.f32 %v2598_v60 }
 0x370   : > { %v2124_v48 = vpop.f32.mrf.mxu3 }
 0x371   : > { %v2125_v32 = vadd.f32 %v2124_v48, %v2106_v52 }
 0x373   : > { %v2157_v7 = vpop.f32.mrf.mxu1 }
 0x374   : > { %v3718_v63 = vpop.eup %3717 }
 0x375   : > { %v2601_v34 = vmul.f32 %v3718_v63, %v2598_v60  ;;  %vm2607_vm12 = vweird.f32 %v3718_v63 }
 0x376   : > { %vm2608_vm13 = vmor %vm2606_vm11, %vm2607_vm12 }
 0x377   : > { %v2602_v41 = vmul.f32 %v3718_v63, %v2601_v34 }
 0x378   : > { %v2126_v10 = vpop.f32.mrf.mxu3 }
 0x379   : > { %v2603_v26 = vmul.f32 0.5, %v2602_v41  ;;  %v2127_v29 = vadd.f32 %v2126_v10, %v2108_v30 }
 0x37b   : > { %v2159_v38 = vpop.f32.mrf.mxu1  ;;  %v2604_v33 = vsub.f32 1.5, %v2603_v26 }
 0x37d   : > { %v2605_v14 = vmul.f32 %v3718_v63, %v2604_v33 }
 0x37e   : > { %v2138_v8 = vpop.f32.mrf.mxu0 }
 0x37f   : > { %v2139_v28 = vadd.f32 %v2138_v8, %v2120_v9  ;;  %v2609_v51 = vsel %vm2608_vm13, %v3718_v63, %v2605_v14 }
 0x380   : > { %v2624_v35 = vmul.f32 %v2609_v51, %v4984_v55  ;;  %v2626_v57 = vmul.f32 %v2609_v51, %v4986_v59  ;;  %v2620_v11 = vmul.f32 %v2609_v51, %v4980_v46  ;;  %v2622_v44 = vmul.f32 %v2609_v51, %v4982_v54  ;;  %v5026_v54 = vld [vmem:[%s5231_s3] sm:$0xff] }
 0x381   : > { %v5001_v62 = vadd.f32 %v2157_v7, %v2139_v28 }
 0x382   : > { %v2642_v19 = vpack.c.bf16 %v2626_v57, %v2624_v35  ;;  %v2640_v40 = vpack.c.bf16 %v2622_v44, %v2620_v11  ;;  %v5070_v11 = vld [vmem:[%s5231_s3 + $0x8] sm:$0xff] }
 0x383   : > { %v5004_v53 = vmul.f32 0.70710677, %v5001_v62  ;;  %v2162_v15 = vpop.f32.mrf.mxu1 }
 0x384   : > { %v2143_v16 = vpop.f32.mrf.mxu2  ;;  %2770 = vmatpush.bf16.msrb.mxu2 %v2642_v19 }
 0x385   : > { %v2223_v17 = vmul.f32 %v5004_v53, %v5004_v53  ;;  %v2144_v21 = vadd.f32 %v2143_v16, %v2125_v32 }
 0x386   : > { %v2140_v0 = vpop.f32.mrf.mxu0 }
 0x387   : > { %v5012_v25 = vmin.f32 %v2223_v17, 16.0  ;;  %v5014_v55 = vadd.f32 %v2162_v15, %v2144_v21  ;;  %v2141_v59 = vadd.f32 %v2140_v0, %v2122_v36 }
 0x388   : > { %2771 = vmatpush.bf16.msrb.mxu2 %v2640_v40 }
 0x389   : > { %v2225_v27 = vmul.f32 2.1237322e-06, %v5012_v25  ;;  %v2236_v46 = vmul.f32 3.8918573e-05, %v5012_v25  ;;  %v5018_v1 = vadd.f32 %v2159_v38, %v2141_v59  ;;  %v5021_v58 = vmul.f32 0.70710677, %v5014_v55 }
 0x38b   : > { %v2237_v39 = vadd.f32 0.001143296, %v2236_v46  ;;  %v2383_v5 = vmul.f32 %v5021_v58, %v5021_v58  ;;  %v5031_v47 = vmul.f32 0.70710677, %v5018_v1  ;;  %v2226_v31 = vadd.f32 0.00028619796, %v2225_v27  ;;  %v2164_v18 = vpop.f32.mrf.mxu1  ;;  %3464 = vmatmul.msk.bf16.vlgmr.msrb.gmra.mxu2 %vm1894_vm2, %v5026_v54 }
 0x38c   : > { %v2145_v24 = vpop.f32.mrf.mxu2 }
 0x38d   : > { %v2238_v60 = vmul.f32 %v2237_v39, %v5012_v25  ;;  %v2146_v4 = vadd.f32 %v2145_v24, %v2127_v29  ;;  %v5034_v50 = vmin.f32 %v2383_v5, 16.0  ;;  %v2303_v7 = vmul.f32 %v5031_v47, %v5031_v47 }
 0x38e   : > { %v2227_v34 = vmul.f32 %v2226_v31, %v5012_v25 }
 0x38f   : > { %v2239_v56 = vadd.f32 0.014752088, %v2238_v60  ;;  %v5040_v43 = vadd.f32 %v2164_v18, %v2146_v4  ;;  %v2385_v12 = vmul.f32 2.1237322e-06, %v5034_v50  ;;  %v2396_v63 = vmul.f32 3.8918573e-05, %v5034_v50 }
 0x390   : > { %v5044_v23 = vmin.f32 %v2303_v7, 16.0  ;;  %v2228_v45 = vadd.f32 0.0036580483, %v2227_v34 }
 0x391   : > { %v2240_v42 = vmul.f32 %v2239_v56, %v5012_v25  ;;  %v5049_v37 = vmul.f32 0.70710677, %v5040_v43  ;;  %v2397_v41 = vadd.f32 0.001143296, %v2396_v63  ;;  %v2386_v61 = vadd.f32 0.00028619796, %v2385_v12 }
 0x392   : > { %v2305_v6 = vmul.f32 2.1237322e-06, %v5044_v23  ;;  %v2316_v2 = vmul.f32 3.8918573e-05, %v5044_v23  ;;  %v2229_v57 = vmul.f32 %v2228_v45, %v5012_v25 }
 0x393   : > { %v2241_v38 = vadd.f32 0.112945676, %v2240_v42  ;;  %v2463_v26 = vmul.f32 %v5049_v37, %v5049_v37  ;;  %v2398_v3 = vmul.f32 %v2397_v41, %v5034_v50  ;;  %v2387_v14 = vmul.f32 %v2386_v61, %v5034_v50 }
 0x394   : > { %v2306_v9 = vadd.f32 0.00028619796, %v2305_v6  ;;  %v2317_v8 = vadd.f32 0.001143296, %v2316_v2  ;;  %v2230_v30 = vadd.f32 0.05243302, %v2229_v57 }
 0x395   : > { %v2242_v48 = vmul.f32 %v2241_v38, %v5012_v25  ;;  %v5057_v33 = vmin.f32 %v2463_v26, 16.0  ;;  %v2399_v28 = vadd.f32 0.014752088, %v2398_v3  ;;  %v2388_v19 = vadd.f32 0.0036580483, %v2387_v14 }
 0x396   : > { %v2307_v52 = vmul.f32 %v2306_v9, %v5044_v23  ;;  %v2318_v20 = vmul.f32 %v2317_v8, %v5044_v23  ;;  %v2231_v24 = vmul.f32 %v2230_v30, %v5012_v25 }
 0x397   : > { %v2243_v22 = vadd.f32 0.4994258, %v2242_v48  ;;  %v2400_v51 = vmul.f32 %v2399_v28, %v5034_v50  ;;  %v2465_v32 = vmul.f32 2.1237322e-06, %v5057_v33  ;;  %v2476_v35 = vmul.f32 3.8918573e-05, %v5057_v33 }
 0x398   : > { %v2319_v36 = vadd.f32 0.014752088, %v2318_v20  ;;  %v2308_v21 = vadd.f32 0.0036580483, %v2307_v52  ;;  %v2389_v46 = vmul.f32 %v2388_v19, %v5034_v50  ;;  %v2232_v41 = vadd.f32 0.18741608, %v2231_v24 }
 0x399   : > { %v2244_v13 = vmul.f32 %v2243_v22, %v5012_v25  ;;  %v2401_v15 = vadd.f32 0.112945676, %v2400_v51  ;;  %v2477_v16 = vadd.f32 0.001143296, %v2476_v35  ;;  %v2466_v59 = vadd.f32 0.00028619796, %v2465_v32 }
 0x39a   : > { %v2320_v44 = vmul.f32 %v2319_v36, %v5044_v23  ;;  %v2309_v40 = vmul.f32 %v2308_v21, %v5044_v23  ;;  %v2390_v18 = vadd.f32 0.05243302, %v2389_v46  ;;  %v2233_v8 = vmul.f32 %v2232_v41, %v5012_v25  ;;  %v5099_v20 = vld [vmem:[%s5231_s3 + $0x10] sm:$0xff] }
 0x39b   : > { %v2245_v17 = vadd.f32 1.0, %v2244_v13  ;;  %v2402_v0 = vmul.f32 %v2401_v15, %v5034_v50  ;;  %v2478_v10 = vmul.f32 %v2477_v16, %v5057_v33  ;;  %3465 = vmatmul.msk.bf16.gmra.mxu2 %vm1894_vm2, %v5070_v11  ;;  %v2467_v5 = vmul.f32 %v2466_v59, %v5057_v33 }
 0x39c   : > { %v2321_v29 = vadd.f32 0.112945676, %v2320_v44  ;;  %v2310_v56 = vadd.f32 0.05243302, %v2309_v40  ;;  %v2391_v2 = vmul.f32 %v2390_v18, %v5034_v50  ;;  %v2234_v25 = vadd.f32 1.1283791, %v2233_v8 }
 0x39d   : > { %3719 = vrcp.f32 %v2245_v17  ;;  %v2403_v27 = vadd.f32 0.4994258, %v2402_v0  ;;  %v2479_v60 = vadd.f32 0.014752088, %v2478_v10  ;;  %v2468_v42 = vadd.f32 0.0036580483, %v2467_v5 }
 0x39e   : > { %v2322_v31 = vmul.f32 %v2321_v29, %v5044_v23  ;;  %v2311_v26 = vmul.f32 %v2310_v56, %v5044_v23  ;;  %v2255_v28 = vand.u32 2147483647, %v2245_v17  ;;  %v2257_v52 = vand.u32 2147483648, %v2245_v17 }
 0x39f   : > { %v2404_v39 = vmul.f32 %v2403_v27, %v5034_v50  ;;  %v2480_v63 = vmul.f32 %v2479_v60, %v5057_v33  ;;  %v2469_v45 = vmul.f32 %v2468_v42, %v5057_v33  ;;  %v2392_v51 = vadd.f32 0.18741608, %v2391_v2 }
 0x3a0   : > { %v2323_v12 = vadd.f32 0.4994258, %v2322_v31  ;;  %v2312_v35 = vadd.f32 0.18741608, %v2311_v26  ;;  %vm2251_vm3 = vweird.f32 %v2245_v17  ;;  %vm2256_vm14 = vcmp.eq.f32.partialorder %v2255_v28, 8.507059e+37 }
 0x3a1   : > { %v5083_v4 = vadd.f32 1.0, %v2404_v39  ;;  %v2481_v61 = vadd.f32 0.112945676, %v2480_v63  ;;  %v2470_v57 = vadd.f32 0.05243302, %v2469_v45  ;;  %v2258_v19 = vor.u32 1.1754944e-38, %v2257_v52 }
 0x3a2   : > { %v2324_v38 = vmul.f32 %v2323_v12, %v5044_v23  ;;  %v2313_v0 = vmul.f32 %v2312_v35, %v5044_v23 }
 0x3a3   : > { %v3720_v7 = vpop.eup %3719  ;;  %3721 = vrcp.f32 %v5083_v4  ;;  %v2482_v48 = vmul.f32 %v2481_v61, %v5057_v33  ;;  %vm2411_vm7 = vweird.f32 %v5083_v4  ;;  %v2417_v30 = vand.u32 2147483648, %v5083_v4 }
 0x3a4   : > { %v2247_v34 = vmul.f32 %v3720_v7, %v2245_v17  ;;  %v5090_v9 = vadd.f32 1.0, %v2324_v38  ;;  %vm2252_vm1 = vweird.f32 %v3720_v7  ;;  %v2393_v17 = vmul.f32 %v2392_v51, %v5034_v50 }
 0x3a5   : > { %v2483_v13 = vadd.f32 0.4994258, %v2482_v48  ;;  %vm5102_vm0 = vmor %vm2251_vm3, %vm2252_vm1  ;;  %v2471_v10 = vmul.f32 %v2470_v57, %v5057_v33  ;;  %v2415_v29 = vand.u32 2147483647, %v5083_v4  ;;  %v2235_v50 = vmul.f32 %v2234_v25, %v5004_v53 }
 0x3a6   : > { %v2248_v6 = vsub.f32 1.0, %v2247_v34  ;;  %3723 = vrcp.f32 %v5090_v9  ;;  %v2394_v5 = vadd.f32 1.1283791, %v2393_v17  ;;  %v2314_v24 = vadd.f32 1.1283791, %v2313_v0  ;;  %v3733_v17 = vld [vmem:[%s3962_s23 + $0x28] sm:$0xff] }
 0x3a7   : > { %v2484_v21 = vmul.f32 %v2483_v13, %v5057_v33  ;;  %v2337_v18 = vand.u32 2147483648, %v5090_v9  ;;  %v2472_v56 = vadd.f32 0.18741608, %v2471_v10  ;;  %vm2416_vm4 = vcmp.eq.f32.partialorder %v2415_v29, 8.507059e+37  ;;  %v3734_v0 = vld [vmem:[%s3962_s23 + $0x20] sm:$0xff] }
 0x3a8   : > { %v2249_v3 = vmul.f32 %v3720_v7, %v2248_v6  ;;  %v2395_v34 = vmul.f32 %v2394_v5, %v5021_v58  ;;  %vm2331_vm10 = vweird.f32 %v5090_v9  ;;  %v2315_v6 = vmul.f32 %v2314_v24, %v5031_v47  ;;  %v5128_v58 = vld [vmem:[%s5231_s3 + $0x18] sm:$0xff] }
 0x3a9   : > { %v3722_v22 = vpop.eup %3721  ;;  %v2485_v27 = vadd.f32 1.0, %v2484_v21  ;;  %v2338_v38 = vor.u32 1.1754944e-38, %v2337_v18  ;;  %v2473_v61 = vmul.f32 %v2472_v56, %v5057_v33  ;;  %v2168_v33 = vmul.f32 0.5, %v5001_v62 }
 0x3aa   : > { %v2250_v14 = vadd.f32 %v3720_v7, %v2249_v3  ;;  %v2407_v32 = vmul.f32 %v3722_v22, %v5083_v4  ;;  %vm2412_vm6 = vweird.f32 %v3722_v22  ;;  %v2335_v4 = vand.u32 2147483647, %v5090_v9 }
 0x3ab   : > { %3466 = vmatmul.msk.bf16.gmra.mxu2 %vm1894_vm2, %v5099_v20  ;;  %vm2413_vm8 = vmor %vm2411_vm7, %vm2412_vm6  ;;  %3725 = vrcp.f32 %v2485_v27  ;;  %v2474_v28 = vadd.f32 1.1283791, %v2473_v61  ;;  %v2497_v47 = vand.u32 2147483648, %v2485_v27  ;;  %vm2491_vm11 = vweird.f32 %v2485_v27 }
 0x3ac   : > { %v2408_v15 = vsub.f32 1.0, %v2407_v32  ;;  %v2254_v16 = vsel %vm5102_vm0, %v3720_v7, %v2250_v14  ;;  %v3724_v59 = vpop.eup %3723  ;;  %v2418_v7 = vor.u32 1.1754944e-38, %v2417_v30  ;;  %vm2336_vm15 = vcmp.eq.f32.partialorder %v2335_v4, 8.507059e+37 }
 0x3ad   : > { %v2259_v46 = vsel %vm2256_vm14, %v2258_v19, %v2254_v16  ;;  %v2327_v39 = vmul.f32 %v3724_v59, %v5090_v9  ;;  %vm2332_vm9 = vweird.f32 %v3724_v59  ;;  %v2170_v32 = vmul.f32 0.5, %v5018_v1 }
 0x3ae   : > { %v2409_v44 = vmul.f32 %v3722_v22, %v2408_v15  ;;  %v2260_v60 = vmul.f32 %v2259_v46, %v2235_v50  ;;  %vm2333_vm5 = vmor %vm2331_vm10, %vm2332_vm9  ;;  %v2475_v25 = vmul.f32 %v2474_v28, %v5049_v37  ;;  %v2498_v36 = vor.u32 1.1754944e-38, %v2497_v47  ;;  %v5143_v50 = vld [vmem:[%s5231_s3 + $0x20] sm:$0xff] }
 0x3af   : > { %v2328_v31 = vsub.f32 1.0, %v2327_v39  ;;  %v2172_v21 = vmul.f32 0.5, %v5014_v55  ;;  %v2174_v37 = vmul.f32 0.5, %v5040_v43  ;;  %v3736_v55 = vld [vmem:[%s3962_s23 + $0x38] sm:$0xff] }
 0x3b0   : > { %v2410_v40 = vadd.f32 %v3722_v22, %v2409_v44  ;;  %v3433_v41 = vclamps-f32 %v2260_v60, 1.0 }
 0x3b1   : > { %v2329_v12 = vmul.f32 %v3724_v59, %v2328_v31  ;;  %v3726_v42 = vpop.eup %3725 }
 0x3b2   : > { %v2414_v23 = vsel %vm2413_vm8, %v3722_v22, %v2410_v40  ;;  %v2487_v3 = vmul.f32 %v3726_v42, %v2485_v27  ;;  %v2504_v8 = vadd.f32 1.0, %v3433_v41  ;;  %v2495_v22 = vand.u32 2147483647, %v2485_v27  ;;  %v3735_v40 = vld [vmem:[%s3962_s23 + $0x30] sm:$0xff]  ;;  %s3623_s23 = smul.u32 192, %s3917_s22 }
 0x3b3   : > { %v2419_v63 = vsel %vm2416_vm4, %v2418_v7, %v2414_v23  ;;  %v2330_v53 = vadd.f32 %v3724_v59, %v2329_v12  ;;  %vm2492_vm12 = vweird.f32 %v3726_v42  ;;  %v5151_v12 = vld [vmem:[%s5231_s3 + $0x28] sm:$0xff] }
 0x3b4   : > { %v2420_v2 = vmul.f32 %v2419_v63, %v2395_v34  ;;  %v2488_v9 = vsub.f32 1.0, %v2487_v3  ;;  %v2512_v13 = vmul.f32 %v2504_v8, %v2168_v33  ;;  %vm2493_vm13 = vmor %vm2491_vm11, %vm2492_vm12  ;;  %vm2496_vm1 = vcmp.eq.f32.partialorder %v2495_v22, 8.507059e+37  ;;  %s2880_s30 = scalar_lea.hbm %s5233_s5, %s3623_s23 }
 0x3b5   : > { %v2334_v26 = vsel %vm2333_vm5, %v3724_v59, %v2330_v53  ;;  %s2883_s11 = sshll.u32 %s2880_s30, 4  ;;  %s2884_s11 = int_to_ptr.hbm [resolvable:$true] %s2883_s11 }
 0x3b6   : > { %v2339_v45 = vsel %vm2336_vm15, %v2338_v38, %v2334_v26  ;;  %v3437_v14 = vclamps-f32 %v2420_v2, 1.0  ;;  %v2489_v51 = vmul.f32 %v3726_v42, %v2488_v9  ;;  %v2528_v59 = vadd.f32 %v3734_v0, %v2512_v13  ;;  %s3781_s13 = sshra.s32 %s2884_s11, 4  ;;  %s3782_s13 = int_to_ptr.hbm [resolvable:$true] %s3781_s13 }
 0x3b7   : > { %v2340_v48 = vmul.f32 %v2339_v45, %v2315_v6  ;;  %s3783_s22 = scalar_lea.hbm %s3782_s13, 192  ;;  %p3788_p4 = scmp.lt.s32.totalorder %s3782_s13, %s5233_s5 }
 0x3b8   : > { %v2490_v57 = vadd.f32 %v3726_v42, %v2489_v51  ;;  %v2508_v15 = vadd.f32 1.0, %v3437_v14  ;;  %p3784_p1 = scmp.ne.s32.totalorder %s3782_s13, %s3783_s22  ;;  %p3789_p7 = scmp.lt.s32.totalorder %s3787_s16, %s3783_s22 }
 0x3b9   : > { %v3435_v52 = vclamps-f32 %v2340_v48, 1.0 }
 0x3ba   : > { %v2494_v19 = vsel %vm2493_vm13, %v3726_v42, %v2490_v57  ;;  %v2516_v30 = vmul.f32 %v2508_v15, %v2172_v21  ;;  %p3785_p2 = pnand %p3784_p1, %p3934_p5  ;;  %p3790_p8 = por %p3789_p7, %p3788_p4 }
 0x3bb   : > { %3467 = vmatmul.msk.bf16.gmra.mxu2 %vm1894_vm2, %v5128_v58  ;;  %v2506_v35 = vadd.f32 1.0, %v3435_v52  ;;  %v2499_v62 = vsel %vm2496_vm1, %v2498_v36, %v2494_v19 }
 0x3bc   : > { %v2500_v44 = vmul.f32 %v2499_v62, %v2475_v25  ;;  %v2532_v29 = vadd.f32 %v3735_v40, %v2516_v30  ;;  %v2659_v62 = vpop.permute.xlu2 %2658  ;;  %p3786_p3 = pneg %p3785_p2 }
 0x3bd   : > { %v2514_v16 = vmul.f32 %v2506_v35, %v2170_v32 }
 0x3be   : > { %v3439_v10 = vclamps-f32 %v2500_v44, 1.0  ;;  %p3791_p9 = pnand %p3790_p8, %p3786_p3 }
 0x3bf   : > { %v2530_v1 = vadd.f32 %v3733_v17, %v2514_v16 }
 0x3c0   : > { %v2510_v46 = vadd.f32 1.0, %v3439_v10 }
 0x3c1   : > { %v2544_v27 = vadd.f32 %v2530_v1, %v2528_v59 }
 0x3c2   : > { %v2518_v39 = vmul.f32 %v2510_v46, %v2174_v37 }
 0x3c3   : > { %v2545_v23 = vadd.f32 %v2544_v27, %v2532_v29 }
 0x3c4   : > { %v2534_v5 = vadd.f32 %v3736_v55, %v2518_v39  ;;  %v2674_v27 = vpop.permute.xlu2 %2673 }
 0x3c6   : > { %v2546_v24 = vadd.f32 %v2545_v23, %v2534_v5 }
 0x3c8   : > { %v2547_v31 = vrot.slane %v2546_v24, 4 }
 0x3ca   : > { %v2548_v60 = vadd.f32 %v2547_v31, %v2546_v24 }
 0x3cb   : > { %3468 = vmatmul.msk.bf16.gmra.mxu2 %vm1894_vm2, %v5143_v50 }
 0x3cc   : > { %v2549_v7 = vrot.slane %v2548_v60, 2  ;;  %v2689_v23 = vpop.permute.xlu2 %2688 }
 0x3ce   : > { %v2550_v43 = vadd.f32 %v2549_v7, %v2548_v60 }
 0x3d0   : > { %v2551_v18 = vrot.slane %v2550_v43, 1 }
 0x3d2   : > { %v2552_v56 = vadd.f32 %v2551_v18, %v2550_v43 }
 0x3d4   : > { %v2561_v4 = vmul.f32 %v4977_v49, %v2552_v56  ;;  %v2704_v56 = vpop.permute.xlu2 %2703 }
 0x3d6   : > { %v2563_v63 = vsub.f32 %v2528_v59, %v2561_v4  ;;  %v2565_v34 = vsub.f32 %v2530_v1, %v2561_v4  ;;  %v2567_v53 = vsub.f32 %v2532_v29, %v2561_v4  ;;  %v2569_v42 = vsub.f32 %v2534_v5, %v2561_v4  ;;  %v2664_v1 = vpop.permute.xlu0 %2663  ;;  %v2669_v59 = vpop.permute.xlu1 %2668 }
 0x3d8   : > { %v2571_v41 = vmul.f32 %v2563_v63, %v2563_v63  ;;  %v2573_v6 = vmul.f32 %v2565_v34, %v2565_v34  ;;  %v2575_v38 = vmul.f32 %v2567_v53, %v2567_v53  ;;  %v2577_v2 = vmul.f32 %v2569_v42, %v2569_v42 }
 0x3da   : > { %v2587_v61 = vadd.f32 %v2573_v6, %v2571_v41 }
 0x3db   : > { %3469 = vmatmul.msk.bf16.gmra.mxu2 %vm1894_vm2, %v5151_v12 }
 0x3dc   : > { %v2588_v26 = vadd.f32 %v2587_v61, %v2575_v38 }
 0x3de   : > { %v2589_v3 = vadd.f32 %v2588_v26, %v2577_v2  ;;  %v2679_v40 = vpop.permute.xlu0 %2678  ;;  %v2684_v39 = vpop.permute.xlu1 %2683 }
 0x3e0   : > { %v2590_v45 = vrot.slane %v2589_v3, 4 }
 0x3e2   : > { %v2591_v48 = vadd.f32 %v2590_v45, %v2589_v3 }
 0x3e4   : > { %v2592_v9 = vrot.slane %v2591_v48, 2 }
 0x3e6   : > { %v2593_v8 = vadd.f32 %v2592_v9, %v2591_v48  ;;  %v2694_v31 = vpop.permute.xlu0 %2693  ;;  %v2699_v43 = vpop.permute.xlu1 %2698 }
 0x3e8   : > { %v2594_v28 = vrot.slane %v2593_v8, 1 }
 0x3ea   : > { %v2595_v22 = vadd.f32 %v2594_v28, %v2593_v8 }
 0x3ec   : > { %v2597_v47 = vmul.f32 %v2595_v22, %v4977_v49 }
 0x3ee   : > { %v2599_v14 = vadd.f32 1e-05, %v2597_v47 }
 0x3f0   : > { %3727 = vrsqrt.f32 %v2599_v14  ;;  %vm2616_vm0 = vweird.f32 %v2599_v14 }
 0x3f6   : > { %v3728_v52 = vpop.eup %3727 }
 0x3f7   : > { %v2611_v51 = vmul.f32 %v3728_v52, %v2599_v14  ;;  %vm2617_vm3 = vweird.f32 %v3728_v52 }
 0x3f8   : > { %vm2618_vm14 = vmor %vm2616_vm0, %vm2617_vm3 }
 0x3f9   : > { %v2612_v33 = vmul.f32 %v3728_v52, %v2611_v51 }
 0x3fb   : > { %v2613_v32 = vmul.f32 0.5, %v2612_v33 }
 0x3fd   : > { %v2614_v35 = vsub.f32 1.5, %v2613_v32 }
 0x3ff   : > { %v2615_v57 = vmul.f32 %v3728_v52, %v2614_v35 }
 0x401   : > { %v2619_v13 = vsel %vm2618_vm14, %v3728_v52, %v2615_v57 }
 0x402   : > { %v2625_v25 = vmul.f32 %v2619_v13, %v2567_v53  ;;  %v2627_v36 = vmul.f32 %v2619_v13, %v2569_v42  ;;  %v2621_v16 = vmul.f32 %v2619_v13, %v2563_v63  ;;  %v2623_v19 = vmul.f32 %v2619_v13, %v2565_v34  ;;  %v2714_v42 = vpop.permute.xlu1 %2713 }
 0x404   : > { %v2643_v15 = vpack.c.bf16 %v2627_v36, %v2625_v25  ;;  %v2641_v49 = vpack.c.bf16 %v2623_v19, %v2621_v16 }
 0x406   : > { %2809 = vmatpush.bf16.msra.mxu3 %v2643_v15 }
 0x40a   : > { %2810 = vmatpush.bf16.msra.mxu3 %v2641_v49 }
 0x40d   : > { %3470 = vmatmul.msk.bf16.vlgmr.msra.gmra.mxu3 %vm1894_vm2, %v5026_v54 }
 0x40e   : > { %v2773_v21 = vpop.f32.mrf.mxu2 }
 0x40f   : > { %v2774_v17 = vadd.f32 %v2773_v21, %v2659_v62 }
 0x411   : > { %2842 = vst [vmem:[%s3964_s25] sm:$0xff] %v2774_v17 }
 0x416   : > { %v2775_v44 = vpop.f32.mrf.mxu2 }
 0x417   : > { %v2776_v0 = vadd.f32 %v2775_v44, %v2664_v1 }
 0x419   : > { %2843 = vst [vmem:[%s3964_s25 + $0x8] sm:$0xff] %v2776_v0 }
 0x41d   : > { %3471 = vmatmul.msk.bf16.gmra.mxu3 %vm1894_vm2, %v5070_v11 }
 0x41e   : > { %v2778_v30 = vpop.f32.mrf.mxu2 }
 0x41f   : > { %v2779_v10 = vadd.f32 %v2778_v30, %v2669_v59 }
 0x421   : > { %2844 = vst [vmem:[%s3964_s25 + $0x10] sm:$0xff] %v2779_v10 }
 0x426   : > { %v2780_v37 = vpop.f32.mrf.mxu2 }
 0x427   : > { %v2781_v46 = vadd.f32 %v2780_v37, %v2674_v27 }
 0x429   : > { %2845 = vst [vmem:[%s3964_s25 + $0x18] sm:$0xff] %v2781_v46 }
 0x42d   : > { %3472 = vmatmul.msk.bf16.gmra.mxu3 %vm1894_vm2, %v5099_v20 }
 0x42e   : > { %v2783_v54 = vpop.f32.mrf.mxu2 }
 0x42f   : > { %v2784_v29 = vadd.f32 %v2783_v54, %v2679_v40 }
 0x431   : > { %2846 = vst [vmem:[%s3964_s25 + $0x20] sm:$0xff] %v2784_v29 }
 0x436   : > { %v2785_v55 = vpop.f32.mrf.mxu2 }
 0x437   : > { %v2786_v5 = vadd.f32 %v2785_v55, %v2684_v39 }
 0x439   : > { %2847 = vst [vmem:[%s3964_s25 + $0x28] sm:$0xff] %v2786_v5 }
 0x43d   : > { %3473 = vmatmul.msk.bf16.gmra.mxu3 %vm1894_vm2, %v5128_v58  ;;  %v2709_v58 = vpop.permute.xlu0 %2708 }
 0x43e   : > { %v2788_v11 = vpop.f32.mrf.mxu2 }
 0x43f   : > { %v2789_v24 = vadd.f32 %v2788_v11, %v2689_v23 }
 0x441   : > { %2848 = vst [vmem:[%s3964_s25 + $0x30] sm:$0xff] %v2789_v24 }
 0x446   : > { %v2790_v60 = vpop.f32.mrf.mxu2 }
 0x447   : > { %v2791_v7 = vadd.f32 %v2790_v60, %v2694_v31 }
 0x449   : > { %2849 = vst [vmem:[%s3964_s25 + $0x38] sm:$0xff] %v2791_v7 }
 0x44d   : > { %3474 = vmatmul.msk.bf16.gmra.mxu3 %vm1894_vm2, %v5143_v50 }
 0x44e   : > { %v2793_v20 = vpop.f32.mrf.mxu2 }
 0x44f   : > { %v2794_v18 = vadd.f32 %v2793_v20, %v2699_v43 }
 0x451   : > { %2850 = vst [vmem:[%s3964_s25 + $0x40] sm:$0xff] %v2794_v18 }
 0x456   : > { %v2795_v4 = vpop.f32.mrf.mxu2 }
 0x457   : > { %v2796_v63 = vadd.f32 %v2795_v4, %v2704_v56 }
 0x459   : > { %2851 = vst [vmem:[%s3964_s25 + $0x48] sm:$0xff] %v2796_v63 }
 0x45d   : > { %3475 = vmatmul.msk.bf16.gmra.mxu3 %vm1894_vm2, %v5151_v12 }
 0x45e   : > { %v2798_v34 = vpop.f32.mrf.mxu2 }
 0x45f   : > { %v2799_v53 = vadd.f32 %v2798_v34, %v2709_v58 }
 0x461   : > { %2852 = vst [vmem:[%s3964_s25 + $0x50] sm:$0xff] %v2799_v53 }
 0x466   : > { %v2800_v41 = vpop.f32.mrf.mxu2 }
 0x467   : > { %v2801_v6 = vadd.f32 %v2800_v41, %v2714_v42 }
 0x469   : > { %2853 = vst [vmem:[%s3964_s25 + $0x58] sm:$0xff] %v2801_v6 }
 0x490   : > { %v2812_v50 = vpop.f32.mrf.mxu3 }
 0x491   : > { %v2813_v38 = vadd.f32 %v2812_v50, %v2659_v62 }
 0x493   : > { %3476 = vst [vmem:[%s3964_s25 + $0x60] sm:$0xff] %v2813_v38 }
 0x498   : > { %v2814_v61 = vpop.f32.mrf.mxu3 }
 0x499   : > { %v2815_v2 = vadd.f32 %v2814_v61, %v2664_v1 }
 0x49b   : > { %3477 = vst [vmem:[%s3964_s25 + $0x68] sm:$0xff] %v2815_v2 }
 0x4a0   : > { %v2817_v26 = vpop.f32.mrf.mxu3 }
 0x4a1   : > { %v2818_v3 = vadd.f32 %v2817_v26, %v2669_v59 }
 0x4a3   : > { %3478 = vst [vmem:[%s3964_s25 + $0x70] sm:$0xff] %v2818_v3 }
 0x4a8   : > { %v2819_v45 = vpop.f32.mrf.mxu3 }
 0x4a9   : > { %v2820_v12 = vadd.f32 %v2819_v45, %v2674_v27 }
 0x4ab   : > { %3479 = vst [vmem:[%s3964_s25 + $0x78] sm:$0xff] %v2820_v12 }
 0x4b0   : > { %v2822_v48 = vpop.f32.mrf.mxu3 }
 0x4b1   : > { %v2823_v9 = vadd.f32 %v2822_v48, %v2679_v40 }
 0x4b3   : > { %3480 = vst [vmem:[%s3964_s25 + $0x80] sm:$0xff] %v2823_v9 }
 0x4b8   : > { %v2824_v8 = vpop.f32.mrf.mxu3 }
 0x4b9   : > { %v2825_v28 = vadd.f32 %v2824_v8, %v2684_v39 }
 0x4bb   : > { %3481 = vst [vmem:[%s3964_s25 + $0x88] sm:$0xff] %v2825_v28 }
 0x4c0   : > { %v2827_v22 = vpop.f32.mrf.mxu3 }
 0x4c1   : > { %v2828_v47 = vadd.f32 %v2827_v22, %v2689_v23 }
 0x4c3   : > { %3482 = vst [vmem:[%s3964_s25 + $0x90] sm:$0xff] %v2828_v47 }
 0x4c8   : > { %v2829_v14 = vpop.f32.mrf.mxu3 }
 0x4c9   : > { %v2830_v52 = vadd.f32 %v2829_v14, %v2694_v31 }
 0x4cb   : > { %3483 = vst [vmem:[%s3964_s25 + $0x98] sm:$0xff] %v2830_v52 }
 0x4d0   : > { %v2832_v51 = vpop.f32.mrf.mxu3 }
 0x4d1   : > { %v2833_v33 = vadd.f32 %v2832_v51, %v2699_v43 }
 0x4d3   : > { %3484 = vst [vmem:[%s3964_s25 + $0xa0] sm:$0xff] %v2833_v33 }
 0x4d8   : > { %v2834_v32 = vpop.f32.mrf.mxu3 }
 0x4d9   : > { %v2835_v35 = vadd.f32 %v2834_v32, %v2704_v56 }
 0x4db   : > { %3485 = vst [vmem:[%s3964_s25 + $0xa8] sm:$0xff] %v2835_v35 }
 0x4e0   : > { %v2837_v57 = vpop.f32.mrf.mxu3 }
 0x4e1   : > { %v2838_v13 = vadd.f32 %v2837_v57, %v2709_v58 }
 0x4e3   : > { %3486 = vst [vmem:[%s3964_s25 + $0xb0] sm:$0xff] %v2838_v13 }
 0x4e8   : > { %v2839_v25 = vpop.f32.mrf.mxu3 }
 0x4e9   : > { %v2840_v36 = vadd.f32 %v2839_v25, %v2714_v42 }
 0x4eb   : > { %3487 = vst [vmem:[%s3964_s25 + $0xb8] sm:$0xff] %v2840_v36 }
 0x4ec   : > { %3794 = shalt.err (!%p3791_p9)
}
 0x4ed   : > { %s3865_s25 = smov 128  }
 0x4ee   : > { %3628 = dma.vmem_to_hbm [thread:$0]  (%p3934_p5), %s2882_s8, 3072, %s2884_s11, %s2868_s9, %s3865_s25, %s3865_s25, %s5267_s10  }
 0x4ef PF: > { %p3640_p10 = scmp.ge.s32.totalorder %s3833_s21, 2  ;;  %s2898_s23 = sand.u32 1, %s3821_s18  }
 0x4f0   : > { %s2899_s12 = scalar_lea.sflag [#allocation6], %s2898_s23 }
 0x4f1   : > { %p3635_p11 = pnand %p3640_p10, %p3938_p6 }
 0x4f3   : > { %p3636_p12 = pneg %p3635_p11 }
 0x4f5   : > { %3816 = dma.done.wait (%p3636_p12), %s2899_s12, 3072  }
 0x4f6   : > { %3818 = vsyncadd (%p3636_p12), %s2899_s12, 4294964224  ;;  %p16_p13 = scmp.ge.s32.totalorder %s3921_s24, 4   ;;  %s5308_s18 = smov %s3825_s19 }
 0x4f7   : > { %s5309_s19 = smov %s3829_s20  ;;  %s5310_s20 = smov %s3932_s27 }
 0x4f8   : > { %s5311_s21 = smov %s3921_s24  ;;  %18 = sbr.rel (!%p16_p13) target bundleno = 4 (0x4), region = 86 }
 0x4fd   :  { %2905 = vsyncpa [#allocation5], 1 }
 0x4fe   :  { %2907 = vsyncpa [#allocation5 + $0x1], 1 }
 0x4ff   :  { %2908 = vsyncpa [#allocation6], 1 }
 0x500   :  { %2910 = vsyncpa [#allocation6 + $0x1], 1 }

</bundles_post_ra>
